<compile_context>
chip_gen: v6e
topology: v6e:2x2x1
jax: 0.10.0
libtpu: 0.0.40
codegen_flags: <defaults>
</compile_context>

<pallas_src>
import jax
import jax.numpy as jnp
from jax.experimental import pallas as pl
from jax.experimental.pallas import tpu as pltpu


# ---------------------------------------------------------------------------
# Layer configuration of the PyTorch Decoder.
# ---------------------------------------------------------------------------
LAYERS = [
    dict(cin=64, cout=64, k=(7, 3), s=(1, 1), p=(0, 1)),
    dict(cin=64, cout=48, k=(8, 3), s=(4, 1), p=(2, 1)),
    dict(cin=48, cout=32, k=(4, 3), s=(2, 1), p=(1, 1)),
    dict(cin=32, cout=16, k=(2, 2), s=(2, 2), p=(0, 0)),
    dict(cin=16, cout=3,  k=(4, 4), s=(2, 2), p=(1, 1)),
]


def _round_up(n, m):
    return (n + m - 1) // m * m


# ---------------------------------------------------------------------------
# Static sub-pixel (phase) decomposition of a ConvTranspose2d.
# Phase (orh, orw) = output residues modulo the stride.  For that phase only
# the kernel taps kh ≡ (orh+ph) (mod sh), kw ≡ (orw+pw) (mod sw) contribute,
# and the needed input pixel is (uh + dh(kh), uw + dw(kw)) for output
# (uh*sh+orh, uw*sw+orw).
# ---------------------------------------------------------------------------
def _phase_taps(cfg):
    KH, KW = cfg["k"]
    sh, sw = cfg["s"]
    ph, pw = cfg["p"]
    phases = []
    for orh in range(sh):
        kh0 = (orh + ph) % sh
        kh_list = list(range(kh0, KH, sh))
        for orw in range(sw):
            kw0 = (orw + pw) % sw
            kw_list = list(range(kw0, KW, sw))
            dh_list = [(orh + ph - kh) // sh for kh in kh_list]
            dw_list = [(orw + pw - kw) // sw for kw in kw_list]
            phases.append(dict(kh0=kh0, kw0=kw0, kh=kh_list, kw=kw_list,
                               dh=dh_list, dw=dw_list))
    th, tw = len(phases[0]["kh"]), len(phases[0]["kw"])
    for p_ in phases:
        assert len(p_["kh"]) == th and len(p_["kw"]) == tw, \
            "unequal tap counts per phase (not needed for this decoder)"
    return phases, th, tw


def _make_plan(cfg, Hi, Wi):
    KH, KW = cfg["k"]
    sh, sw = cfg["s"]
    ph, pw = cfg["p"]
    Ho = (Hi - 1) * sh - 2 * ph + KH
    Wo = (Wi - 1) * sw - 2 * pw + KW
    assert Ho % sh == 0 and Wo % sw == 0
    nUh, nUw = Ho // sh, Wo // sw
    phases, th, tw = _phase_taps(cfg)
    all_dh = [d for p_ in phases for d in p_["dh"]]
    all_dw = [d for p_ in phases for d in p_["dw"]]
    pad_t = max(0, -min(all_dh))
    pad_b = max(0, max(all_dh) + nUh - Hi)
    pad_l = max(0, -min(all_dw))
    pad_r = max(0, max(all_dw) + nUw - Wi)
    k0 = cfg["cin"] * th * tw
    return dict(Ho=Ho, Wo=Wo, nUh=nUh, nUw=nUw, phases=phases,
                pad=(pad_t, pad_b, pad_l, pad_r),
                k0=k0, kp=_round_up(k0 + 1, 8),
                cout_p=_round_up(cfg["cout"], 8), P=sh * sw)


# ---------------------------------------------------------------------------
# Pallas kernel: one phase of one layer.
#   w_ref : (1, Cout_p, Kp)  bf16   (bias folded as the K0-th column)
#   p_ref : (1, Kp,     M )  bf16   (ones row at K0; M = B*Ho*Wo/phase, lanes)
#   o_ref : (1, Cout_p, M )  bf16
# ---------------------------------------------------------------------------
def _gemm_bias_relu_kernel(w_ref, p_ref, o_ref):
    acc = jnp.dot(w_ref[0], p_ref[0], preferred_element_type=jnp.float32)
    o_ref[0] = jnp.maximum(acc, 0.0).astype(o_ref.dtype)


# ---------------------------------------------------------------------------
# One ConvTranspose2d + ReLU layer.
#   act  : (Cin, B, Hi, Wi) bf16 (channel-major)
#   wmat : (P, Cout_p, Kp)  bf16 prepared phase weights (bias folded)
# returns (Cout_p, B, Ho, Wo) bf16
# ---------------------------------------------------------------------------
def _convt_layer(act, wmat, cfg, plan):
    cin, B, Hi, Wi = act.shape
    assert cin == cfg["cin"]
    sh, sw = cfg["s"]
    nUh, nUw = plan["nUh"], plan["nUw"]
    Ho, Wo = plan["Ho"], plan["Wo"]
    P, kp, cout_p, k0 = plan["P"], plan["kp"], plan["cout_p"], plan["k0"]
    Mr = B * nUh * nUw
    pad_t, pad_b, pad_l, pad_r = plan["pad"]

    # Boundary zero-padding only (no stride-zero dilation).
    xp = jnp.pad(act, ((0, 0), (0, 0), (pad_t, pad_b), (pad_l, pad_r)))

    # Compact per-phase patch matrices (K0, Mr): only real taps, no zeros.
    phase_mats = []
    for ptaps in plan["phases"]:
        slabs = []
        for dh in ptaps["dh"]:
            r0 = dh + pad_t
            for dw in ptaps["dw"]:
                c0 = dw + pad_l
                slabs.append(xp[:, :, r0:r0 + nUh, c0:c0 + nUw])
        a = jnp.stack(slabs, axis=1)                      # (Cin, T, B, nUh, nUw)
        phase_mats.append(a.reshape(cin * len(slabs), Mr))
    pat = jnp.stack(phase_mats, axis=0)                   # (P, K0, Mr)
    # Fold the bias: ones row at K index K0, then pad K to a multiple of 8.
    pat = jnp.concatenate([pat, jnp.ones((P, 1, Mr), pat.dtype)], axis=1)
    if kp > k0 + 1:
        pat = jnp.pad(pat, ((0, 0), (0, kp - (k0 + 1)), (0, 0)))

    out = pl.pallas_call(
        _gemm_bias_relu_kernel,
        out_shape=jax.ShapeDtypeStruct((P, cout_p, Mr), jnp.bfloat16),
        grid=(P,),
        in_specs=[
            pl.BlockSpec((1, cout_p, kp), lambda p: (p, 0, 0)),
            pl.BlockSpec((1, kp, Mr), lambda p: (p, 0, 0)),
        ],
        out_specs=pl.BlockSpec((1, cout_p, Mr), lambda p: (p, 0, 0)),
        compiler_params=pltpu.CompilerParams(
            dimension_semantics=("parallel",)),
    )(wmat, pat)

    # Re-interleave the phases back into a dense (Cout_p, B, Ho, Wo) map.
    y = out.reshape(sh, sw, cout_p, B, nUh, nUw)
    y = jnp.transpose(y, (2, 3, 4, 0, 5, 1)).reshape(cout_p, B, Ho, Wo)
    return y


# ---------------------------------------------------------------------------
# Parameter preparation (once, outside the jitted forward): per-phase weight
# matrices (P, Cout_p, Kp) in bf16 with the bias folded in as an extra column.
# ---------------------------------------------------------------------------
def prepare_params(params):
    wmats = []
    for cfg, (w, b) in zip(LAYERS, params):
        phases, th, tw = _phase_taps(cfg)
        sh, sw = cfg["s"]
        cin, cout = cfg["cin"], cfg["cout"]
        k0 = cin * th * tw
        kp = _round_up(k0 + 1, 8)
        cout_p = _round_up(cout, 8)
        mats = []
        for ptaps in phases:
            # (Cin, Cout, Th, Tw) -> (Cout, Cin*Th*Tw); tap order matches the
            # patch construction in _convt_layer (kh outer, kw inner).
            wsub = w[:, :, ptaps["kh0"]::sh, ptaps["kw0"]::sw]
            wm = jnp.transpose(wsub, (1, 0, 2, 3)).reshape(cout, k0)
            wm = jnp.concatenate([wm, b[:, None]], axis=1)     # bias column
            mats.append(wm)
        W = jnp.stack(mats, axis=0)                            # (P, Cout, K0+1)
        W = jnp.pad(W, ((0, 0), (0, cout_p - cout), (0, kp - (k0 + 1))))
        wmats.append(W.astype(jnp.bfloat16))
    return wmats


# ---------------------------------------------------------------------------
# Decoder forward: 5 x (ConvTranspose2d + ReLU).
# ---------------------------------------------------------------------------
def decoder_forward(x, wmats):
    # x: (B, 64, H, W) NCHW float32
    act = jnp.transpose(x, (1, 0, 2, 3)).astype(jnp.bfloat16)  # (C, B, H, W)
    for cfg, wm in zip(LAYERS, wmats):
        plan = _make_plan(cfg, act.shape[2], act.shape[3])
        act = _convt_layer(act, wm, cfg, plan)
    out = act[:LAYERS[-1]["cout"]]                # drop Cout padding (8 -> 3)
    return jnp.transpose(out, (1, 0, 2, 3)).astype(jnp.float32)   # NCHW


# ---------------------------------------------------------------------------
# Parameter init (PyTorch ConvTranspose2d default: U(+-1/sqrt(fan_in))).
# ---------------------------------------------------------------------------
def init_params(key):
    params = []
    for L in LAYERS:
        key, kw_, kb_ = jax.random.split(key, 3)
        fan = L["cin"] * L["k"][0] * L["k"][1]
        bound = 1.0 / (fan ** 0.5)
        w = jax.random.uniform(kw_, (L["cin"], L["cout"], L["k"][0], L["k"][1]),
                               jnp.float32, -bound, bound)
        b = jax.random.uniform(kb_, (L["cout"],), jnp.float32, -bound, bound)
        params.append((w, b))
    return params


def decoder_reference(x, params):
    """Pure-JAX f32 reference (conv with lhs dilation == transposed conv)."""
    out = x
    for L, (w, b) in zip(LAYERS, params):
        KH, KW = L["k"]
        sh, sw = L["s"]
        ph, pw = L["p"]
        wf = jnp.transpose(w[:, :, ::-1, ::-1], (1, 0, 2, 3))
        y = jax.lax.conv_general_dilated(
            out, wf, window_strides=(1, 1),
            padding=[(KH - 1 - ph, KH - 1 - ph), (KW - 1 - pw, KW - 1 - pw)],
            lhs_dilation=(sh, sw),
            dimension_numbers=("NCHW", "OIHW", "NCHW"),
            precision=jax.lax.Precision.HIGHEST)
        out = jnp.maximum(y + b[None, :, None, None], 0.0)
    return out


if __name__ == "__main__":
    key = jax.random.PRNGKey(0)
    kx, kp = jax.random.split(key)
    # small input consistent with the module: (B=2, C=64, H=4, W=8)
    x = jax.random.normal(kx, (2, 64, 4, 8), jnp.float32)
    params = init_params(kp)
    wmats = prepare_params(params)

    out = jax.jit(decoder_forward)(x, wmats)
    out = jax.block_until_ready(out)
    assert out.shape == (2, 3, 320, 32), out.shape

    ref = jax.block_until_ready(decoder_reference(x, params))
    diff = float(jnp.max(jnp.abs(out - ref)))
    scale = float(jnp.max(jnp.abs(ref))) + 1e-6
    # tolerance sized for bf16 operands / f32 accumulation over 5 stacked layers
    assert diff <= 3e-2 * scale + 5e-3, f"mismatch: max|diff|={diff}, scale={scale}"

    print("KERNEL_OK")
</pallas_src>

<mosaic_0001>
module attributes {stable_mosaic.version = 11 : i64} {
  func.func @_gemm_bias_relu_kernel(%arg0: i32, %arg1: memref<1x64x1352xbf16, #tpu.memory_space<vmem>>, %arg2: memref<1x1352x160xbf16, #tpu.memory_space<vmem>>, %arg3: memref<1x64x160xbf16, #tpu.memory_space<vmem>>) attributes {dimension_semantics = [#tpu.dimension_semantics<parallel>], iteration_bounds = array<i64: 1>, scalar_prefetch = 0 : i64, scratch_operands = 0 : i64, tpu.core_type = #tpu.core_type<tc>, window_params = [{transform_indices = @transform_0, window_bounds = array<i64: 1, 64, 1352>}, {transform_indices = @transform_1, window_bounds = array<i64: 1, 1352, 160>}, {transform_indices = @transform_2, window_bounds = array<i64: 1, 64, 160>}]} {
    %c0 = arith.constant 0 : index
    %c0_0 = arith.constant 0 : index
    %c0_1 = arith.constant 0 : index
    %0 = vector.load %arg1[%c0, %c0_0, %c0_1] : memref<1x64x1352xbf16, #tpu.memory_space<vmem>>, vector<1x64x1352xbf16>
    %1 = vector.shape_cast %0 : vector<1x64x1352xbf16> to vector<64x1352xbf16>
    %c0_2 = arith.constant 0 : index
    %c0_3 = arith.constant 0 : index
    %c0_4 = arith.constant 0 : index
    %2 = vector.load %arg2[%c0_2, %c0_3, %c0_4] : memref<1x1352x160xbf16, #tpu.memory_space<vmem>>, vector<1x1352x160xbf16>
    %3 = vector.shape_cast %2 : vector<1x1352x160xbf16> to vector<1352x160xbf16>
    %cst = arith.constant dense<0.000000e+00> : vector<64x160xf32>
    %4 = tpu.matmul %1, %3, %cst {dimension_numbers = #tpu.dot_dimension_numbers<[1], [0], [0], [1], [0, 0, 1, 1], [], []>} : vector<64x1352xbf16>, vector<1352x160xbf16>, vector<64x160xf32> -> vector<64x160xf32>
    %cst_5 = arith.constant 0.000000e+00 : f32
    %5 = vector.broadcast %cst_5 : f32 to vector<64x160xf32>
    %6 = arith.maximumf %4, %5 : vector<64x160xf32>
    %7 = arith.truncf %6 : vector<64x160xf32> to vector<64x160xbf16>
    %c0_6 = arith.constant 0 : index
    %c0_7 = arith.constant 0 : index
    %c0_8 = arith.constant 0 : index
    %8 = vector.load %arg3[%c0_6, %c0_7, %c0_8] : memref<1x64x160xbf16, #tpu.memory_space<vmem>>, vector<1x64x160xbf16>
    %9 = vector.shape_cast %8 : vector<1x64x160xbf16> to vector<64x160xbf16>
    %10 = vector.shape_cast %7 : vector<64x160xbf16> to vector<1x64x160xbf16>
    tpu.vector_store %arg3[%c0_6, %c0_7, %c0_8], %10 {strides = array<i32>} : memref<1x64x160xbf16, #tpu.memory_space<vmem>>, vector<1x64x160xbf16>,
    return
  }
  func.func @transform_0(%arg0: i32) -> (i32, i32, i32) {
    %c0_i32 = arith.constant 0 : i32
    %c0_i32_0 = arith.constant 0 : i32
    %c0_i32_1 = arith.constant 0 : i32
    return %arg0, %c0_i32, %c0_i32_0 : i32, i32, i32
  }
  func.func @transform_1(%arg0: i32) -> (i32, i32, i32) {
    %c0_i32 = arith.constant 0 : i32
    %c0_i32_0 = arith.constant 0 : i32
    %c0_i32_1 = arith.constant 0 : i32
    return %arg0, %c0_i32, %c0_i32_0 : i32, i32, i32
  }
  func.func @transform_2(%arg0: i32) -> (i32, i32, i32) {
    %c0_i32 = arith.constant 0 : i32
    %c0_i32_0 = arith.constant 0 : i32
    %c0_i32_1 = arith.constant 0 : i32
    return %arg0, %c0_i32, %c0_i32_0 : i32, i32, i32
  }
}

module attributes {stable_mosaic.version = 11 : i64} {
  func.func @_gemm_bias_relu_kernel(%arg0: i32, %arg1: memref<1x48x392xbf16, #tpu.memory_space<vmem>>, %arg2: memref<1x392x160xbf16, #tpu.memory_space<vmem>>, %arg3: memref<1x48x160xbf16, #tpu.memory_space<vmem>>) attributes {dimension_semantics = [#tpu.dimension_semantics<parallel>], iteration_bounds = array<i64: 4>, scalar_prefetch = 0 : i64, scratch_operands = 0 : i64, tpu.core_type = #tpu.core_type<tc>, window_params = [{transform_indices = @transform_0, window_bounds = array<i64: 1, 48, 392>}, {transform_indices = @transform_1, window_bounds = array<i64: 1, 392, 160>}, {transform_indices = @transform_2, window_bounds = array<i64: 1, 48, 160>}]} {
    %c0 = arith.constant 0 : index
    %c0_0 = arith.constant 0 : index
    %c0_1 = arith.constant 0 : index
    %0 = vector.load %arg1[%c0, %c0_0, %c0_1] : memref<1x48x392xbf16, #tpu.memory_space<vmem>>, vector<1x48x392xbf16>
    %1 = vector.shape_cast %0 : vector<1x48x392xbf16> to vector<48x392xbf16>
    %c0_2 = arith.constant 0 : index
    %c0_3 = arith.constant 0 : index
    %c0_4 = arith.constant 0 : index
    %2 = vector.load %arg2[%c0_2, %c0_3, %c0_4] : memref<1x392x160xbf16, #tpu.memory_space<vmem>>, vector<1x392x160xbf16>
    %3 = vector.shape_cast %2 : vector<1x392x160xbf16> to vector<392x160xbf16>
    %cst = arith.constant dense<0.000000e+00> : vector<48x160xf32>
    %4 = tpu.matmul %1, %3, %cst {dimension_numbers = #tpu.dot_dimension_numbers<[1], [0], [0], [1], [0, 0, 1, 1], [], []>} : vector<48x392xbf16>, vector<392x160xbf16>, vector<48x160xf32> -> vector<48x160xf32>
    %cst_5 = arith.constant 0.000000e+00 : f32
    %5 = vector.broadcast %cst_5 : f32 to vector<48x160xf32>
    %6 = arith.maximumf %4, %5 : vector<48x160xf32>
    %7 = arith.truncf %6 : vector<48x160xf32> to vector<48x160xbf16>
    %c0_6 = arith.constant 0 : index
    %c0_7 = arith.constant 0 : index
    %c0_8 = arith.constant 0 : index
    %8 = vector.load %arg3[%c0_6, %c0_7, %c0_8] : memref<1x48x160xbf16, #tpu.memory_space<vmem>>, vector<1x48x160xbf16>
    %9 = vector.shape_cast %8 : vector<1x48x160xbf16> to vector<48x160xbf16>
    %10 = vector.shape_cast %7 : vector<48x160xbf16> to vector<1x48x160xbf16>
    tpu.vector_store %arg3[%c0_6, %c0_7, %c0_8], %10 {strides = array<i32>} : memref<1x48x160xbf16, #tpu.memory_space<vmem>>, vector<1x48x160xbf16>,
    return
  }
  func.func @transform_0(%arg0: i32) -> (i32, i32, i32) {
    %c0_i32 = arith.constant 0 : i32
    %c0_i32_0 = arith.constant 0 : i32
    %c0_i32_1 = arith.constant 0 : i32
    return %arg0, %c0_i32, %c0_i32_0 : i32, i32, i32
  }
  func.func @transform_1(%arg0: i32) -> (i32, i32, i32) {
    %c0_i32 = arith.constant 0 : i32
    %c0_i32_0 = arith.constant 0 : i32
    %c0_i32_1 = arith.constant 0 : i32
    return %arg0, %c0_i32, %c0_i32_0 : i32, i32, i32
  }
  func.func @transform_2(%arg0: i32) -> (i32, i32, i32) {
    %c0_i32 = arith.constant 0 : i32
    %c0_i32_0 = arith.constant 0 : i32
    %c0_i32_1 = arith.constant 0 : i32
    return %arg0, %c0_i32, %c0_i32_0 : i32, i32, i32
  }
}

module attributes {stable_mosaic.version = 11 : i64} {
  func.func @_gemm_bias_relu_kernel(%arg0: i32, %arg1: memref<1x32x296xbf16, #tpu.memory_space<vmem>>, %arg2: memref<1x296x640xbf16, #tpu.memory_space<vmem>>, %arg3: memref<1x32x640xbf16, #tpu.memory_space<vmem>>) attributes {dimension_semantics = [#tpu.dimension_semantics<parallel>], iteration_bounds = array<i64: 2>, scalar_prefetch = 0 : i64, scratch_operands = 0 : i64, tpu.core_type = #tpu.core_type<tc>, window_params = [{transform_indices = @transform_0, window_bounds = array<i64: 1, 32, 296>}, {transform_indices = @transform_1, window_bounds = array<i64: 1, 296, 640>}, {transform_indices = @transform_2, window_bounds = array<i64: 1, 32, 640>}]} {
    %c0 = arith.constant 0 : index
    %c0_0 = arith.constant 0 : index
    %c0_1 = arith.constant 0 : index
    %0 = vector.load %arg1[%c0, %c0_0, %c0_1] : memref<1x32x296xbf16, #tpu.memory_space<vmem>>, vector<1x32x296xbf16>
    %1 = vector.shape_cast %0 : vector<1x32x296xbf16> to vector<32x296xbf16>
    %c0_2 = arith.constant 0 : index
    %c0_3 = arith.constant 0 : index
    %c0_4 = arith.constant 0 : index
    %2 = vector.load %arg2[%c0_2, %c0_3, %c0_4] : memref<1x296x640xbf16, #tpu.memory_space<vmem>>, vector<1x296x640xbf16>
    %3 = vector.shape_cast %2 : vector<1x296x640xbf16> to vector<296x640xbf16>
    %cst = arith.constant dense<0.000000e+00> : vector<32x640xf32>
    %4 = tpu.matmul %1, %3, %cst {dimension_numbers = #tpu.dot_dimension_numbers<[1], [0], [0], [1], [0, 0, 1, 1], [], []>} : vector<32x296xbf16>, vector<296x640xbf16>, vector<32x640xf32> -> vector<32x640xf32>
    %cst_5 = arith.constant 0.000000e+00 : f32
    %5 = vector.broadcast %cst_5 : f32 to vector<32x640xf32>
    %6 = arith.maximumf %4, %5 : vector<32x640xf32>
    %7 = arith.truncf %6 : vector<32x640xf32> to vector<32x640xbf16>
    %c0_6 = arith.constant 0 : index
    %c0_7 = arith.constant 0 : index
    %c0_8 = arith.constant 0 : index
    %8 = vector.load %arg3[%c0_6, %c0_7, %c0_8] : memref<1x32x640xbf16, #tpu.memory_space<vmem>>, vector<1x32x640xbf16>
    %9 = vector.shape_cast %8 : vector<1x32x640xbf16> to vector<32x640xbf16>
    %10 = vector.shape_cast %7 : vector<32x640xbf16> to vector<1x32x640xbf16>
    tpu.vector_store %arg3[%c0_6, %c0_7, %c0_8], %10 {strides = array<i32>} : memref<1x32x640xbf16, #tpu.memory_space<vmem>>, vector<1x32x640xbf16>,
    return
  }
  func.func @transform_0(%arg0: i32) -> (i32, i32, i32) {
    %c0_i32 = arith.constant 0 : i32
    %c0_i32_0 = arith.constant 0 : i32
    %c0_i32_1 = arith.constant 0 : i32
    return %arg0, %c0_i32, %c0_i32_0 : i32, i32, i32
  }
  func.func @transform_1(%arg0: i32) -> (i32, i32, i32) {
    %c0_i32 = arith.constant 0 : i32
    %c0_i32_0 = arith.constant 0 : i32
    %c0_i32_1 = arith.constant 0 : i32
    return %arg0, %c0_i32, %c0_i32_0 : i32, i32, i32
  }
  func.func @transform_2(%arg0: i32) -> (i32, i32, i32) {
    %c0_i32 = arith.constant 0 : i32
    %c0_i32_0 = arith.constant 0 : i32
    %c0_i32_1 = arith.constant 0 : i32
    return %arg0, %c0_i32, %c0_i32_0 : i32, i32, i32
  }
}

module attributes {stable_mosaic.version = 11 : i64} {
  func.func @_gemm_bias_relu_kernel(%arg0: i32, %arg1: memref<1x16x40xbf16, #tpu.memory_space<vmem>>, %arg2: memref<1x40x1280xbf16, #tpu.memory_space<vmem>>, %arg3: memref<1x16x1280xbf16, #tpu.memory_space<vmem>>) attributes {dimension_semantics = [#tpu.dimension_semantics<parallel>], iteration_bounds = array<i64: 4>, scalar_prefetch = 0 : i64, scratch_operands = 0 : i64, tpu.core_type = #tpu.core_type<tc>, window_params = [{transform_indices = @transform_0, window_bounds = array<i64: 1, 16, 40>}, {transform_indices = @transform_1, window_bounds = array<i64: 1, 40, 1280>}, {transform_indices = @transform_2, window_bounds = array<i64: 1, 16, 1280>}]} {
    %c0 = arith.constant 0 : index
    %c0_0 = arith.constant 0 : index
    %c0_1 = arith.constant 0 : index
    %0 = vector.load %arg1[%c0, %c0_0, %c0_1] : memref<1x16x40xbf16, #tpu.memory_space<vmem>>, vector<1x16x40xbf16>
    %1 = vector.shape_cast %0 : vector<1x16x40xbf16> to vector<16x40xbf16>
    %c0_2 = arith.constant 0 : index
    %c0_3 = arith.constant 0 : index
    %c0_4 = arith.constant 0 : index
    %2 = vector.load %arg2[%c0_2, %c0_3, %c0_4] : memref<1x40x1280xbf16, #tpu.memory_space<vmem>>, vector<1x40x1280xbf16>
    %3 = vector.shape_cast %2 : vector<1x40x1280xbf16> to vector<40x1280xbf16>
    %cst = arith.constant dense<0.000000e+00> : vector<16x1280xf32>
    %4 = tpu.matmul %1, %3, %cst {dimension_numbers = #tpu.dot_dimension_numbers<[1], [0], [0], [1], [0, 0, 1, 1], [], []>} : vector<16x40xbf16>, vector<40x1280xbf16>, vector<16x1280xf32> -> vector<16x1280xf32>
    %cst_5 = arith.constant 0.000000e+00 : f32
    %5 = vector.broadcast %cst_5 : f32 to vector<16x1280xf32>
    %6 = arith.maximumf %4, %5 : vector<16x1280xf32>
    %7 = arith.truncf %6 : vector<16x1280xf32> to vector<16x1280xbf16>
    %c0_6 = arith.constant 0 : index
    %c0_7 = arith.constant 0 : index
    %c0_8 = arith.constant 0 : index
    %8 = vector.load %arg3[%c0_6, %c0_7, %c0_8] : memref<1x16x1280xbf16, #tpu.memory_space<vmem>>, vector<1x16x1280xbf16>
    %9 = vector.shape_cast %8 : vector<1x16x1280xbf16> to vector<16x1280xbf16>
    %10 = vector.shape_cast %7 : vector<16x1280xbf16> to vector<1x16x1280xbf16>
    tpu.vector_store %arg3[%c0_6, %c0_7, %c0_8], %10 {strides = array<i32>} : memref<1x16x1280xbf16, #tpu.memory_space<vmem>>, vector<1x16x1280xbf16>,
    return
  }
  func.func @transform_0(%arg0: i32) -> (i32, i32, i32) {
    %c0_i32 = arith.constant 0 : i32
    %c0_i32_0 = arith.constant 0 : i32
    %c0_i32_1 = arith.constant 0 : i32
    return %arg0, %c0_i32, %c0_i32_0 : i32, i32, i32
  }
  func.func @transform_1(%arg0: i32) -> (i32, i32, i32) {
    %c0_i32 = arith.constant 0 : i32
    %c0_i32_0 = arith.constant 0 : i32
    %c0_i32_1 = arith.constant 0 : i32
    return %arg0, %c0_i32, %c0_i32_0 : i32, i32, i32
  }
  func.func @transform_2(%arg0: i32) -> (i32, i32, i32) {
    %c0_i32 = arith.constant 0 : i32
    %c0_i32_0 = arith.constant 0 : i32
    %c0_i32_1 = arith.constant 0 : i32
    return %arg0, %c0_i32, %c0_i32_0 : i32, i32, i32
  }
}

module attributes {stable_mosaic.version = 11 : i64} {
  func.func @_gemm_bias_relu_kernel(%arg0: i32, %arg1: memref<1x8x72xbf16, #tpu.memory_space<vmem>>, %arg2: memref<1x72x5120xbf16, #tpu.memory_space<vmem>>, %arg3: memref<1x8x5120xbf16, #tpu.memory_space<vmem>>) attributes {dimension_semantics = [#tpu.dimension_semantics<parallel>], iteration_bounds = array<i64: 4>, scalar_prefetch = 0 : i64, scratch_operands = 0 : i64, tpu.core_type = #tpu.core_type<tc>, window_params = [{transform_indices = @transform_0, window_bounds = array<i64: 1, 8, 72>}, {transform_indices = @transform_1, window_bounds = array<i64: 1, 72, 5120>}, {transform_indices = @transform_2, window_bounds = array<i64: 1, 8, 5120>}]} {
    %c0 = arith.constant 0 : index
    %c0_0 = arith.constant 0 : index
    %c0_1 = arith.constant 0 : index
    %0 = vector.load %arg1[%c0, %c0_0, %c0_1] : memref<1x8x72xbf16, #tpu.memory_space<vmem>>, vector<1x8x72xbf16>
    %1 = vector.shape_cast %0 : vector<1x8x72xbf16> to vector<8x72xbf16>
    %c0_2 = arith.constant 0 : index
    %c0_3 = arith.constant 0 : index
    %c0_4 = arith.constant 0 : index
    %2 = vector.load %arg2[%c0_2, %c0_3, %c0_4] : memref<1x72x5120xbf16, #tpu.memory_space<vmem>>, vector<1x72x5120xbf16>
    %3 = vector.shape_cast %2 : vector<1x72x5120xbf16> to vector<72x5120xbf16>
    %cst = arith.constant dense<0.000000e+00> : vector<8x5120xf32>
    %4 = tpu.matmul %1, %3, %cst {dimension_numbers = #tpu.dot_dimension_numbers<[1], [0], [0], [1], [0, 0, 1, 1], [], []>} : vector<8x72xbf16>, vector<72x5120xbf16>, vector<8x5120xf32> -> vector<8x5120xf32>
    %cst_5 = arith.constant 0.000000e+00 : f32
    %5 = vector.broadcast %cst_5 : f32 to vector<8x5120xf32>
    %6 = arith.maximumf %4, %5 : vector<8x5120xf32>
    %7 = arith.truncf %6 : vector<8x5120xf32> to vector<8x5120xbf16>
    %c0_6 = arith.constant 0 : index
    %c0_7 = arith.constant 0 : index
    %c0_8 = arith.constant 0 : index
    %8 = vector.load %arg3[%c0_6, %c0_7, %c0_8] : memref<1x8x5120xbf16, #tpu.memory_space<vmem>>, vector<1x8x5120xbf16>
    %9 = vector.shape_cast %8 : vector<1x8x5120xbf16> to vector<8x5120xbf16>
    %10 = vector.shape_cast %7 : vector<8x5120xbf16> to vector<1x8x5120xbf16>
    tpu.vector_store %arg3[%c0_6, %c0_7, %c0_8], %10 {strides = array<i32>} : memref<1x8x5120xbf16, #tpu.memory_space<vmem>>, vector<1x8x5120xbf16>,
    return
  }
  func.func @transform_0(%arg0: i32) -> (i32, i32, i32) {
    %c0_i32 = arith.constant 0 : i32
    %c0_i32_0 = arith.constant 0 : i32
    %c0_i32_1 = arith.constant 0 : i32
    return %arg0, %c0_i32, %c0_i32_0 : i32, i32, i32
  }
  func.func @transform_1(%arg0: i32) -> (i32, i32, i32) {
    %c0_i32 = arith.constant 0 : i32
    %c0_i32_0 = arith.constant 0 : i32
    %c0_i32_1 = arith.constant 0 : i32
    return %arg0, %c0_i32, %c0_i32_0 : i32, i32, i32
  }
  func.func @transform_2(%arg0: i32) -> (i32, i32, i32) {
    %c0_i32 = arith.constant 0 : i32
    %c0_i32_0 = arith.constant 0 : i32
    %c0_i32_1 = arith.constant 0 : i32
    return %arg0, %c0_i32, %c0_i32_0 : i32, i32, i32
  }
}

</mosaic_0001>

<bundles_post_ra>
// kernel: decoder_forward.5
= control target key start
LH: loop header
LB: loop body
LE: loop exit
PB: predicated region body
PF: predicated region fallthrough
CT: control target
= control target key end

     0   :  { %vm1307_vm0 = vcmask 1043456   ;;  %vm1294_vm1 = vcmask 588800   ;;  %vm1816_vm2 = vcmask 261124   ;;  %s3255_s1 = inlined_call_operand.vmem [shape: bf16[1,1352,160], index: 1, kind: input, shape index: {}]   ;;  %s3256_s0 = inlined_call_operand.vmem [shape: bf16[1,64,1352], index: 0, kind: input, shape index: {}]   ;;  %s3257_s2 = inlined_call_operand.vmem [shape: bf16[1,64,160], index: 2, kind: output, shape index: {}]  }
   0x1   :  { %v2066_v0 = vld [vmem:[%s3255_s1 + $0x74] ss:$8 sps:$4 sm:$0xff]   ;;  %v2070_v2 = vld [vmem:[%s3255_s1 + $0x70] ss:$8 sps:$4 sm:$0xff]   ;;  %v2072_v4 = vld [vmem:[%s3255_s1 + $0x64] ss:$8 sps:$4 sm:$0xff]  }
   0x2   :  { %v2068_v1 = vld [vmem:[%s3255_s1 + $0x174] ss:$8 sps:$4 sm:$0xff]   ;;  %1314 = vmatprep.subr.bf16.mxu0 %v2066_v0  ;;  %v2071_v3 = vld [vmem:[%s3255_s1 + $0x170] ss:$8 sps:$4 sm:$0xff]   ;;  %v2074_v5 = vld [vmem:[%s3255_s1 + $0x164] ss:$8 sps:$4 sm:$0xff]  }
   0x3   :  { %1387 = vmatprep.subr.bf16.mxu1 %v2068_v1  ;;  %1315 = vmatpush1.bf16.msra.mxu0 %v2070_v2  ;;  %v2076_v6 = vld [vmem:[%s3255_s1 + $0x60] ss:$8 sps:$4 sm:$0xff]   ;;  %v2078_v8 = vld [vmem:[%s3255_s1 + $0x54] ss:$8 sps:$4 sm:$0xff]   ;;  %v2082_v10 = vld [vmem:[%s3255_s1 + $0x50] ss:$8 sps:$4 sm:$0xff]  }
   0x4   :  { %1388 = vmatpush1.bf16.msra.mxu1 %v2071_v3  ;;  %1316 = vmatprep.subr.bf16.mxu0 %v2072_v4  ;;  %v2077_v7 = vld [vmem:[%s3255_s1 + $0x160] ss:$8 sps:$4 sm:$0xff]   ;;  %v2080_v9 = vld [vmem:[%s3255_s1 + $0x154] ss:$8 sps:$4 sm:$0xff]   ;;  %v2083_v11 = vld [vmem:[%s3255_s1 + $0x150] ss:$8 sps:$4 sm:$0xff]  }
   0x5   :  { %1389 = vmatprep.subr.bf16.mxu1 %v2074_v5  ;;  %v2084_v12 = vld [vmem:[%s3255_s1 + $0x44] ss:$8 sps:$4 sm:$0xff]   ;;  %v2088_v14 = vld [vmem:[%s3255_s1 + $0x40] ss:$8 sps:$4 sm:$0xff]   ;;  %v2090_v16 = vld [vmem:[%s3255_s1 + $0x34] ss:$8 sps:$4 sm:$0xff]  }
   0x6   :  { %v2086_v13 = vld [vmem:[%s3255_s1 + $0x144] ss:$8 sps:$4 sm:$0xff]   ;;  %v2089_v15 = vld [vmem:[%s3255_s1 + $0x140] ss:$8 sps:$4 sm:$0xff]   ;;  %v2092_v17 = vld [vmem:[%s3255_s1 + $0x134] ss:$8 sps:$4 sm:$0xff]  }
   0x7   :  { %1317 = vmatpush1.bf16.msra.mxu0 %v2076_v6  ;;  %v2094_v18 = vld [vmem:[%s3255_s1 + $0x30] ss:$8 sps:$4 sm:$0xff]   ;;  %v2096_v20 = vld [vmem:[%s3255_s1 + $0x24] ss:$8 sps:$4 sm:$0xff]   ;;  %v2100_v22 = vld [vmem:[%s3255_s1 + $0x20] ss:$8 sps:$4 sm:$0xff]  }
   0x8   :  { %1390 = vmatpush1.bf16.msra.mxu1 %v2077_v7  ;;  %1318 = vmatprep.subr.bf16.mxu0 %v2078_v8  ;;  %v2095_v19 = vld [vmem:[%s3255_s1 + $0x130] ss:$8 sps:$4 sm:$0xff]   ;;  %v2098_v21 = vld [vmem:[%s3255_s1 + $0x124] ss:$8 sps:$4 sm:$0xff]   ;;  %v2101_v23 = vld [vmem:[%s3255_s1 + $0x120] ss:$8 sps:$4 sm:$0xff]  }
   0x9   :  { %1391 = vmatprep.subr.bf16.mxu1 %v2080_v9  ;;  %v2102_v24 = vld [vmem:[%s3255_s1 + $0x14] ss:$8 sps:$4 sm:$0xff]   ;;  %v2106_v26 = vld [vmem:[%s3255_s1 + $0x10] ss:$8 sps:$4 sm:$0xff]   ;;  %v2108_v28 = vld [vmem:[%s3255_s1 + $0x4] ss:$8 sps:$4 sm:$0xff]  }
   0xa   :  { %v2104_v25 = vld [vmem:[%s3255_s1 + $0x114] ss:$8 sps:$4 sm:$0xff]   ;;  %v2107_v27 = vld [vmem:[%s3255_s1 + $0x110] ss:$8 sps:$4 sm:$0xff]   ;;  %v2110_v29 = vld [vmem:[%s3255_s1 + $0x104] ss:$8 sps:$4 sm:$0xff]  }
   0xb   :  { %1319 = vmatpush1.bf16.msra.mxu0 %v2082_v10  ;;  %v2112_v30 = vld [vmem:[%s3255_s1] ss:$8 sps:$4 sm:$0xff]   ;;  %v2114_v32 = vld [vmem:[%s3255_s1 + $0xf4] ss:$8 sps:$4 sm:$0xff]   ;;  %v2118_v34 = vld [vmem:[%s3255_s1 + $0xf0] ss:$8 sps:$4 sm:$0xff]  }
   0xc   :  { %1392 = vmatpush1.bf16.msra.mxu1 %v2083_v11  ;;  %1320 = vmatprep.subr.bf16.mxu0 %v2084_v12  ;;  %v2113_v31 = vld [vmem:[%s3255_s1 + $0x100] ss:$8 sps:$4 sm:$0xff]   ;;  %v2116_v33 = vld [vmem:[%s3255_s1 + $0x1f4] ss:$8 sps:$4 sm:$0xff]   ;;  %v2119_v35 = vld [vmem:[%s3255_s1 + $0x1f0] ss:$8 sps:$4 sm:$0xff]  }
   0xd   :  { %1393 = vmatprep.subr.bf16.mxu1 %v2086_v13  ;;  %v2120_v36 = vld [vmem:[%s3255_s1 + $0xe4] ss:$8 sps:$4 sm:$0xff]   ;;  %v2124_v38 = vld [vmem:[%s3255_s1 + $0xe0] ss:$8 sps:$4 sm:$0xff]   ;;  %v2126_v40 = vld [vmem:[%s3255_s1 + $0xd4] ss:$8 sps:$4 sm:$0xff]  }
   0xe   :  { %v2122_v37 = vld [vmem:[%s3255_s1 + $0x1e4] ss:$8 sps:$4 sm:$0xff]   ;;  %v2125_v39 = vld [vmem:[%s3255_s1 + $0x1e0] ss:$8 sps:$4 sm:$0xff]   ;;  %v2128_v41 = vld [vmem:[%s3255_s1 + $0x1d4] ss:$8 sps:$4 sm:$0xff]  }
   0xf   :  { %1321 = vmatpush1.bf16.msra.mxu0 %v2088_v14  ;;  %v2130_v42 = vld [vmem:[%s3255_s1 + $0xd0] ss:$8 sps:$4 sm:$0xff]   ;;  %v2132_v44 = vld [vmem:[%s3255_s1 + $0xc4] ss:$8 sps:$4 sm:$0xff]   ;;  %v2136_v46 = vld [vmem:[%s3255_s1 + $0xc0] ss:$8 sps:$4 sm:$0xff]  }
  0x10   :  { %1394 = vmatpush1.bf16.msra.mxu1 %v2089_v15  ;;  %1322 = vmatprep.subr.bf16.mxu0 %v2090_v16  ;;  %v2131_v43 = vld [vmem:[%s3255_s1 + $0x1d0] ss:$8 sps:$4 sm:$0xff]   ;;  %v2134_v45 = vld [vmem:[%s3255_s1 + $0x1c4] ss:$8 sps:$4 sm:$0xff]   ;;  %v2137_v47 = vld [vmem:[%s3255_s1 + $0x1c0] ss:$8 sps:$4 sm:$0xff]  }
  0x11   :  { %1395 = vmatprep.subr.bf16.mxu1 %v2092_v17  ;;  %v2138_v48 = vld [vmem:[%s3255_s1 + $0xb4] ss:$8 sps:$4 sm:$0xff]   ;;  %v2164_v49 = vld [vmem:[%s3256_s0 + $0x4] ss:$44 sps:$4 sm:$0xff]   ;;  %v2167_v51 = vld [vmem:[%s3256_s0 + $0xc] ss:$44 sps:$4 sm:$0xff]  }
  0x12   :  { %v2140_v50 = vld [vmem:[%s3255_s1 + $0x1b4] ss:$8 sps:$4 sm:$0xff]   ;;  %1346 = vmatprep.mubr.bf16.mxu0 %v2164_v49  ;;  %v2142_v52 = vld [vmem:[%s3255_s1 + $0xb0] ss:$8 sps:$4 sm:$0xff]   ;;  %1419 = vmatprep.mubr.bf16.mxu1 %v2167_v51  ;;  %v2144_v54 = vld [vmem:[%s3255_s1 + $0xa4] ss:$8 sps:$4 sm:$0xff]  }
  0x13   :  { %1323 = vmatpush1.bf16.msra.mxu0 %v2094_v18  ;;  %v2143_v53 = vld [vmem:[%s3255_s1 + $0x1b0] ss:$8 sps:$4 sm:$0xff]   ;;  %v2146_v55 = vld [vmem:[%s3255_s1 + $0x1a4] ss:$8 sps:$4 sm:$0xff]   ;;  %v2148_v56 = vld [vmem:[%s3255_s1 + $0xa0] ss:$8 sps:$4 sm:$0xff]  }
  0x14   :  { %1396 = vmatpush1.bf16.msra.mxu1 %v2095_v19  ;;  %1324 = vmatprep.subr.bf16.mxu0 %v2096_v20  ;;  %v2149_v57 = vld [vmem:[%s3255_s1 + $0x1a0] ss:$8 sps:$4 sm:$0xff]   ;;  %v2150_v58 = vld [vmem:[%s3255_s1 + $0x94] ss:$8 sps:$4 sm:$0xff]   ;;  %v2154_v60 = vld [vmem:[%s3255_s1 + $0x90] ss:$8 sps:$4 sm:$0xff]  }
  0x15   :  { %1397 = vmatprep.subr.bf16.mxu1 %v2098_v21  ;;  %v2152_v59 = vld [vmem:[%s3255_s1 + $0x194] ss:$8 sps:$4 sm:$0xff]   ;;  %v2155_v61 = vld [vmem:[%s3255_s1 + $0x190] ss:$8 sps:$4 sm:$0xff]   ;;  %v2156_v62 = vld [vmem:[%s3255_s1 + $0x84] ss:$8 sps:$4 sm:$0xff]  }
  0x16   :  { %v2158_v63 = vld [vmem:[%s3255_s1 + $0x184] ss:$8 sps:$4 sm:$0xff]   ;;  %v2160_v0 = vld [vmem:[%s3255_s1 + $0x80] ss:$8 sps:$4 sm:$0xff]   ;;  %v2170_v2 = vld [vmem:[%s3255_s1 + $0x274] ss:$8 sps:$4 sm:$0xff]  }
  0x17   :  { %1325 = vmatpush1.bf16.msra.mxu0 %v2100_v22  ;;  %v2161_v1 = vld [vmem:[%s3255_s1 + $0x180] ss:$8 sps:$4 sm:$0xff]   ;;  %v2173_v3 = vld [vmem:[%s3255_s1 + $0x374] ss:$8 sps:$4 sm:$0xff]   ;;  %v2168_v6 = vld [vmem:[%s3255_s1 + $0x270] ss:$8 sps:$4 sm:$0xff]  }
  0x18   :  { %1398 = vmatpush1.bf16.msra.mxu1 %v2101_v23  ;;  %1326 = vmatprep.subr.bf16.mxu0 %v2102_v24  ;;  %v2162_v4 = vld [vmem:[%s3256_s0] ss:$44 sps:$4 sm:$0xff]   ;;  %v2165_v5 = vld [vmem:[%s3256_s0 + $0x8] ss:$44 sps:$4 sm:$0xff]   ;;  %v2171_v7 = vld [vmem:[%s3255_s1 + $0x370] ss:$8 sps:$4 sm:$0xff]  }
  0x19   :  { %1399 = vmatprep.subr.bf16.mxu1 %v2104_v25  ;;  %v2176_v8 = vld [vmem:[%s3255_s1 + $0x264] ss:$8 sps:$4 sm:$0xff]   ;;  %v2174_v10 = vld [vmem:[%s3255_s1 + $0x260] ss:$8 sps:$4 sm:$0xff]   ;;  %v2182_v12 = vld [vmem:[%s3255_s1 + $0x254] ss:$8 sps:$4 sm:$0xff]  }
  0x1a   :  { %v2179_v9 = vld [vmem:[%s3255_s1 + $0x364] ss:$8 sps:$4 sm:$0xff]   ;;  %v2177_v11 = vld [vmem:[%s3255_s1 + $0x360] ss:$8 sps:$4 sm:$0xff]   ;;  %v2185_v13 = vld [vmem:[%s3255_s1 + $0x354] ss:$8 sps:$4 sm:$0xff]  }
  0x1b   :  { %1327 = vmatpush1.bf16.msra.mxu0 %v2106_v26  ;;  %v2219_v14 = vld [vmem:[%s3256_s0 + $0x5c] ss:$44 sps:$4 sm:$0xff]   ;;  %v2221_v15 = vld [vmem:[%s3256_s0 + $0x64] ss:$44 sps:$4 sm:$0xff]   ;;  %v2227_v19 = vld [vmem:[%s3256_s0 + $0x60] ss:$44 sps:$4 sm:$0xff]  }
  0x1c   :  { %1400 = vmatpush1.bf16.msra.mxu1 %v2107_v27  ;;  %1328 = vmatprep.subr.bf16.mxu0 %v2108_v28  ;;  %v2180_v16 = vld [vmem:[%s3255_s1 + $0x250] ss:$8 sps:$4 sm:$0xff]   ;;  %v2188_v20 = vld [vmem:[%s3255_s1 + $0x244] ss:$8 sps:$4 sm:$0xff]   ;;  %v2186_v22 = vld [vmem:[%s3255_s1 + $0x240] ss:$8 sps:$4 sm:$0xff]  }
  0x1d   :  { %1401 = vmatprep.subr.bf16.mxu1 %v2110_v29  ;;  %v2183_v17 = vld [vmem:[%s3255_s1 + $0x350] ss:$8 sps:$4 sm:$0xff]   ;;  %v2191_v21 = vld [vmem:[%s3255_s1 + $0x344] ss:$8 sps:$4 sm:$0xff]   ;;  %v2189_v23 = vld [vmem:[%s3255_s1 + $0x340] ss:$8 sps:$4 sm:$0xff]  }
  0x1e   :  { %v2226_v18 = vld [vmem:[%s3256_s0 + $0x58] ss:$44 sps:$4 sm:$0xff]   ;;  %v2194_v24 = vld [vmem:[%s3255_s1 + $0x234] ss:$8 sps:$4 sm:$0xff]   ;;  %vm3172_vm3 = vmor %vm1816_vm2, %vm1307_vm0 }
  0x1f   :  { %1329 = vmatpush1.bf16.msra.mxu0 %v2112_v30  ;;  %v2197_v25 = vld [vmem:[%s3255_s1 + $0x334] ss:$8 sps:$4 sm:$0xff]   ;;  %v2192_v28 = vld [vmem:[%s3255_s1 + $0x230] ss:$8 sps:$4 sm:$0xff]  }
  0x20   :  { %1402 = vmatpush1.bf16.msra.mxu1 %v2113_v31  ;;  %1330 = vmatprep.subr.bf16.mxu0 %v2114_v32  ;;  %v2237_v26 = vld [vmem:[%s3256_s0 + $0xb4] ss:$44 sps:$4 sm:$0xff]   ;;  %v2239_v27 = vld [vmem:[%s3256_s0 + $0xbc] ss:$44 sps:$4 sm:$0xff]   ;;  %v2195_v29 = vld [vmem:[%s3255_s1 + $0x330] ss:$8 sps:$4 sm:$0xff]  }
  0x21   :  { %1403 = vmatprep.subr.bf16.mxu1 %v2116_v33  ;;  %v2244_v30 = vld [vmem:[%s3256_s0 + $0xb0] ss:$44 sps:$4 sm:$0xff]   ;;  %v2245_v31 = vld [vmem:[%s3256_s0 + $0xb8] ss:$44 sps:$4 sm:$0xff]  }
  0x22   :  { %v2200_v32 = vld [vmem:[%s3255_s1 + $0x224] ss:$8 sps:$4 sm:$0xff]   ;;  %v2225_v49 = vld [vmem:[%s3255_s1 + $0x3f4] ss:$8 sps:$4 sm:$0xff]   ;;  %v2223_v51 = vld [vmem:[%s3255_s1 + $0x3f0] ss:$8 sps:$4 sm:$0xff]  }
  0x23   :  { %1331 = vmatpush2.bf16.msra.mxu0 %v2118_v34  ;;  %v2203_v33 = vld [vmem:[%s3255_s1 + $0x324] ss:$8 sps:$4 sm:$0xff]   ;;  %v2198_v34 = vld [vmem:[%s3255_s1 + $0x220] ss:$8 sps:$4 sm:$0xff]  }
  0x24   :  { %1404 = vmatpush2.bf16.msra.mxu1 %v2119_v35  ;;  %1332 = vmatprep.subr.bf16.mxu0 %v2120_v36  ;;  %v2201_v35 = vld [vmem:[%s3255_s1 + $0x320] ss:$8 sps:$4 sm:$0xff]   ;;  %v2206_v36 = vld [vmem:[%s3255_s1 + $0x214] ss:$8 sps:$4 sm:$0xff]  }
  0x25   :  { %1405 = vmatprep.subr.bf16.mxu1 %v2122_v37  ;;  %v2209_v37 = vld [vmem:[%s3255_s1 + $0x314] ss:$8 sps:$4 sm:$0xff]  }
  0x27   :  { %1333 = vmatpush2.bf16.msra.mxu0 %v2124_v38  ;;  %v2255_v38 = vld [vmem:[%s3256_s0 + $0x10c] ss:$44 sps:$4 sm:$0xff]  }
  0x28   :  { %1406 = vmatpush2.bf16.msra.mxu1 %v2125_v39  ;;  %1334 = vmatprep.subr.bf16.mxu0 %v2126_v40  ;;  %v2257_v39 = vld [vmem:[%s3256_s0 + $0x114] ss:$44 sps:$4 sm:$0xff]   ;;  %v2204_v40 = vld [vmem:[%s3255_s1 + $0x210] ss:$8 sps:$4 sm:$0xff]  }
  0x29   :  { %1407 = vmatprep.subr.bf16.mxu1 %v2128_v41  ;;  %v2207_v41 = vld [vmem:[%s3255_s1 + $0x310] ss:$8 sps:$4 sm:$0xff]  }
  0x2b   :  { %1335 = vmatpush2.bf16.msra.mxu0 %v2130_v42  ;;  %v2262_v42 = vld [vmem:[%s3256_s0 + $0x108] ss:$44 sps:$4 sm:$0xff]  }
  0x2c   :  { %1408 = vmatpush2.bf16.msra.mxu1 %v2131_v43  ;;  %1336 = vmatprep.subr.bf16.mxu0 %v2132_v44  ;;  %v2263_v43 = vld [vmem:[%s3256_s0 + $0x110] ss:$44 sps:$4 sm:$0xff]   ;;  %v2212_v44 = vld [vmem:[%s3255_s1 + $0x204] ss:$8 sps:$4 sm:$0xff]  }
  0x2d   :  { %1409 = vmatprep.subr.bf16.mxu1 %v2134_v45  ;;  %v2215_v45 = vld [vmem:[%s3255_s1 + $0x304] ss:$8 sps:$4 sm:$0xff]  }
  0x2f   :  { %1337 = vmatpush2.bf16.msra.mxu0 %v2136_v46  ;;  %v2210_v46 = vld [vmem:[%s3255_s1 + $0x200] ss:$8 sps:$4 sm:$0xff]  }
  0x30   :  { %1410 = vmatpush2.bf16.msra.mxu1 %v2137_v47  ;;  %1338 = vmatprep.subr.bf16.mxu0 %v2138_v48  ;;  %v2213_v47 = vld [vmem:[%s3255_s1 + $0x300] ss:$8 sps:$4 sm:$0xff]   ;;  %v2218_v48 = vld [vmem:[%s3255_s1 + $0x2f4] ss:$8 sps:$4 sm:$0xff]  }
  0x31   :  { %1411 = vmatprep.subr.bf16.mxu1 %v2140_v50  ;;  %v2216_v50 = vld [vmem:[%s3255_s1 + $0x2f0] ss:$8 sps:$4 sm:$0xff]  }
  0x33   :  { %1339 = vmatpush2.bf16.msra.mxu0 %v2142_v52  ;;  %v2230_v52 = vld [vmem:[%s3255_s1 + $0x2e4] ss:$8 sps:$4 sm:$0xff]  }
  0x34   :  { %1412 = vmatpush2.bf16.msra.mxu1 %v2143_v53  ;;  %1340 = vmatprep.subr.bf16.mxu0 %v2144_v54  ;;  %v2233_v53 = vld [vmem:[%s3255_s1 + $0x3e4] ss:$8 sps:$4 sm:$0xff]   ;;  %v2284_v54 = vld [vmem:[%s3256_s0 + $0x14] ss:$44 sps:$4 sm:$0xff]  }
  0x35   :  { %1413 = vmatprep.subr.bf16.mxu1 %v2146_v55  ;;  %v2228_v55 = vld [vmem:[%s3255_s1 + $0x2e0] ss:$8 sps:$4 sm:$0xff]  }
  0x37   :  { %1341 = vmatpush2.bf16.msra.mxu0 %v2148_v56  ;;  %v2231_v56 = vld [vmem:[%s3255_s1 + $0x3e0] ss:$8 sps:$4 sm:$0xff]  }
  0x38   :  { %1414 = vmatpush2.bf16.msra.mxu1 %v2149_v57  ;;  %1342 = vmatprep.subr.bf16.mxu0 %v2150_v58  ;;  %v2290_v57 = vld [vmem:[%s3256_s0 + $0x1c] ss:$44 sps:$4 sm:$0xff]  }
  0x39   :  { %1415 = vmatprep.subr.bf16.mxu1 %v2152_v59  ;;  %v2236_v58 = vld [vmem:[%s3255_s1 + $0x2d4] ss:$8 sps:$4 sm:$0xff]  }
  0x3a   :  { %v2243_v59 = vld [vmem:[%s3255_s1 + $0x3d4] ss:$8 sps:$4 sm:$0xff]  }
  0x3b   :  { %1343 = vmatpush2.bf16.msra.mxu0 %v2154_v60  ;;  %v2234_v60 = vld [vmem:[%s3255_s1 + $0x2d0] ss:$8 sps:$4 sm:$0xff]  }
  0x3c   :  { %1416 = vmatpush2.bf16.msra.mxu1 %v2155_v61  ;;  %1344 = vmatprep.subr.bf16.mxu0 %v2156_v62  ;;  %v2241_v61 = vld [vmem:[%s3255_s1 + $0x3d0] ss:$8 sps:$4 sm:$0xff]   ;;  %v2248_v62 = vld [vmem:[%s3255_s1 + $0x2c4] ss:$8 sps:$4 sm:$0xff]  }
  0x3d   :  { %1417 = vmatprep.subr.bf16.mxu1 %v2158_v63  ;;  %v2251_v63 = vld [vmem:[%s3255_s1 + $0x3c4] ss:$8 sps:$4 sm:$0xff]  }
  0x3f   :  { %1345 = vmatpush2.bf16.msra.mxu0 %v2160_v0  ;;  %v2246_v0 = vld [vmem:[%s3255_s1 + $0x2c0] ss:$8 sps:$4 sm:$0xff]  }
  0x40   :  { %1418 = vmatpush2.bf16.msra.mxu1 %v2161_v1  ;;  %1460 = vmatprep.subr.bf16.mxu0 %v2170_v2  ;;  %v2249_v1 = vld [vmem:[%s3255_s1 + $0x3c0] ss:$8 sps:$4 sm:$0xff]   ;;  %v2254_v2 = vld [vmem:[%s3255_s1 + $0x2b4] ss:$8 sps:$4 sm:$0xff]  }
  0x41   :  { %1533 = vmatprep.subr.bf16.mxu1 %v2173_v3  ;;  %v2261_v3 = vld [vmem:[%s3255_s1 + $0x3b4] ss:$8 sps:$4 sm:$0xff]  }
  0x42   :  { %1347 = vmatmul.mubr.bf16.vlgmr.msra.gmra.mxu0 %v2162_v4  ;;  %v2252_v4 = vld [vmem:[%s3255_s1 + $0x2b0] ss:$8 sps:$4 sm:$0xff]  }
  0x43   :  { %1420 = vmatmul.mubr.bf16.vlgmr.msra.gmra.mxu1 %v2165_v5  ;;  %1461 = vmatpush1.bf16.msra.mxu0 %v2168_v6  ;;  %v2259_v5 = vld [vmem:[%s3255_s1 + $0x3b0] ss:$8 sps:$4 sm:$0xff]   ;;  %v2266_v6 = vld [vmem:[%s3255_s1 + $0x2a4] ss:$8 sps:$4 sm:$0xff]  }
  0x44   :  { %1534 = vmatpush1.bf16.msra.mxu1 %v2171_v7  ;;  %1462 = vmatprep.subr.bf16.mxu0 %v2176_v8  ;;  %v2269_v7 = vld [vmem:[%s3255_s1 + $0x3a4] ss:$8 sps:$4 sm:$0xff]   ;;  %v2264_v8 = vld [vmem:[%s3255_s1 + $0x2a0] ss:$8 sps:$4 sm:$0xff]  }
  0x45   :  { %1535 = vmatprep.subr.bf16.mxu1 %v2179_v9  ;;  %1356 = vmatprep.mubr.bf16.mxu0 %v2219_v14  ;;  %v2267_v9 = vld [vmem:[%s3255_s1 + $0x3a0] ss:$8 sps:$4 sm:$0xff]   ;;  %v2278_v14 = vld [vmem:[%s3255_s1 + $0x284] ss:$8 sps:$4 sm:$0xff]  }
  0x46   :  { %1429 = vmatprep.mubr.bf16.mxu1 %v2221_v15  ;;  %v2281_v15 = vld [vmem:[%s3255_s1 + $0x384] ss:$8 sps:$4 sm:$0xff]  }
  0x47   :  { %1463 = vmatpush1.bf16.msra.mxu0 %v2174_v10  ;;  %v2272_v10 = vld [vmem:[%s3255_s1 + $0x294] ss:$8 sps:$4 sm:$0xff]  }
  0x48   :  { %1536 = vmatpush1.bf16.msra.mxu1 %v2177_v11  ;;  %1464 = vmatprep.subr.bf16.mxu0 %v2182_v12  ;;  %v2275_v11 = vld [vmem:[%s3255_s1 + $0x394] ss:$8 sps:$4 sm:$0xff]   ;;  %v2270_v12 = vld [vmem:[%s3255_s1 + $0x290] ss:$8 sps:$4 sm:$0xff]  }
  0x49   :  { %1537 = vmatprep.subr.bf16.mxu1 %v2185_v13  ;;  %v2273_v13 = vld [vmem:[%s3255_s1 + $0x390] ss:$8 sps:$4 sm:$0xff]  }
  0x4a   :  { %1357 = vmatmul.mubr.bf16.gmra.mxu0 %v2226_v18  ;;  %v2279_v18 = vld [vmem:[%s3255_s1 + $0x380] ss:$8 sps:$4 sm:$0xff]  }
  0x4b   :  { %1430 = vmatmul.mubr.bf16.gmra.mxu1 %v2227_v19  ;;  %1465 = vmatpush1.bf16.msra.mxu0 %v2180_v16  ;;  %v228_v16 = vld [vmem:[%s3255_s1 + $0x540] sm:$0xff]  ;;  %v2287_v19 = vld [vmem:[%s3255_s1 + $0x474] ss:$8 sps:$4 sm:$0xff]  }
  0x4c   :  { %1538 = vmatpush1.bf16.msra.mxu1 %v2183_v17  ;;  %1466 = vmatprep.subr.bf16.mxu0 %v2188_v20  ;;  %v2276_v17 = vld [vmem:[%s3255_s1 + $0x280] ss:$8 sps:$4 sm:$0xff]   ;;  %v2043_v20 = vcombine.high %v228_v16, %v228_v16 }
  0x4d   :  { %1539 = vmatprep.subr.bf16.mxu1 %v2191_v21  ;;  %1366 = vmatprep.mubr.bf16.mxu0 %v2237_v26  ;;  %v2282_v21 = vld [vmem:[%s3256_s0 + $0x10] ss:$44 sps:$4 sm:$0xff]   ;;  %v2293_v26 = vld [vmem:[%s3255_s1 + $0x464] ss:$8 sps:$4 sm:$0xff]  }
  0x4e   :  { %1439 = vmatprep.mubr.bf16.mxu1 %v2239_v27  ;;  %v2300_v27 = vld [vmem:[%s3256_s0 + $0x74] ss:$44 sps:$4 sm:$0xff]  }
  0x4f   :  { %1467 = vmatpush1.bf16.msra.mxu0 %v2186_v22  ;;  %v2288_v22 = vld [vmem:[%s3256_s0 + $0x18] ss:$44 sps:$4 sm:$0xff]  }
  0x50   :  { %1540 = vmatpush1.bf16.msra.mxu1 %v2189_v23  ;;  %1468 = vmatprep.subr.bf16.mxu0 %v2194_v24  ;;  %v2042_v23 = vcombine.low %v228_v16, %v228_v16  ;;  %v2285_v24 = vld [vmem:[%s3255_s1 + $0x470] ss:$8 sps:$4 sm:$0xff]   ;;  %v2367_v16 = vld [vmem:[%s3255_s1 + $0x484] ss:$8 sps:$4 sm:$0xff]  }
  0x51   :  { %1541 = vmatprep.subr.bf16.mxu1 %v2197_v25  ;;  %v2294_v25 = vld [vmem:[%s3256_s0 + $0x6c] ss:$44 sps:$4 sm:$0xff]  }
  0x52   :  { %1367 = vmatmul.mubr.bf16.gmra.mxu0 %v2244_v30  ;;  %v2291_v30 = vld [vmem:[%s3255_s1 + $0x460] ss:$8 sps:$4 sm:$0xff]  }
  0x53   :  { %1440 = vmatmul.mubr.bf16.gmra.mxu1 %v2245_v31  ;;  %1469 = vmatpush1.bf16.msra.mxu0 %v2192_v28  ;;  %v1309_v28 = vsel %vm1307_vm0, %v2042_v23, 0  ;;  %v2296_v31 = vld [vmem:[%s3256_s0 + $0x68] ss:$44 sps:$4 sm:$0xff]   ;;  %v2381_v23 = vld [vmem:[%s3256_s0 + $0x12c] ss:$44 sps:$4 sm:$0xff]  }
  0x54   :  { %1542 = vmatpush1.bf16.msra.mxu1 %v2195_v29  ;;  %1470 = vmatprep.subr.bf16.mxu0 %v2200_v32  ;;  %v2343_v29 = vld [vmem:[%s3255_s1 + $0x534] ss:$8 sps:$4 sm:$0xff]  }
  0x55   :  { %1543 = vmatprep.subr.bf16.mxu1 %v2203_v33  ;;  %1376 = vmatprep.mubr.bf16.mxu0 %v2255_v38  ;;  %v2299_v32 = vld [vmem:[%s3255_s1 + $0x454] ss:$8 sps:$4 sm:$0xff]   ;;  %v2312_v38 = vld [vmem:[%s3256_s0 + $0xcc] ss:$44 sps:$4 sm:$0xff]  }
  0x56   :  { %1449 = vmatprep.mubr.bf16.mxu1 %v2257_v39  ;;  %v2302_v33 = vld [vmem:[%s3256_s0 + $0x70] ss:$44 sps:$4 sm:$0xff]   ;;  %v2349_v39 = vld [vmem:[%s3255_s1 + $0x524] ss:$8 sps:$4 sm:$0xff]  }
  0x57   :  { %1471 = vmatpush1.bf16.msra.mxu0 %v2198_v34  ;;  %v2297_v34 = vld [vmem:[%s3255_s1 + $0x450] ss:$8 sps:$4 sm:$0xff]  }
  0x58   :  { %1544 = vmatpush1.bf16.msra.mxu1 %v2201_v35  ;;  %1472 = vmatprep.subr.bf16.mxu0 %v2206_v36  ;;  %v2341_v35 = vld [vmem:[%s3255_s1 + $0x530] ss:$8 sps:$4 sm:$0xff]   ;;  %v2305_v36 = vld [vmem:[%s3255_s1 + $0x444] ss:$8 sps:$4 sm:$0xff]  }
  0x59   :  { %1545 = vmatprep.subr.bf16.mxu1 %v2209_v37  ;;  %v2306_v37 = vld [vmem:[%s3256_s0 + $0xc4] ss:$44 sps:$4 sm:$0xff]  }
  0x5a   :  { %1377 = vmatmul.mubr.bf16.gmra.mxu0 %v2262_v42  ;;  %v2358_v42 = vld [vmem:[%s3255_s1 + $0x514] ss:$8 sps:$4 sm:$0xff]  }
  0x5b   :  { %1450 = vmatmul.mubr.bf16.gmra.mxu1 %v2263_v43  ;;  %1473 = vmatpush1.bf16.msra.mxu0 %v2204_v40  ;;  %v2347_v40 = vld [vmem:[%s3255_s1 + $0x520] ss:$8 sps:$4 sm:$0xff]   ;;  %v2311_v43 = vld [vmem:[%s3255_s1 + $0x434] ss:$8 sps:$4 sm:$0xff]  }
  0x5c   :  { %1546 = vmatpush1.bf16.msra.mxu1 %v2207_v41  ;;  %1474 = vmatprep.subr.bf16.mxu0 %v2212_v44  ;;  %v2303_v41 = vld [vmem:[%s3255_s1 + $0x440] ss:$8 sps:$4 sm:$0xff]  }
  0x5d   :  { %1547 = vmatprep.subr.bf16.mxu1 %v2215_v45  ;;  %1492 = vmatprep.mubr.bf16.mxu0 %v2284_v54  ;;  %v2308_v44 = vld [vmem:[%s3256_s0 + $0xc0] ss:$44 sps:$4 sm:$0xff]   ;;  %v2314_v45 = vld [vmem:[%s3256_s0 + $0xc8] ss:$44 sps:$4 sm:$0xff]  }
  0x5e   :  { %1565 = vmatprep.mubr.bf16.mxu1 %v2290_v57  ;;  %v2362_v54 = vld [vmem:[%s3255_s1 + $0x500] ss:$8 sps:$4 sm:$0xff]   ;;  %v2321_v57 = vld [vmem:[%s3255_s1 + $0x410] ss:$8 sps:$4 sm:$0xff]  }
  0x5f   :  { %1475 = vmatpush1.bf16.msra.mxu0 %v2210_v46  ;;  %v2309_v46 = vld [vmem:[%s3255_s1 + $0x430] ss:$8 sps:$4 sm:$0xff]  }
  0x60   :  { %1548 = vmatpush1.bf16.msra.mxu1 %v2213_v47  ;;  %1476 = vmatprep.subr.bf16.mxu0 %v2218_v48  ;;  %v2318_v47 = vld [vmem:[%s3256_s0 + $0x11c] ss:$44 sps:$4 sm:$0xff]   ;;  %v2317_v48 = vld [vmem:[%s3255_s1 + $0x424] ss:$8 sps:$4 sm:$0xff]  }
  0x61   :  { %1549 = vmatprep.subr.bf16.mxu1 %v2225_v49  ;;  %v2324_v49 = vld [vmem:[%s3256_s0 + $0x124] ss:$44 sps:$4 sm:$0xff]  }
  0x63   :  { %1477 = vmatpush2.bf16.msra.mxu0 %v2216_v50  ;;  %v2356_v50 = vld [vmem:[%s3255_s1 + $0x510] ss:$8 sps:$4 sm:$0xff]  }
  0x64   :  { %1550 = vmatpush2.bf16.msra.mxu1 %v2223_v51  ;;  %1478 = vmatprep.subr.bf16.mxu0 %v2230_v52  ;;  %v2364_v51 = vld [vmem:[%s3255_s1 + $0x504] ss:$8 sps:$4 sm:$0xff]   ;;  %v2315_v52 = vld [vmem:[%s3255_s1 + $0x420] ss:$8 sps:$4 sm:$0xff]  }
  0x65   :  { %1551 = vmatprep.subr.bf16.mxu1 %v2233_v53  ;;  %v2323_v53 = vld [vmem:[%s3255_s1 + $0x414] ss:$8 sps:$4 sm:$0xff]  }
  0x67   :  { %1479 = vmatpush2.bf16.msra.mxu0 %v2228_v55  ;;  %v2320_v55 = vld [vmem:[%s3256_s0 + $0x118] ss:$44 sps:$4 sm:$0xff]  }
  0x68   :  { %1552 = vmatpush2.bf16.msra.mxu1 %v2231_v56  ;;  %1480 = vmatprep.subr.bf16.mxu0 %v2236_v58  ;;  %v2326_v56 = vld [vmem:[%s3256_s0 + $0x120] ss:$44 sps:$4 sm:$0xff]  }
  0x69   :  { %1553 = vmatprep.subr.bf16.mxu1 %v2243_v59  ;;  %v2329_v58 = vld [vmem:[%s3255_s1 + $0x404] ss:$8 sps:$4 sm:$0xff]  }
  0x6a   :  { %v2371_v59 = vld [vmem:[%s3256_s0 + $0x24] ss:$44 sps:$4 sm:$0xff]  }
  0x6b   :  { %1481 = vmatpush2.bf16.msra.mxu0 %v2234_v60  ;;  %v2327_v60 = vld [vmem:[%s3255_s1 + $0x400] ss:$8 sps:$4 sm:$0xff]  }
  0x6c   :  { %1554 = vmatpush2.bf16.msra.mxu1 %v2241_v61  ;;  %1482 = vmatprep.subr.bf16.mxu0 %v2248_v62  ;;  %v2384_v61 = vmov 0   ;;  %v2332_v62 = vld [vmem:[%s3255_s1 + $0x4f4] ss:$8 sps:$4 sm:$0xff]  }
  0x6d   :  { %1555 = vmatprep.subr.bf16.mxu1 %v2251_v63  ;;  %v2368_v63 = vld [vmem:[%s3256_s0 + $0x28] ss:$44 sps:$4 sm:$0xff]  }
  0x6f   :  { %1483 = vmatpush2.bf16.msra.mxu0 %v2246_v0  ;;  %v2330_v0 = vld [vmem:[%s3255_s1 + $0x4f0] ss:$8 sps:$4 sm:$0xff]  }
  0x70   :  { %1556 = vmatpush2.bf16.msra.mxu1 %v2249_v1  ;;  %1484 = vmatprep.subr.bf16.mxu0 %v2254_v2  ;;  %v2337_v1 = vld [vmem:[%s3255_s1 + $0x4e4] ss:$8 sps:$4 sm:$0xff]   ;;  %v2335_v2 = vld [vmem:[%s3255_s1 + $0x4e0] ss:$8 sps:$4 sm:$0xff]  }
  0x71   :  { %1557 = vmatprep.subr.bf16.mxu1 %v2261_v3  ;;  %v2340_v3 = vld [vmem:[%s3255_s1 + $0x4d4] ss:$8 sps:$4 sm:$0xff]  }
  0x73   :  { %1485 = vmatpush2.bf16.msra.mxu0 %v2252_v4  ;;  %v2372_v4 = vld [vmem:[%s3256_s0 + $0x80] ss:$44 sps:$4 sm:$0xff]  }
  0x74   :  { %1558 = vmatpush2.bf16.msra.mxu1 %v2259_v5  ;;  %1486 = vmatprep.subr.bf16.mxu0 %v2266_v6  ;;  %v2338_v5 = vld [vmem:[%s3255_s1 + $0x4d0] ss:$8 sps:$4 sm:$0xff]   ;;  %v2346_v6 = vld [vmem:[%s3255_s1 + $0x4c4] ss:$8 sps:$4 sm:$0xff]  }
  0x75   :  { %1559 = vmatprep.subr.bf16.mxu1 %v2269_v7  ;;  %v2344_v7 = vld [vmem:[%s3255_s1 + $0x4c0] ss:$8 sps:$4 sm:$0xff]  }
  0x77   :  { %1487 = vmatpush2.bf16.msra.mxu0 %v2264_v8  ;;  %v2352_v8 = vld [vmem:[%s3255_s1 + $0x4b4] ss:$8 sps:$4 sm:$0xff]  }
  0x78   :  { %1560 = vmatpush2.bf16.msra.mxu1 %v2267_v9  ;;  %1488 = vmatprep.subr.bf16.mxu0 %v2272_v10  ;;  %v2376_v9 = vld [vmem:[%s3256_s0 + $0xd8] ss:$44 sps:$4 sm:$0xff]  }
  0x79   :  { %1561 = vmatprep.subr.bf16.mxu1 %v2275_v11  ;;  %v2350_v10 = vld [vmem:[%s3255_s1 + $0x4b0] ss:$8 sps:$4 sm:$0xff]   ;;  %v2355_v11 = vld [vmem:[%s3255_s1 + $0x4a4] ss:$8 sps:$4 sm:$0xff]  }
  0x7b   :  { %1489 = vmatpush2.bf16.msra.mxu0 %v2270_v12  ;;  %v2353_v12 = vld [vmem:[%s3255_s1 + $0x4a0] ss:$8 sps:$4 sm:$0xff]  }
  0x7c   :  { %1562 = vmatpush2.bf16.msra.mxu1 %v2273_v13  ;;  %1490 = vmatprep.subr.bf16.mxu0 %v2278_v14  ;;  %v2361_v13 = vld [vmem:[%s3255_s1 + $0x494] ss:$8 sps:$4 sm:$0xff]  }
  0x7d   :  { %1563 = vmatprep.subr.bf16.mxu1 %v2281_v15  ;;  %v2380_v14 = vld [vmem:[%s3256_s0 + $0x130] ss:$44 sps:$4 sm:$0xff]  }
  0x7e   :  { %v2359_v15 = vld [vmem:[%s3255_s1 + $0x490] ss:$8 sps:$4 sm:$0xff]  }
  0x7f   :  { %1491 = vmatpush2.bf16.msra.mxu0 %v2276_v17  ;;  %v2365_v17 = vld [vmem:[%s3255_s1 + $0x480] ss:$8 sps:$4 sm:$0xff]  }
  0x80   :  { %1564 = vmatpush2.bf16.msra.mxu1 %v2279_v18  ;;  %1606 = vmatprep.subr.bf16.mxu0 %v2287_v19  ;;  %v2369_v18 = vld [vmem:[%s3256_s0 + $0x20] ss:$44 sps:$4 sm:$0xff]   ;;  %v2373_v19 = vld [vmem:[%s3256_s0 + $0x7c] ss:$44 sps:$4 sm:$0xff]  }
  0x81   :  { %2044 = vmatprep.subr.msk.bf16.mxu1 %vm1307_vm0, %v2043_v20  ;;  %v2375_v20 = vld [vmem:[%s3256_s0 + $0x78] ss:$44 sps:$4 sm:$0xff]  }
  0x82   :  { %1493 = vmatmul.mubr.bf16.vlgmr.msra.gmra.mxu0 %v2282_v21  ;;  %v2377_v21 = vld [vmem:[%s3256_s0 + $0xd4] ss:$44 sps:$4 sm:$0xff]  }
  0x83   :  { %1566 = vmatmul.mubr.bf16.vlgmr.msra.gmra.mxu1 %v2288_v22  ;;  %1607 = vmatpush1.bf16.msra.mxu0 %v2285_v24  ;;  %v2379_v22 = vld [vmem:[%s3256_s0 + $0xd0] ss:$44 sps:$4 sm:$0xff]   ;;  %v2383_v24 = vld [vmem:[%s3256_s0 + $0x128] ss:$44 sps:$4 sm:$0xff]  }
  0x84   :  { %1502 = vmatprep.mubr.bf16.mxu0 %v2294_v25  ;;  %1608 = vmatprep.subr.bf16.mxu0 %v2293_v26 }
  0x85   :  { %1575 = vmatprep.mubr.bf16.mxu1 %v2300_v27  ;;  %1686 = vmatpush1.bf16.msra.mxu1 %v1309_v28 }
  0x86   :  { %1687 = vmatprep.subr.bf16.mxu1 %v2343_v29 }
  0x87   :  { %1609 = vmatpush1.bf16.msra.mxu0 %v2291_v30 }
  0x88   :  { %1610 = vmatprep.subr.bf16.mxu0 %v2299_v32 }
  0x89   :  { %1688 = vmatpush1.bf16.msra.mxu1 %v2341_v35 }
  0x8a   :  { %1503 = vmatmul.mubr.bf16.gmra.mxu0 %v2296_v31  ;;  %1689 = vmatprep.subr.bf16.mxu1 %v2349_v39 }
  0x8b   :  { %1576 = vmatmul.mubr.bf16.gmra.mxu1 %v2302_v33  ;;  %1611 = vmatpush1.bf16.msra.mxu0 %v2297_v34 }
  0x8c   :  { %1512 = vmatprep.mubr.bf16.mxu0 %v2306_v37  ;;  %1612 = vmatprep.subr.bf16.mxu0 %v2305_v36 }
  0x8d   :  { %1585 = vmatprep.mubr.bf16.mxu1 %v2312_v38  ;;  %1690 = vmatpush1.bf16.msra.mxu1 %v2347_v40 }
  0x8e   :  { %1691 = vmatprep.subr.bf16.mxu1 %v2358_v42 }
  0x8f   :  { %1613 = vmatpush1.bf16.msra.mxu0 %v2303_v41 }
  0x90   :  { %1614 = vmatprep.subr.bf16.mxu0 %v2311_v43 }
  0x91   :  { %1692 = vmatpush1.bf16.msra.mxu1 %v2356_v50 }
  0x92   :  { %1513 = vmatmul.mubr.bf16.gmra.mxu0 %v2308_v44  ;;  %1693 = vmatprep.subr.bf16.mxu1 %v2364_v51 }
  0x93   :  { %1586 = vmatmul.mubr.bf16.gmra.mxu1 %v2314_v45  ;;  %1615 = vmatpush1.bf16.msra.mxu0 %v2309_v46 }
  0x94   :  { %1522 = vmatprep.mubr.bf16.mxu0 %v2318_v47  ;;  %1616 = vmatprep.subr.bf16.mxu0 %v2317_v48 }
  0x95   :  { %1595 = vmatprep.mubr.bf16.mxu1 %v2324_v49  ;;  %1694 = vmatpush1.bf16.msra.mxu1 %v2362_v54 }
  0x97   :  { %1617 = vmatpush1.bf16.msra.mxu0 %v2315_v52 }
  0x98   :  { %1618 = vmatprep.subr.bf16.mxu0 %v2323_v53 }
  0x9a   :  { %1523 = vmatmul.mubr.bf16.gmra.mxu0 %v2320_v55 }
  0x9b   :  { %1596 = vmatmul.mubr.bf16.gmra.mxu1 %v2326_v56  ;;  %1619 = vmatpush1.bf16.msra.mxu0 %v2321_v57 }
  0x9c   :  { %1711 = vmatprep.mubr.bf16.mxu1 %v2384_v61  ;;  %1620 = vmatprep.subr.bf16.mxu0 %v2329_v58 }
  0x9d   :  { %1638 = vmatprep.mubr.bf16.mxu0 %v2371_v59 }
  0x9f   :  { %1621 = vmatpush1.bf16.msra.mxu0 %v2327_v60 }
  0xa0   :  { %1622 = vmatprep.subr.bf16.mxu0 %v2332_v62 }
  0xa3   :  { %2045 = vmatmul.mubr.msk.bf16.vlgmr.msra.gmra.mxu1 %vm1294_vm1, %v2368_v63  ;;  %1623 = vmatpush2.bf16.msra.mxu0 %v2330_v0 }
  0xa4   :  { %1721 = vmatprep.mubr.bf16.mxu1 %v2384_v61  ;;  %1624 = vmatprep.subr.bf16.mxu0 %v2337_v1 }
  0xa7   :  { %1625 = vmatpush2.bf16.msra.mxu0 %v2335_v2 }
  0xa8   :  { %1626 = vmatprep.subr.bf16.mxu0 %v2340_v3 }
  0xab   :  { %2046 = vmatmul.mubr.msk.bf16.gmra.mxu1 %vm1294_vm1, %v2372_v4  ;;  %1627 = vmatpush2.bf16.msra.mxu0 %v2338_v5 }
  0xac   :  { %1731 = vmatprep.mubr.bf16.mxu1 %v2384_v61  ;;  %1628 = vmatprep.subr.bf16.mxu0 %v2346_v6 }
  0xaf   :  { %1629 = vmatpush2.bf16.msra.mxu0 %v2344_v7 }
  0xb0   :  { %1630 = vmatprep.subr.bf16.mxu0 %v2352_v8 }
  0xb3   :  { %2047 = vmatmul.mubr.msk.bf16.gmra.mxu1 %vm1294_vm1, %v2376_v9  ;;  %1631 = vmatpush2.bf16.msra.mxu0 %v2350_v10 }
  0xb4   :  { %1741 = vmatprep.mubr.bf16.mxu1 %v2384_v61  ;;  %1632 = vmatprep.subr.bf16.mxu0 %v2355_v11 }
  0xb7   :  { %1633 = vmatpush2.bf16.msra.mxu0 %v2353_v12 }
  0xb8   :  { %1634 = vmatprep.subr.bf16.mxu0 %v2361_v13 }
  0xbb   :  { %2048 = vmatmul.mubr.msk.bf16.gmra.mxu1 %vm1294_vm1, %v2380_v14  ;;  %1635 = vmatpush2.bf16.msra.mxu0 %v2359_v15 }
  0xbc   :  { %1636 = vmatprep.subr.bf16.mxu0 %v2367_v16 }
  0xbf   :  { %1637 = vmatpush2.bf16.msra.mxu0 %v2365_v17 }
  0xc2   :  { %1639 = vmatmul.mubr.bf16.vlgmr.msra.gmra.mxu0 %v2369_v18 }
  0xc3   :  { %1648 = vmatprep.mubr.bf16.mxu0 %v2373_v19 }
  0xca   :  { %1649 = vmatmul.mubr.bf16.gmra.mxu0 %v2375_v20 }
  0xcb   :  { %1658 = vmatprep.mubr.bf16.mxu0 %v2377_v21 }
  0xd2   :  { %1659 = vmatmul.mubr.bf16.gmra.mxu0 %v2379_v22 }
  0xd3   :  { %1668 = vmatprep.mubr.bf16.mxu0 %v2381_v23 }
  0xda   :  { %1669 = vmatmul.mubr.bf16.gmra.mxu0 %v2383_v24 }
 0x102   :  { %v3047_v26 = vpop.f32.mrf.mxu0 }
 0x103   :  { %v3045_v25 = vpop.f32.mrf.mxu1 }
 0x104   :  { %v3051_v28 = vpop.f32.mrf.mxu0 }
 0x105   :  { %v3049_v27 = vpop.f32.mrf.mxu1 }
 0x106   :  { %v3055_v30 = vpop.f32.mrf.mxu0 }
 0x107   :  { %v3053_v29 = vpop.f32.mrf.mxu1 }
 0x108   :  { %v3059_v32 = vpop.f32.mrf.mxu0 }
 0x109   :  { %v3057_v31 = vpop.f32.mrf.mxu1 }
 0x10a   :  { %v3063_v34 = vpop.f32.mrf.mxu0 }
 0x10b   :  { %v3061_v33 = vpop.f32.mrf.mxu1 }
 0x10c   :  { %v3067_v36 = vpop.f32.mrf.mxu0 }
 0x10d   :  { %v3065_v35 = vpop.f32.mrf.mxu1 }
 0x10e   :  { %v3071_v38 = vpop.f32.mrf.mxu0 }
 0x10f   :  { %v3069_v37 = vpop.f32.mrf.mxu1 }
 0x110   :  { %v3075_v40 = vpop.f32.mrf.mxu0 }
 0x111   :  { %v3073_v39 = vpop.f32.mrf.mxu1 }
 0x112   :  { %v3079_v42 = vpop.f32.mrf.mxu0 }
 0x113   :  { %v3077_v41 = vpop.f32.mrf.mxu1 }
 0x114   :  { %v3083_v44 = vpop.f32.mrf.mxu0 }
 0x115   :  { %v3081_v43 = vpop.f32.mrf.mxu1 }
 0x116   :  { %v3087_v46 = vpop.f32.mrf.mxu0 }
 0x117   :  { %v3085_v45 = vpop.f32.mrf.mxu1 }
 0x118   :  { %v3091_v48 = vpop.f32.mrf.mxu0 }
 0x119   :  { %v3089_v47 = vpop.f32.mrf.mxu1 }
 0x11a   :  { %v3095_v50 = vpop.f32.mrf.mxu0 }
 0x11b   :  { %v3093_v49 = vpop.f32.mrf.mxu1 }
 0x11c   :  { %v3099_v52 = vpop.f32.mrf.mxu0 }
 0x11d   :  { %v3097_v51 = vpop.f32.mrf.mxu1  ;;  %3259 = vst [vmem:[#allocation3_spill] sm:$0xff] %v3099_v52 }
 0x11e   :  { %3258 = vst [vmem:[#allocation2_spill] sm:$0xff] %v3097_v51  ;;  %v3103_v54 = vpop.f32.mrf.mxu0 }
 0x11f   :  { %v3101_v53 = vpop.f32.mrf.mxu1  ;;  %3261 = vst [vmem:[#allocation5_spill] sm:$0xff] %v3103_v54 }
 0x120   :  { %3260 = vst [vmem:[#allocation4_spill] sm:$0xff] %v3101_v53  ;;  %v3107_v56 = vpop.f32.mrf.mxu0 }
 0x121   :  { %v3105_v55 = vpop.f32.mrf.mxu1  ;;  %3263 = vst [vmem:[#allocation7_spill] sm:$0xff] %v3107_v56 }
 0x122   :  { %3262 = vst [vmem:[#allocation6_spill] sm:$0xff] %v3105_v55 }
 0x142   :  { %v1494_v58 = vpop.f32.mrf.mxu0 }
 0x143   :  { %v1567_v57 = vpop.f32.mrf.mxu1 }
 0x144   :  { %v1496_v61 = vpop.f32.mrf.mxu0 }
 0x145   :  { %v1569_v59 = vpop.f32.mrf.mxu1 }
 0x146   :  { %v1498_v0 = vpop.f32.mrf.mxu0 }
 0x147   :  { %v1571_v60 = vpop.f32.mrf.mxu1 }
 0x148   :  { %v1500_v3 = vpop.f32.mrf.mxu0 }
 0x149   :  { %v1573_v62 = vpop.f32.mrf.mxu1 }
 0x14a   :  { %v1504_v6 = vpop.f32.mrf.mxu0 }
 0x14b   :  { %v1577_v63 = vpop.f32.mrf.mxu1 }
 0x14c   :  { %v1506_v9 = vpop.f32.mrf.mxu0 }
 0x14d   :  { %v3109_v1 = vpop.f32.mrf.mxu1 }
 0x14e   :  { %v1508_v12 = vpop.f32.mrf.mxu0 }
 0x14f   :  { %v3111_v2 = vpop.f32.mrf.mxu1 }
 0x150   :  { %v1510_v14 = vpop.f32.mrf.mxu0 }
 0x151   :  { %v3113_v4 = vpop.f32.mrf.mxu1 }
 0x152   :  { %v3129_v16 = vpop.f32.mrf.mxu0 }
 0x153   :  { %v3115_v5 = vpop.f32.mrf.mxu1 }
 0x154   :  { %v3133_v19 = vpop.f32.mrf.mxu0 }
 0x155   :  { %v3117_v7 = vpop.f32.mrf.mxu1 }
 0x156   :  { %v3135_v21 = vpop.f32.mrf.mxu0 }
 0x157   :  { %v3119_v8 = vpop.f32.mrf.mxu1 }
 0x158   :  { %3264 = vst [vmem:[#allocation8_spill] sm:$0xff] %v3119_v8  ;;  %v3137_v23 = vpop.f32.mrf.mxu0  ;;  %v1426_v8 = vadd.f32 %v3053_v29, %v3055_v30  ;;  %v1434_v29 = vadd.f32 %v3065_v35, %v3067_v36 }
 0x159   :  { %v3121_v10 = vpop.f32.mrf.mxu1  ;;  %3270 = vst [vmem:[#allocation14_spill] sm:$0xff] %v3137_v23 }
 0x15a   :  { %3265 = vst [vmem:[#allocation9_spill] sm:$0xff] %v3121_v10  ;;  %v1424_v10 = vadd.f32 %v3049_v27, %v3051_v28  ;;  %v1499_v23 = vadd.f32 %v1498_v0, %v1426_v8 }
 0x15b   :  { %v3123_v11 = vpop.f32.mrf.mxu1 }
 0x15c   :  { %3266 = vst [vmem:[#allocation10_spill] sm:$0xff] %v3123_v11  ;;  %v3139_v11 = vpop.f32.mrf.mxu0 }
 0x15d   :  { %v3125_v13 = vpop.f32.mrf.mxu1  ;;  %3271 = vst [vmem:[#allocation15_spill] sm:$0xff] %v3139_v11  ;;  %v1497_v11 = vadd.f32 %v1496_v61, %v1424_v10  ;;  %v1572_v10 = vadd.f32 %v1571_v60, %v1499_v23 }
 0x15e   :  { %3267 = vst [vmem:[#allocation11_spill] sm:$0xff] %v3125_v13  ;;  %v3141_v55 = vpop.f32.mrf.mxu0 }
 0x15f   :  { %v3127_v15 = vpop.f32.mrf.mxu1  ;;  %3272 = vst [vmem:[#allocation16_spill] sm:$0xff] %v3141_v55  ;;  %v1428_v55 = vadd.f32 %v3057_v31, %v3059_v32  ;;  %v1570_v27 = vadd.f32 %v1569_v59, %v1497_v11  ;;  %v1436_v31 = vadd.f32 %v3069_v37, %v3071_v38  ;;  %v1507_v32 = vadd.f32 %v1506_v9, %v1434_v29 }
 0x160   :  { %3268 = vst [vmem:[#allocation12_spill] sm:$0xff] %v3127_v15  ;;  %v3147_v56 = vpop.f32.mrf.mxu0  ;;  %v1442_v38 = vadd.f32 %v3077_v41, %v3079_v42  ;;  %v1444_v11 = vadd.f32 %v3081_v43, %v3083_v44 }
 0x161   :  { %v3131_v17 = vpop.f32.mrf.mxu1  ;;  %3273 = vst [vmem:[#allocation17_spill] sm:$0xff] %v3147_v56  ;;  %v1501_v28 = vadd.f32 %v1500_v3, %v1428_v55  ;;  %v1509_v36 = vadd.f32 %v1508_v12, %v1436_v31 }
 0x162   :  { %3269 = vst [vmem:[#allocation13_spill] sm:$0xff] %v3131_v17  ;;  %v1422_v17 = vadd.f32 %v3045_v25, %v3047_v26  ;;  %v3155_v51 = vpop.f32.mrf.mxu0  ;;  %v1432_v25 = vadd.f32 %v3061_v33, %v3063_v34  ;;  %v1517_v43 = vadd.f32 %v3133_v19, %v1444_v11  ;;  %v1452_v19 = vadd.f32 %v3093_v49, %v3095_v50 }
 0x163   :  { %v1713_v18 = vpop.f32.mrf.mxu1  ;;  %3274 = vst [vmem:[#allocation18_spill] sm:$0xff] %v3155_v51  ;;  %v1574_v34 = vadd.f32 %v1573_v62, %v1501_v28  ;;  %v1582_v12 = vadd.f32 %v3111_v2, %v1509_v36 }
 0x164   :  { %v1495_v53 = vadd.f32 %v1494_v58, %v1422_v17  ;;  %v1505_v30 = vadd.f32 %v1504_v6, %v1432_v25 }
 0x165   :  { %v1715_v20 = vpop.f32.mrf.mxu1 }
 0x166   :  { %v1568_v52 = vadd.f32 %v1567_v57, %v1495_v53  ;;  %v1578_v35 = vadd.f32 %v1577_v63, %v1505_v30  ;;  %v3284_v36 = vld [vmem:[#allocation16_spill] sm:$0xff] }
 0x167   :  { %v1717_v22 = vpop.f32.mrf.mxu1 }
 0x169   :  { %v1719_v24 = vpop.f32.mrf.mxu1 }
 0x16b   :  { %v1723_v13 = vpop.f32.mrf.mxu1 }
 0x16d   :  { %v3143_v15 = vpop.f32.mrf.mxu1 }
 0x16f   :  { %v3151_v54 = vpop.f32.mrf.mxu1 }
 0x171   :  { %v3161_v56 = vpop.f32.mrf.mxu1 }
 0x173   :  { %v3167_v33 = vpop.f32.mrf.mxu1 }
 0x175   :  { %v1735_v8 = vpop.f32.mrf.mxu1 }
 0x177   :  { %v1737_v2 = vpop.f32.mrf.mxu1 }
 0x182   :  { %v1640_v26 = vpop.f32.mrf.mxu0 }
 0x183   :  { %v1641_v58 = vadd.f32 %v1640_v26, %v1568_v52  ;;  %v1438_v52 = vadd.f32 %v3073_v39, %v3075_v40  ;;  %v1448_v26 = vadd.f32 %v3089_v47, %v3091_v48  ;;  %v1590_v47 = vadd.f32 %v3117_v7, %v1517_v43 }
 0x184   :  { %v1642_v61 = vpop.f32.mrf.mxu0 }
 0x185   :  { %v1714_v17 = vadd.f32 %v1713_v18, %v1641_v58  ;;  %v1643_v51 = vadd.f32 %v1642_v61, %v1570_v27  ;;  %v1511_v39 = vadd.f32 %v1510_v14, %v1438_v52  ;;  %v1515_v18 = vadd.f32 %v3129_v16, %v1442_v38  ;;  %v3283_v52 = vld [vmem:[#allocation4_spill] sm:$0xff] }
 0x186   :  { %v1644_v53 = vpop.f32.mrf.mxu0 }
 0x187   :  { %v1716_v57 = vadd.f32 %v1715_v20, %v1643_v51  ;;  %v1645_v55 = vadd.f32 %v1644_v53, %v1572_v10  ;;  %v1752_v60 = vmax.f32 %v1714_v17, 0.0  ;;  %v1580_v51 = vadd.f32 %v3109_v1, %v1507_v32  ;;  %v3278_v10 = vld [vmem:[#allocation3_spill] sm:$0xff]  ;;  %v3279_v17 = vld [vmem:[#allocation2_spill] sm:$0xff]  ;;  %v3280_v32 = vld [vmem:[#allocation8_spill] sm:$0xff] }
 0x188   :  { %v1646_v59 = vpop.f32.mrf.mxu0  ;;  %v1584_v16 = vadd.f32 %v3113_v4, %v1511_v39  ;;  %v1588_v27 = vadd.f32 %v3115_v5, %v1515_v18  ;;  %v1739_v5 = vpop.f32.mrf.mxu1  ;;  %v1454_v31 = vadd.f32 %v3279_v17, %v3278_v10  ;;  %v3286_v39 = vld [vmem:[#allocation7_spill] sm:$0xff] }
 0x189   :  { %v1753_v0 = vmax.f32 %v1716_v57, 0.0  ;;  %v1718_v3 = vadd.f32 %v1717_v22, %v1645_v55  ;;  %v1647_v6 = vadd.f32 %v1646_v59, %v1574_v34  ;;  %v1446_v22 = vadd.f32 %v3085_v45, %v3087_v46  ;;  %v3282_v55 = vld [vmem:[#allocation5_spill] sm:$0xff] }
 0x18a   :  { %v1650_v62 = vpop.f32.mrf.mxu0  ;;  %v1527_v59 = vadd.f32 %v3284_v36, %v1454_v31 }
 0x18b   :  { %v2057_v40 = vpack.c.bf16 %v1753_v0, %v1752_v60  ;;  %v1720_v63 = vadd.f32 %v1719_v24, %v1647_v6  ;;  %v1651_v9 = vadd.f32 %v1650_v62, %v1578_v35  ;;  %v1754_v41 = vmax.f32 %v1718_v3, 0.0  ;;  %v1743_v0 = vpop.f32.mrf.mxu1  ;;  %v3285_v3 = vld [vmem:[#allocation9_spill] sm:$0xff] }
 0x18c   :  { %v1652_v20 = vpop.f32.mrf.mxu0  ;;  %v1456_v35 = vadd.f32 %v3283_v52, %v3282_v55 }
 0x18d   :  { %1818 = vst.msk [vmem:[%s3257_s2] sm:$0xff] %vm3172_vm3, %v2057_v40  ;;  %v1755_v42 = vmax.f32 %v1720_v63, 0.0  ;;  %v1724_v1 = vadd.f32 %v1723_v13, %v1651_v9  ;;  %v1653_v14 = vadd.f32 %v1652_v20, %v1580_v51  ;;  %v1519_v13 = vadd.f32 %v3135_v21, %v1446_v22  ;;  %v3277_v21 = vld [vmem:[#allocation14_spill] sm:$0xff]  ;;  %v1745_v22 = vpop.f32.mrf.mxu1 }
 0x18e   :  { %v1654_v44 = vpop.f32.mrf.mxu0  ;;  %v1521_v58 = vadd.f32 %v3277_v21, %v1448_v26  ;;  %v3287_v40 = vld [vmem:[#allocation6_spill] sm:$0xff]  ;;  %v3292_v26 = vld [vmem:[#allocation12_spill] sm:$0xff] }
 0x18f   :  { %v2058_v23 = vpack.c.bf16 %v1755_v42, %v1754_v41  ;;  %v1726_v24 = vadd.f32 %v3143_v15, %v1653_v14  ;;  %v1655_v25 = vadd.f32 %v1654_v44, %v1582_v12  ;;  %v1756_v45 = vmax.f32 %v1724_v1, 0.0  ;;  %v3288_v9 = vld [vmem:[#allocation10_spill] sm:$0xff]  ;;  %v3289_v12 = vld [vmem:[#allocation17_spill] sm:$0xff] }
 0x190   :  { %v1656_v28 = vpop.f32.mrf.mxu0  ;;  %v1592_v53 = vadd.f32 %v3280_v32, %v1519_v13  ;;  %v1594_v6 = vadd.f32 %v3285_v3, %v1521_v58  ;;  %v1458_v63 = vadd.f32 %v3287_v40, %v3286_v39  ;;  %v3291_v44 = vld [vmem:[#allocation18_spill] sm:$0xff] }
 0x191   :  { %1819 = vst.msk [vmem:[%s3257_s2 + $0x8] sm:$0xff] %vm3172_vm3, %v2058_v23  ;;  %v1757_v46 = vmax.f32 %v1726_v24, 0.0  ;;  %v1728_v4 = vadd.f32 %v3151_v54, %v1655_v25  ;;  %v1657_v15 = vadd.f32 %v1656_v28, %v1584_v16  ;;  %v3281_v54 = vld [vmem:[#allocation15_spill] sm:$0xff] }
 0x192   :  { %v1660_v48 = vpop.f32.mrf.mxu0  ;;  %v1525_v34 = vadd.f32 %v3281_v54, %v1452_v19  ;;  %v1531_v16 = vadd.f32 %v3291_v44, %v1458_v63  ;;  %v3293_v19 = vld [vmem:[#allocation13_spill] sm:$0xff] }
 0x193   :  { %v2059_v29 = vpack.c.bf16 %v1757_v46, %v1756_v45  ;;  %v1730_v30 = vadd.f32 %v3161_v56, %v1657_v15  ;;  %v1661_v61 = vadd.f32 %v1660_v48, %v1588_v27  ;;  %v1758_v49 = vmax.f32 %v1728_v4, 0.0  ;;  %v1747_v4 = vpop.f32.mrf.mxu1 }
 0x194   :  { %v1662_v57 = vpop.f32.mrf.mxu0  ;;  %v1598_v11 = vadd.f32 %v3288_v9, %v1525_v34 }
 0x195   :  { %1820 = vst.msk [vmem:[%s3257_s2 + $0x10] sm:$0xff] %vm3172_vm3, %v2059_v29  ;;  %v1759_v50 = vmax.f32 %v1730_v30, 0.0  ;;  %v1734_v7 = vadd.f32 %v3167_v33, %v1661_v61  ;;  %v1663_v56 = vadd.f32 %v1662_v57, %v1590_v47  ;;  %v1529_v33 = vadd.f32 %v3289_v12, %v1456_v35  ;;  %v1749_v17 = vpop.f32.mrf.mxu1 }
 0x196   :  { %v1664_v60 = vpop.f32.mrf.mxu0  ;;  %v1604_v47 = vadd.f32 %v3293_v19, %v1531_v16 }
 0x197   :  { %v2060_v38 = vpack.c.bf16 %v1759_v50, %v1758_v49  ;;  %v1736_v51 = vadd.f32 %v1735_v8, %v1663_v56  ;;  %v1665_v62 = vadd.f32 %v1664_v60, %v1592_v53  ;;  %v1760_v20 = vmax.f32 %v1734_v7, 0.0  ;;  %v3290_v8 = vld [vmem:[#allocation11_spill] sm:$0xff] }
 0x198   :  { %v1666_v18 = vpop.f32.mrf.mxu0  ;;  %v1600_v14 = vadd.f32 %v3290_v8, %v1527_v59  ;;  %v1602_v27 = vadd.f32 %v3292_v26, %v1529_v33 }
 0x199   :  { %1821 = vst.msk [vmem:[%s3257_s2 + $0x18] sm:$0xff] %vm3172_vm3, %v2060_v38  ;;  %v1761_v41 = vmax.f32 %v1736_v51, 0.0  ;;  %v1738_v42 = vadd.f32 %v1737_v2, %v1665_v62  ;;  %v1667_v1 = vadd.f32 %v1666_v18, %v1594_v6 }
 0x19a   :  { %v1670_v43 = vpop.f32.mrf.mxu0 }
 0x19b   :  { %v2061_v23 = vpack.c.bf16 %v1761_v41, %v1760_v20  ;;  %v1740_v24 = vadd.f32 %v1739_v5, %v1667_v1  ;;  %v1671_v25 = vadd.f32 %v1670_v43, %v1598_v11  ;;  %v1762_v2 = vmax.f32 %v1738_v42, 0.0 }
 0x19c   :  { %v1672_v13 = vpop.f32.mrf.mxu0 }
 0x19d   :  { %1822 = vst.msk [vmem:[%s3257_s2 + $0x20] sm:$0xff] %vm3172_vm3, %v2061_v23  ;;  %v1763_v28 = vmax.f32 %v1740_v24, 0.0  ;;  %v1744_v45 = vadd.f32 %v1743_v0, %v1671_v25  ;;  %v1673_v46 = vadd.f32 %v1672_v13, %v1600_v14 }
 0x19e   :  { %v1674_v15 = vpop.f32.mrf.mxu0 }
 0x19f   :  { %v2062_v48 = vpack.c.bf16 %v1763_v28, %v1762_v2  ;;  %v1746_v5 = vadd.f32 %v1745_v22, %v1673_v46  ;;  %v1675_v21 = vadd.f32 %v1674_v15, %v1602_v27  ;;  %v1764_v29 = vmax.f32 %v1744_v45, 0.0 }
 0x1a0   :  { %v1676_v58 = vpop.f32.mrf.mxu0 }
 0x1a1   :  { %1823 = vst.msk [vmem:[%s3257_s2 + $0x28] sm:$0xff] %vm3172_vm3, %v2062_v48  ;;  %v1765_v30 = vmax.f32 %v1746_v5, 0.0  ;;  %v1748_v61 = vadd.f32 %v1747_v4, %v1675_v21  ;;  %v1677_v10 = vadd.f32 %v1676_v58, %v1604_v47 }
 0x1a3   :  { %v2063_v31 = vpack.c.bf16 %v1765_v30, %v1764_v29  ;;  %v1750_v32 = vadd.f32 %v1749_v17, %v1677_v10  ;;  %v1766_v53 = vmax.f32 %v1748_v61, 0.0 }
 0x1a5   :  { %1824 = vst.msk [vmem:[%s3257_s2 + $0x30] sm:$0xff] %vm3172_vm3, %v2063_v31  ;;  %v1767_v54 = vmax.f32 %v1750_v32, 0.0 }
 0x1a7   :  { %v2064_v34 = vpack.c.bf16 %v1767_v54, %v1766_v53 }
 0x1a9   :  { %1825 = vst.msk [vmem:[%s3257_s2 + $0x38] sm:$0xff] %vm3172_vm3, %v2064_v34 }

// kernel: decoder_forward.6
= control target key start
LH: loop header
LB: loop body
LE: loop exit
PB: predicated region body
PF: predicated region fallthrough
CT: control target
= control target key end

     0   :  { %s1008_s9 = smov 0   ;;  %s1128_s0 = inlined_call_operand.vmem [shape: bf16[4,48,392], index: 0, kind: input, shape index: {}]   ;;  %s1129_s1 = inlined_call_operand.vmem [shape: bf16[4,392,160], index: 1, kind: input, shape index: {}]   ;;  %s1130_s2 = inlined_call_operand.vmem [shape: bf16[4,48,160], index: 2, kind: output, shape index: {}]  }
   0x1 LB: > { %s794_s10 = sadd.s32 4294967295, %s991_s9   ;;  %p798_p0 = scmp.ge.s32.totalorder %s991_s9, 1  ;;  %s991_s9 = sphi %s1008_s9, %s12_s9  }
   0x2   : > { %p122_p1 = scmp.lt.s32.totalorder %s991_s9, 5 }
   0x4   : > { %p123_p2 = pnand %p798_p0, %p122_p1 }
   0x5   : > { %p149_p3 = scmp.lt.s32.totalorder (!%p123_p2), %s794_s10, 3 }
   0x6   : > { %126 = sbr.rel (%p123_p2) target bundleno = 302 (0x12e), region = 28 }
   0xb   : > { %s1134_s10 = smov (!%p149_p3, %s794_s10), 3  ;;  %vm528_vm0 = vcmask 64512   ;;  %vm538_vm1 = vcmask 1043456   ;;  %vm719_vm2 = vcmask 261124  }
   0xc   : > { %s883_s11 = smul.u32 392, %s1134_s10  ;;  %vm1098_vm3 = vmor %vm719_vm2, %vm538_vm1 }
   0xd   : > { %s882_s15 = smul.u32 96, %s1134_s10 }
   0xe   : > { %s1022_s14 = scalar_lea.vmem %s1129_s1, %s883_s11  ;;  %s884_s19 = smul.u32 48, %s1134_s10 }
   0xf   : > { %v893_v0 = vld [vmem:[%s1022_s14 + $0x74] ss:$8 sps:$4 sm:$0xff]   ;;  %v895_v1 = vld [vmem:[%s1022_s14 + $0x70] ss:$8 sps:$4 sm:$0xff]   ;;  %v896_v2 = vld [vmem:[%s1022_s14 + $0x64] ss:$8 sps:$4 sm:$0xff]   ;;  %s1059_s18 = scalar_lea.vmem %s1128_s0, %s882_s15 }
  0x10   : > { %545 = vmatprep.subr.bf16.mxu0 %v893_v0  ;;  %v898_v3 = vld [vmem:[%s1022_s14 + $0x60] ss:$8 sps:$4 sm:$0xff]   ;;  %v899_v4 = vld [vmem:[%s1022_s14 + $0x54] ss:$8 sps:$4 sm:$0xff]   ;;  %v901_v5 = vld [vmem:[%s1022_s14 + $0x50] ss:$8 sps:$4 sm:$0xff]   ;;  %s1105_s22 = scalar_lea.vmem %s1130_s2, %s884_s19 }
  0x11   : > { %546 = vmatpush1.bf16.msra.mxu0 %v895_v1  ;;  %v902_v6 = vld [vmem:[%s1022_s14 + $0x44] ss:$8 sps:$4 sm:$0xff]   ;;  %v911_v7 = vld [vmem:[%s1022_s14 + $0x174] ss:$8 sps:$4 sm:$0xff]   ;;  %v913_v8 = vld [vmem:[%s1022_s14 + $0x170] ss:$8 sps:$4 sm:$0xff]  }
  0x12   : > { %547 = vmatprep.subr.bf16.mxu0 %v896_v2  ;;  %v904_v9 = vld [vmem:[%s1022_s14 + $0x40] ss:$8 sps:$4 sm:$0xff]   ;;  %608 = vmatprep.subr.bf16.mxu1 %v911_v7  ;;  %v917_v10 = vld [vmem:[%s1022_s14 + $0x164] ss:$8 sps:$4 sm:$0xff]   ;;  %v905_v12 = vld [vmem:[%s1022_s14 + $0x34] ss:$8 sps:$4 sm:$0xff]  }
  0x13   : > { %609 = vmatpush1.bf16.msra.mxu1 %v913_v8  ;;  %v919_v11 = vld [vmem:[%s1022_s14 + $0x160] ss:$8 sps:$4 sm:$0xff]   ;;  %v907_v13 = vld [vmem:[%s1022_s14 + $0x30] ss:$8 sps:$4 sm:$0xff]   ;;  %v923_v14 = vld [vmem:[%s1022_s14 + $0x154] ss:$8 sps:$4 sm:$0xff]  }
  0x14   : > { %610 = vmatprep.subr.bf16.mxu1 %v917_v10  ;;  %v908_v15 = vld [vmem:[%s1022_s14 + $0x24] ss:$8 sps:$4 sm:$0xff]   ;;  %v925_v16 = vld [vmem:[%s1022_s14 + $0x150] ss:$8 sps:$4 sm:$0xff]   ;;  %v910_v18 = vld [vmem:[%s1022_s14 + $0x20] ss:$8 sps:$4 sm:$0xff]  }
  0x15   : > { %548 = vmatpush1.bf16.msra.mxu0 %v898_v3  ;;  %v929_v17 = vld [vmem:[%s1022_s14 + $0x144] ss:$8 sps:$4 sm:$0xff]   ;;  %v914_v19 = vld [vmem:[%s1022_s14 + $0x14] ss:$8 sps:$4 sm:$0xff]   ;;  %v931_v20 = vld [vmem:[%s1022_s14 + $0x140] ss:$8 sps:$4 sm:$0xff]  }
  0x16   : > { %549 = vmatprep.subr.bf16.mxu0 %v899_v4  ;;  %v935_v21 = vld [vmem:[%s1022_s14 + $0x134] ss:$8 sps:$4 sm:$0xff]   ;;  %v916_v22 = vld [vmem:[%s1022_s14 + $0x10] ss:$8 sps:$4 sm:$0xff]   ;;  %v920_v23 = vld [vmem:[%s1022_s14 + $0x4] ss:$8 sps:$4 sm:$0xff]  }
  0x17   : > { %611 = vmatpush1.bf16.msra.mxu1 %v919_v11  ;;  %v937_v24 = vld [vmem:[%s1022_s14 + $0x130] ss:$8 sps:$4 sm:$0xff]   ;;  %v941_v25 = vld [vmem:[%s1022_s14 + $0x124] ss:$8 sps:$4 sm:$0xff]   ;;  %v922_v26 = vld [vmem:[%s1022_s14] ss:$8 sps:$4 sm:$0xff]  }
  0x18   : > { %612 = vmatprep.subr.bf16.mxu1 %v923_v14  ;;  %v926_v27 = vld [vmem:[%s1022_s14 + $0xf4] ss:$8 sps:$4 sm:$0xff]   ;;  %v943_v28 = vld [vmem:[%s1022_s14 + $0x120] ss:$8 sps:$4 sm:$0xff]   ;;  %v928_v30 = vld [vmem:[%s1022_s14 + $0xf0] ss:$8 sps:$4 sm:$0xff]  }
  0x19   : > { %550 = vmatpush1.bf16.msra.mxu0 %v901_v5  ;;  %v947_v29 = vld [vmem:[%s1022_s14 + $0x114] ss:$8 sps:$4 sm:$0xff]   ;;  %v932_v31 = vld [vmem:[%s1022_s14 + $0xe4] ss:$8 sps:$4 sm:$0xff]   ;;  %v949_v32 = vld [vmem:[%s1022_s14 + $0x110] ss:$8 sps:$4 sm:$0xff]  }
  0x1a   : > { %551 = vmatprep.subr.bf16.mxu0 %v902_v6  ;;  %v953_v33 = vld [vmem:[%s1022_s14 + $0x104] ss:$8 sps:$4 sm:$0xff]   ;;  %v934_v36 = vld [vmem:[%s1022_s14 + $0xe0] ss:$8 sps:$4 sm:$0xff]   ;;  %v938_v39 = vld [vmem:[%s1022_s14 + $0xd4] ss:$8 sps:$4 sm:$0xff]  }
  0x1b   : > { %613 = vmatpush1.bf16.msra.mxu1 %v925_v16  ;;  %v966_v34 = vld [vmem:[%s1059_s18 + $0xc] ss:$16 sps:$4 sm:$0xff]   ;;  %v225_v35 = vld [vmem:[%s1022_s14 + $0x180] sm:$0xff]  ;;  %v940_v42 = vld [vmem:[%s1022_s14 + $0xd0] ss:$8 sps:$4 sm:$0xff]  }
  0x1c   : > { %614 = vmatprep.subr.bf16.mxu1 %v929_v17  ;;  %865 = vmatprep.mubr.msk.bf16.mxu1 %vm528_vm0, %v966_v34  ;;  %v972_v37 = vld [vmem:[%s1059_s18 + $0x4] ss:$16 sps:$4 sm:$0xff]   ;;  %v955_v38 = vld [vmem:[%s1022_s14 + $0x100] ss:$8 sps:$4 sm:$0xff]   ;;  %v863_v40 = vcombine.high %v225_v35, %v225_v35  ;;  %v862_v41 = vcombine.low %v225_v35, %v225_v35  ;;  %v973_v47 = vld [vmem:[%s1059_s18 + $0x2c] ss:$16 sps:$4 sm:$0xff]  }
  0x1d   : > { %552 = vmatpush1.bf16.msra.mxu0 %v904_v9  ;;  %577 = vmatprep.mubr.bf16.mxu0 %v972_v37  ;;  %v944_v43 = vld [vmem:[%s1022_s14 + $0xc4] ss:$8 sps:$4 sm:$0xff]   ;;  %v964_v45 = vld [vmem:[%s1059_s18 + $0x8] ss:$16 sps:$4 sm:$0xff]   ;;  %v950_v48 = vld [vmem:[%s1022_s14 + $0xb4] ss:$8 sps:$4 sm:$0xff]  }
  0x1e   : > { %553 = vmatprep.subr.bf16.mxu0 %v905_v12  ;;  %v540_v44 = vsel %vm538_vm1, %v862_v41, 0  ;;  %v946_v46 = vld [vmem:[%s1022_s14 + $0xc0] ss:$8 sps:$4 sm:$0xff]   ;;  %v952_v49 = vld [vmem:[%s1022_s14 + $0xb0] ss:$8 sps:$4 sm:$0xff]  }
  0x1f   : > { %615 = vmatpush1.bf16.msra.mxu1 %v931_v20  ;;  %v956_v50 = vld [vmem:[%s1022_s14 + $0xa4] ss:$8 sps:$4 sm:$0xff]   ;;  %v975_v51 = vld [vmem:[%s1059_s18 + $0x28] ss:$16 sps:$4 sm:$0xff]   ;;  %v961_v54 = vld [vmem:[%s1022_s14 + $0x94] ss:$8 sps:$4 sm:$0xff]  }
  0x20   : > { %616 = vmatprep.subr.bf16.mxu1 %v935_v21  ;;  %v958_v52 = vld [vmem:[%s1022_s14 + $0xa0] ss:$8 sps:$4 sm:$0xff]   ;;  %v979_v53 = vld [vmem:[%s1059_s18 + $0x4c] ss:$16 sps:$4 sm:$0xff]   ;;  %v963_v55 = vld [vmem:[%s1022_s14 + $0x90] ss:$8 sps:$4 sm:$0xff]  }
  0x21   : > { %554 = vmatpush1.bf16.msra.mxu0 %v907_v13  ;;  %v967_v56 = vld [vmem:[%s1022_s14 + $0x84] ss:$8 sps:$4 sm:$0xff]   ;;  %v981_v57 = vld [vmem:[%s1059_s18 + $0x48] ss:$16 sps:$4 sm:$0xff]   ;;  %v970_v59 = vld [vmem:[%s1059_s18] ss:$16 sps:$4 sm:$0xff]  }
  0x22   : > { %555 = vmatprep.subr.bf16.mxu0 %v908_v15  ;;  %v969_v58 = vld [vmem:[%s1022_s14 + $0x80] ss:$8 sps:$4 sm:$0xff]   ;;  %v976_v60 = vld [vmem:[%s1059_s18 + $0x24] ss:$16 sps:$4 sm:$0xff]  }
  0x23   : > { %617 = vmatpush1.bf16.msra.mxu1 %v937_v24  ;;  %v978_v61 = vld [vmem:[%s1059_s18 + $0x20] ss:$16 sps:$4 sm:$0xff]   ;;  %v982_v62 = vld [vmem:[%s1059_s18 + $0x44] ss:$16 sps:$4 sm:$0xff]  }
  0x24   : > { %618 = vmatprep.subr.bf16.mxu1 %v941_v25  ;;  %v984_v63 = vld [vmem:[%s1059_s18 + $0x40] ss:$16 sps:$4 sm:$0xff]  }
  0x25   : > { %556 = vmatpush1.bf16.msra.mxu0 %v910_v18 }
  0x26   : > { %557 = vmatprep.subr.bf16.mxu0 %v914_v19 }
  0x27   : > { %619 = vmatpush1.bf16.msra.mxu1 %v943_v28 }
  0x28   : > { %620 = vmatprep.subr.bf16.mxu1 %v947_v29 }
  0x29   : > { %558 = vmatpush1.bf16.msra.mxu0 %v916_v22 }
  0x2a   : > { %559 = vmatprep.subr.bf16.mxu0 %v920_v23 }
  0x2b   : > { %621 = vmatpush1.bf16.msra.mxu1 %v949_v32 }
  0x2c   : > { %622 = vmatprep.subr.bf16.mxu1 %v953_v33 }
  0x2d   : > { %560 = vmatpush1.bf16.msra.mxu0 %v922_v26 }
  0x2e   : > { %561 = vmatprep.subr.bf16.mxu0 %v926_v27 }
  0x2f   : > { %623 = vmatpush1.bf16.msra.mxu1 %v955_v38 }
  0x30   : > { %864 = vmatprep.subr.msk.bf16.mxu1 %vm538_vm1, %v863_v40 }
  0x31   : > { %562 = vmatpush2.bf16.msra.mxu0 %v928_v30 }
  0x32   : > { %563 = vmatprep.subr.bf16.mxu0 %v932_v31 }
  0x33   : > { %639 = vmatpush2.bf16.msra.mxu1 %v540_v44 }
  0x35   : > { %564 = vmatpush2.bf16.msra.mxu0 %v934_v36 }
  0x36   : > { %565 = vmatprep.subr.bf16.mxu0 %v938_v39  ;;  %641 = vmatmul.mubr.bf16.vlgmr.msra.gmra.mxu1 %v964_v45 }
  0x37   : > { %866 = vmatprep.mubr.msk.bf16.mxu1 %vm528_vm0, %v973_v47 }
  0x39   : > { %566 = vmatpush2.bf16.msra.mxu0 %v940_v42 }
  0x3a   : > { %567 = vmatprep.subr.bf16.mxu0 %v944_v43 }
  0x3d   : > { %568 = vmatpush2.bf16.msra.mxu0 %v946_v46 }
  0x3e   : > { %569 = vmatprep.subr.bf16.mxu0 %v950_v48  ;;  %651 = vmatmul.mubr.bf16.gmra.mxu1 %v975_v51 }
  0x3f   : > { %867 = vmatprep.mubr.msk.bf16.mxu1 %vm528_vm0, %v979_v53 }
  0x41   : > { %570 = vmatpush2.bf16.msra.mxu0 %v952_v49 }
  0x42   : > { %571 = vmatprep.subr.bf16.mxu0 %v956_v50 }
  0x45   : > { %572 = vmatpush2.bf16.msra.mxu0 %v958_v52 }
  0x46   : > { %573 = vmatprep.subr.bf16.mxu0 %v961_v54  ;;  %661 = vmatmul.mubr.bf16.gmra.mxu1 %v981_v57 }
  0x49   : > { %574 = vmatpush2.bf16.msra.mxu0 %v963_v55 }
  0x4a   : > { %575 = vmatprep.subr.bf16.mxu0 %v967_v56 }
  0x4d   : > { %576 = vmatpush2.bf16.msra.mxu0 %v969_v58 }
  0x50   : > { %578 = vmatmul.mubr.bf16.vlgmr.msra.gmra.mxu0 %v970_v59 }
  0x51   : > { %587 = vmatprep.mubr.bf16.mxu0 %v976_v60 }
  0x58   : > { %588 = vmatmul.mubr.bf16.gmra.mxu0 %v978_v61 }
  0x59   : > { %597 = vmatprep.mubr.bf16.mxu0 %v982_v62 }
  0x60   : > { %598 = vmatmul.mubr.bf16.gmra.mxu0 %v984_v63 }
  0xf6   : > { %v642_v0 = vpop.f32.mrf.mxu1 }
  0xf8   : > { %v644_v1 = vpop.f32.mrf.mxu1 }
  0xfa   : > { %v646_v2 = vpop.f32.mrf.mxu1 }
  0xfc   : > { %v648_v3 = vpop.f32.mrf.mxu1 }
  0xfe   : > { %v652_v4 = vpop.f32.mrf.mxu1 }
 0x100   : > { %v654_v5 = vpop.f32.mrf.mxu1 }
 0x102   : > { %v656_v9 = vpop.f32.mrf.mxu1 }
 0x104   : > { %v658_v17 = vpop.f32.mrf.mxu1 }
 0x106   : > { %v662_v25 = vpop.f32.mrf.mxu1 }
 0x108   : > { %v664_v32 = vpop.f32.mrf.mxu1 }
 0x10a   : > { %v666_v40 = vpop.f32.mrf.mxu1 }
 0x10c   : > { %v668_v48 = vpop.f32.mrf.mxu1 }
 0x110   : > { %v579_v6 = vpop.f32.mrf.mxu0 }
 0x111   : > { %v643_v7 = vadd.f32 %v642_v0, %v579_v6 }
 0x112   : > { %v581_v8 = vpop.f32.mrf.mxu0 }
 0x113   : > { %v645_v10 = vadd.f32 %v644_v1, %v581_v8  ;;  %v671_v12 = vmax.f32 %v643_v7, 0.0 }
 0x114   : > { %v583_v11 = vpop.f32.mrf.mxu0 }
 0x115   : > { %v672_v13 = vmax.f32 %v645_v10, 0.0  ;;  %v647_v14 = vadd.f32 %v646_v2, %v583_v11 }
 0x116   : > { %v585_v16 = vpop.f32.mrf.mxu0 }
 0x117   : > { %v876_v18 = vpack.c.bf16 %v672_v13, %v671_v12  ;;  %v649_v19 = vadd.f32 %v648_v3, %v585_v16  ;;  %v673_v21 = vmax.f32 %v647_v14, 0.0 }
 0x118   : > { %v589_v20 = vpop.f32.mrf.mxu0 }
 0x119   : > { %721 = vst.msk [vmem:[%s1105_s22] sm:$0xff] %vm1098_vm3, %v876_v18  ;;  %v674_v22 = vmax.f32 %v649_v19, 0.0  ;;  %v653_v23 = vadd.f32 %v652_v4, %v589_v20 }
 0x11a   : > { %v591_v24 = vpop.f32.mrf.mxu0 }
 0x11b   : > { %v877_v26 = vpack.c.bf16 %v674_v22, %v673_v21  ;;  %v655_v27 = vadd.f32 %v654_v5, %v591_v24  ;;  %v675_v29 = vmax.f32 %v653_v23, 0.0 }
 0x11c   : > { %v593_v28 = vpop.f32.mrf.mxu0 }
 0x11d   : > { %722 = vst.msk [vmem:[%s1105_s22 + $0x8] sm:$0xff] %vm1098_vm3, %v877_v26  ;;  %v676_v30 = vmax.f32 %v655_v27, 0.0  ;;  %v657_v31 = vadd.f32 %v656_v9, %v593_v28 }
 0x11e   : > { %v595_v33 = vpop.f32.mrf.mxu0 }
 0x11f   : > { %v878_v34 = vpack.c.bf16 %v676_v30, %v675_v29  ;;  %v659_v35 = vadd.f32 %v658_v17, %v595_v33  ;;  %v677_v37 = vmax.f32 %v657_v31, 0.0 }
 0x120   : > { %v599_v36 = vpop.f32.mrf.mxu0 }
 0x121   : > { %723 = vst.msk [vmem:[%s1105_s22 + $0x10] sm:$0xff] %vm1098_vm3, %v878_v34  ;;  %v678_v38 = vmax.f32 %v659_v35, 0.0  ;;  %v663_v39 = vadd.f32 %v662_v25, %v599_v36 }
 0x122   : > { %v601_v41 = vpop.f32.mrf.mxu0 }
 0x123   : > { %v879_v42 = vpack.c.bf16 %v678_v38, %v677_v37  ;;  %v665_v43 = vadd.f32 %v664_v32, %v601_v41  ;;  %v679_v45 = vmax.f32 %v663_v39, 0.0 }
 0x124   : > { %v603_v44 = vpop.f32.mrf.mxu0 }
 0x125   : > { %724 = vst.msk [vmem:[%s1105_s22 + $0x18] sm:$0xff] %vm1098_vm3, %v879_v42  ;;  %v680_v46 = vmax.f32 %v665_v43, 0.0  ;;  %v667_v47 = vadd.f32 %v666_v40, %v603_v44 }
 0x126   : > { %v605_v49 = vpop.f32.mrf.mxu0 }
 0x127   : > { %v880_v50 = vpack.c.bf16 %v680_v46, %v679_v45  ;;  %v669_v51 = vadd.f32 %v668_v48, %v605_v49  ;;  %v681_v52 = vmax.f32 %v667_v47, 0.0 }
 0x129   : > { %725 = vst.msk [vmem:[%s1105_s22 + $0x20] sm:$0xff] %vm1098_vm3, %v880_v50  ;;  %v682_v53 = vmax.f32 %v669_v51, 0.0 }
 0x12b   : > { %v881_v54 = vpack.c.bf16 %v682_v53, %v681_v52 }
 0x12d   : > { %726 = vst.msk [vmem:[%s1105_s22 + $0x28] sm:$0xff] %vm1098_vm3, %v881_v54 }
 0x12e PF: > { %s12_s9 = sadd.s32 1, %s991_s9  }
 0x12f   : > { %p9_p4 = scmp.ge.s32.totalorder %s12_s9, 6  }
 0x131   :  { %11 = sbr.rel (!%p9_p4) target bundleno = 1 (0x1), region = 61 }

// kernel: decoder_forward.7
= control target key start
LH: loop header
LB: loop body
LE: loop exit
PB: predicated region body
PF: predicated region fallthrough
CT: control target
= control target key end

     0   :  { %s1653_s9 = smov 0   ;;  %s1827_s0 = inlined_call_operand.vmem [shape: bf16[2,32,296], index: 0, kind: input, shape index: {}]   ;;  %s1828_s1 = inlined_call_operand.vmem [shape: bf16[2,296,640], index: 1, kind: input, shape index: {}]   ;;  %s1829_s2 = inlined_call_operand.vmem [shape: bf16[2,32,640], index: 2, kind: output, shape index: {}]  }
   0x1 LB: > { %s1291_s10 = sadd.s32 4294967295, %s1635_s9   ;;  %p1295_p0 = scmp.ge.s32.totalorder %s1635_s9, 1  ;;  %s1635_s9 = sphi %s1653_s9, %s12_s9  }
   0x2   : > { %p122_p1 = scmp.lt.s32.totalorder %s1635_s9, 3 }
   0x4   : > { %p123_p2 = pnand %p1295_p0, %p122_p1 }
   0x5   : > { %p149_p3 = scmp.lt.s32.totalorder (!%p123_p2), %s1291_s10, 1 }
   0x6   : > { %126 = sbr.rel (%p123_p2) target bundleno = 334 (0x14e), region = 28 }
   0xb   : > { %s1831_s10 = smov (!%p149_p3, %s1291_s10), 1  ;;  %vm802_vm0 = vcmask 1043456   ;;  %vm795_vm1 = vcmask 326656  }
   0xc   : > { %s1479_s11 = smul.u32 740, %s1831_s10 }
   0xd   : > { %s1478_s15 = smul.u32 48, %s1831_s10 }
   0xe   : > { %s1667_s14 = scalar_lea.vmem %s1828_s1, %s1479_s11  ;;  %s1480_s19 = smul.u32 80, %s1831_s10 }
   0xf   : > { %v1490_v0 = vld [vmem:[%s1667_s14 + $0x11c] ss:$20 sps:$4 sm:$0xff]   ;;  %v1492_v1 = vld [vmem:[%s1667_s14 + $0x118] ss:$20 sps:$4 sm:$0xff]   ;;  %v1495_v3 = vld [vmem:[%s1667_s14 + $0x120] ss:$20 sps:$4 sm:$0xff]   ;;  %s1717_s18 = scalar_lea.vmem %s1827_s0, %s1478_s15 }
  0x10   : > { %818 = vmatprep.subr.bf16.mxu0 %v1490_v0  ;;  %v1493_v2 = vld [vmem:[%s1667_s14 + $0x124] ss:$20 sps:$4 sm:$0xff]   ;;  %v1496_v4 = vld [vmem:[%s1667_s14 + $0xf4] ss:$20 sps:$4 sm:$0xff]   ;;  %v1499_v6 = vld [vmem:[%s1667_s14 + $0xfc] ss:$20 sps:$4 sm:$0xff]   ;;  %s1810_s22 = scalar_lea.vmem %s1829_s2, %s1480_s19 }
  0x11   : > { %819 = vmatpush1.bf16.msra.mxu0 %v1492_v1  ;;  %v1498_v5 = vld [vmem:[%s1667_s14 + $0xf0] ss:$20 sps:$4 sm:$0xff]   ;;  %924 = vmatprep.subr.bf16.mxu1 %v1493_v2  ;;  %v1501_v7 = vld [vmem:[%s1667_s14 + $0xf8] ss:$20 sps:$4 sm:$0xff]   ;;  %v1504_v9 = vld [vmem:[%s1667_s14 + $0xc8] ss:$20 sps:$4 sm:$0xff]  }
  0x12   : > { %925 = vmatpush1.bf16.msra.mxu1 %v1495_v3  ;;  %820 = vmatprep.subr.bf16.mxu0 %v1496_v4  ;;  %v1502_v8 = vld [vmem:[%s1667_s14 + $0xcc] ss:$20 sps:$4 sm:$0xff]   ;;  %v1505_v10 = vld [vmem:[%s1667_s14 + $0xd4] ss:$20 sps:$4 sm:$0xff]   ;;  %v1508_v11 = vld [vmem:[%s1667_s14 + $0xa4] ss:$20 sps:$4 sm:$0xff]  }
  0x13   : > { %926 = vmatprep.subr.bf16.mxu1 %v1499_v6  ;;  %v1507_v12 = vld [vmem:[%s1667_s14 + $0xd0] ss:$20 sps:$4 sm:$0xff]   ;;  %v1511_v13 = vld [vmem:[%s1667_s14 + $0xac] ss:$20 sps:$4 sm:$0xff]   ;;  %v1513_v16 = vld [vmem:[%s1667_s14 + $0xa8] ss:$20 sps:$4 sm:$0xff]  }
  0x14   : > { %v1510_v14 = vld [vmem:[%s1667_s14 + $0xa0] ss:$20 sps:$4 sm:$0xff]   ;;  %v1514_v15 = vld [vmem:[%s1667_s14 + $0x7c] ss:$20 sps:$4 sm:$0xff]   ;;  %v1517_v17 = vld [vmem:[%s1667_s14 + $0x84] ss:$20 sps:$4 sm:$0xff]  }
  0x15   : > { %821 = vmatpush1.bf16.msra.mxu0 %v1498_v5  ;;  %v1516_v18 = vld [vmem:[%s1667_s14 + $0x78] ss:$20 sps:$4 sm:$0xff]   ;;  %v1520_v19 = vld [vmem:[%s1667_s14 + $0x54] ss:$20 sps:$4 sm:$0xff]   ;;  %v1523_v21 = vld [vmem:[%s1667_s14 + $0x5c] ss:$20 sps:$4 sm:$0xff]  }
  0x16   : > { %822 = vmatprep.subr.bf16.mxu0 %v1502_v8  ;;  %927 = vmatpush1.bf16.msra.mxu1 %v1501_v7  ;;  %v1519_v20 = vld [vmem:[%s1667_s14 + $0x80] ss:$20 sps:$4 sm:$0xff]   ;;  %v1522_v22 = vld [vmem:[%s1667_s14 + $0x50] ss:$20 sps:$4 sm:$0xff]   ;;  %v1525_v24 = vld [vmem:[%s1667_s14 + $0x58] ss:$20 sps:$4 sm:$0xff]  }
  0x17   : > { %928 = vmatprep.subr.bf16.mxu1 %v1505_v10  ;;  %v1526_v23 = vld [vmem:[%s1667_s14 + $0x2c] ss:$20 sps:$4 sm:$0xff]   ;;  %v1529_v25 = vld [vmem:[%s1667_s14 + $0x34] ss:$20 sps:$4 sm:$0xff]   ;;  %v1532_v27 = vld [vmem:[%s1667_s14 + $0x4] ss:$20 sps:$4 sm:$0xff]  }
  0x18   : > { %v1528_v26 = vld [vmem:[%s1667_s14 + $0x28] ss:$20 sps:$4 sm:$0xff]   ;;  %v1531_v28 = vld [vmem:[%s1667_s14 + $0x30] ss:$20 sps:$4 sm:$0xff]   ;;  %v1535_v29 = vld [vmem:[%s1667_s14 + $0xc] ss:$20 sps:$4 sm:$0xff]  }
  0x19   : > { %823 = vmatpush1.bf16.msra.mxu0 %v1504_v9  ;;  %v1534_v30 = vld [vmem:[%s1667_s14] ss:$20 sps:$4 sm:$0xff]   ;;  %v1538_v31 = vld [vmem:[%s1667_s14 + $0x25c] ss:$20 sps:$4 sm:$0xff]   ;;  %v1541_v33 = vld [vmem:[%s1667_s14 + $0x264] ss:$20 sps:$4 sm:$0xff]  }
  0x1a   : > { %824 = vmatprep.subr.bf16.mxu0 %v1508_v11  ;;  %929 = vmatpush1.bf16.msra.mxu1 %v1507_v12  ;;  %v1537_v32 = vld [vmem:[%s1667_s14 + $0x8] ss:$20 sps:$4 sm:$0xff]   ;;  %v1540_v34 = vld [vmem:[%s1667_s14 + $0x258] ss:$20 sps:$4 sm:$0xff]   ;;  %v1543_v36 = vld [vmem:[%s1667_s14 + $0x260] ss:$20 sps:$4 sm:$0xff]  }
  0x1b   : > { %930 = vmatprep.subr.bf16.mxu1 %v1511_v13  ;;  %v1544_v35 = vld [vmem:[%s1667_s14 + $0x234] ss:$20 sps:$4 sm:$0xff]   ;;  %v1547_v37 = vld [vmem:[%s1667_s14 + $0x23c] ss:$20 sps:$4 sm:$0xff]   ;;  %v1550_v39 = vld [vmem:[%s1667_s14 + $0x20c] ss:$20 sps:$4 sm:$0xff]  }
  0x1c   : > { %v1546_v38 = vld [vmem:[%s1667_s14 + $0x230] ss:$20 sps:$4 sm:$0xff]   ;;  %v1549_v40 = vld [vmem:[%s1667_s14 + $0x238] ss:$20 sps:$4 sm:$0xff]   ;;  %v1553_v41 = vld [vmem:[%s1667_s14 + $0x214] ss:$20 sps:$4 sm:$0xff]  }
  0x1d   : > { %825 = vmatpush1.bf16.msra.mxu0 %v1510_v14  ;;  %v1552_v42 = vld [vmem:[%s1667_s14 + $0x208] ss:$20 sps:$4 sm:$0xff]   ;;  %v1556_v43 = vld [vmem:[%s1667_s14 + $0x1e4] ss:$20 sps:$4 sm:$0xff]   ;;  %v1559_v45 = vld [vmem:[%s1667_s14 + $0x1ec] ss:$20 sps:$4 sm:$0xff]  }
  0x1e   : > { %826 = vmatprep.subr.bf16.mxu0 %v1514_v15  ;;  %931 = vmatpush1.bf16.msra.mxu1 %v1513_v16  ;;  %v1555_v44 = vld [vmem:[%s1667_s14 + $0x210] ss:$20 sps:$4 sm:$0xff]   ;;  %v1558_v46 = vld [vmem:[%s1667_s14 + $0x1e0] ss:$20 sps:$4 sm:$0xff]   ;;  %v1561_v49 = vld [vmem:[%s1667_s14 + $0x1e8] ss:$20 sps:$4 sm:$0xff]  }
  0x1f   : > { %932 = vmatprep.subr.bf16.mxu1 %v1517_v17  ;;  %v1723_v47 = vld [vmem:[%s1717_s18 + $0x4] ss:$12 sps:$4 sm:$0xff]   ;;  %v1564_v51 = vld [vmem:[%s1667_s14 + $0x1b8] ss:$20 sps:$4 sm:$0xff]   ;;  %v1568_v52 = vld [vmem:[%s1667_s14 + $0x194] ss:$20 sps:$4 sm:$0xff]  }
  0x20   : > { %v1562_v48 = vld [vmem:[%s1667_s14 + $0x1bc] ss:$20 sps:$4 sm:$0xff]   ;;  %850 = vmatprep.mubr.bf16.mxu0 %v1723_v47  ;;  %v1565_v50 = vld [vmem:[%s1667_s14 + $0x1c4] ss:$20 sps:$4 sm:$0xff]   ;;  %956 = vmatprep.mubr.bf16.mxu1 %v1723_v47  ;;  %v1567_v53 = vld [vmem:[%s1667_s14 + $0x1c0] ss:$20 sps:$4 sm:$0xff]  }
  0x21   : > { %827 = vmatpush1.bf16.msra.mxu0 %v1516_v18  ;;  %v1570_v54 = vld [vmem:[%s1667_s14 + $0x190] ss:$20 sps:$4 sm:$0xff]   ;;  %v1573_v56 = vld [vmem:[%s1667_s14 + $0x198] ss:$20 sps:$4 sm:$0xff]   ;;  %v1576_v58 = vld [vmem:[%s1667_s14 + $0x168] ss:$20 sps:$4 sm:$0xff]  }
  0x22   : > { %828 = vmatprep.subr.bf16.mxu0 %v1520_v19  ;;  %933 = vmatpush1.bf16.msra.mxu1 %v1519_v20  ;;  %v1571_v55 = vld [vmem:[%s1667_s14 + $0x19c] ss:$20 sps:$4 sm:$0xff]   ;;  %v1574_v57 = vld [vmem:[%s1667_s14 + $0x16c] ss:$20 sps:$4 sm:$0xff]   ;;  %v1577_v59 = vld [vmem:[%s1667_s14 + $0x174] ss:$20 sps:$4 sm:$0xff]  }
  0x23   : > { %934 = vmatprep.subr.bf16.mxu1 %v1523_v21  ;;  %v281_v60 = vld [vmem:[%s1667_s14 + $0x2d0] sm:$0xff]  ;;  %v1580_v61 = vld [vmem:[%s1667_s14 + $0x144] ss:$20 sps:$4 sm:$0xff]   ;;  %v1583_v63 = vld [vmem:[%s1667_s14 + $0x14c] ss:$20 sps:$4 sm:$0xff]   ;;  %v1637_v21 = vmov 0  }
  0x24   : > { %v1579_v62 = vld [vmem:[%s1667_s14 + $0x170] ss:$20 sps:$4 sm:$0xff]   ;;  %v1395_v0 = vcombine.low %v281_v60, %v281_v60  ;;  %v1582_v1 = vld [vmem:[%s1667_s14 + $0x140] ss:$20 sps:$4 sm:$0xff]   ;;  %v1585_v2 = vld [vmem:[%s1667_s14 + $0x148] ss:$20 sps:$4 sm:$0xff]   ;;  %v1396_v3 = vcombine.high %v281_v60, %v281_v60 }
  0x25   : > { %829 = vmatpush1.bf16.msra.mxu0 %v1522_v22  ;;  %v1746_v4 = vld [vmem:[%s1717_s18] ss:$12 sps:$4 sm:$0xff]   ;;  %v1591_v5 = vld [vmem:[%s1667_s14 + $0x268] ss:$20 sps:$4 sm:$0xff]   ;;  %v1605_v13 = vld [vmem:[%s1667_s14 + $0x284] ss:$20 sps:$4 sm:$0xff]  }
  0x26   : > { %830 = vmatprep.subr.bf16.mxu0 %v1526_v23  ;;  %935 = vmatpush1.bf16.msra.mxu1 %v1525_v24  ;;  %v804_v6 = vsel %vm802_vm0, %v1395_v0, 0  ;;  %v1592_v7 = vld [vmem:[%s1667_s14 + $0x128] ss:$20 sps:$4 sm:$0xff]   ;;  %v1596_v9 = vld [vmem:[%s1667_s14 + $0x2ac] ss:$20 sps:$4 sm:$0xff]  }
  0x27   : > { %936 = vmatprep.subr.bf16.mxu1 %v1529_v25  ;;  %v1752_v8 = vld [vmem:[%s1717_s18 + $0x1c] ss:$12 sps:$4 sm:$0xff]   ;;  %v1593_v10 = vld [vmem:[%s1667_s14 + $0x240] ss:$20 sps:$4 sm:$0xff]   ;;  %v1764_v14 = vld [vmem:[%s1717_s18 + $0x18] ss:$12 sps:$4 sm:$0xff]  }
  0x28   : > { %v1594_v11 = vld [vmem:[%s1667_s14 + $0x2a8] ss:$20 sps:$4 sm:$0xff]   ;;  %v1597_v12 = vld [vmem:[%s1667_s14 + $0x100] ss:$20 sps:$4 sm:$0xff]   ;;  %v1601_v16 = vld [vmem:[%s1667_s14 + $0x218] ss:$20 sps:$4 sm:$0xff]  }
  0x29   : > { %831 = vmatpush1.bf16.msra.mxu0 %v1528_v26  ;;  %v282_v15 = vld [vmem:[%s1667_s14 + $0x2d8] sm:$0xff]  ;;  %v1603_v17 = vld [vmem:[%s1667_s14 + $0x280] ss:$20 sps:$4 sm:$0xff]   ;;  %v1606_v20 = vld [vmem:[%s1667_s14 + $0x1f0] ss:$20 sps:$4 sm:$0xff]  }
  0x2a   : > { %832 = vmatprep.subr.bf16.mxu0 %v1532_v27  ;;  %937 = vmatpush1.bf16.msra.mxu1 %v1531_v28  ;;  %v1398_v18 = vcombine.high %v282_v15, %v282_v15  ;;  %v1602_v19 = vld [vmem:[%s1667_s14 + $0xd8] ss:$20 sps:$4 sm:$0xff]   ;;  %v1397_v22 = vcombine.low %v282_v15, %v282_v15  ;;  %v1607_v23 = vld [vmem:[%s1667_s14 + $0xb0] ss:$20 sps:$4 sm:$0xff]   ;;  %v1608_v24 = vld [vmem:[%s1717_s18 + $0x8] ss:$12 sps:$4 sm:$0xff]  }
  0x2b   : > { %938 = vmatprep.subr.bf16.mxu1 %v1535_v29  ;;  %v1611_v25 = vld [vmem:[%s1667_s14 + $0x1c8] ss:$20 sps:$4 sm:$0xff]   ;;  %v1613_v29 = vld [vmem:[%s1667_s14 + $0x1a0] ss:$20 sps:$4 sm:$0xff]  }
  0x2c   : > { %v810_v26 = vsel %vm802_vm0, %v1397_v22, 0  ;;  %v1616_v27 = vld [vmem:[%s1667_s14 + $0x2b4] ss:$20 sps:$4 sm:$0xff]  }
  0x2d   : > { %833 = vmatpush1.bf16.msra.mxu0 %v1534_v30  ;;  %v1612_v28 = vld [vmem:[%s1667_s14 + $0x88] ss:$20 sps:$4 sm:$0xff]   ;;  %v1614_v30 = vld [vmem:[%s1667_s14 + $0x2b0] ss:$20 sps:$4 sm:$0xff]  }
  0x2e   : > { %834 = vmatprep.subr.bf16.mxu0 %v1538_v31  ;;  %939 = vmatpush1.bf16.msra.mxu1 %v1537_v32  ;;  %v1623_v31 = vld [vmem:[%s1667_s14 + $0x28c] ss:$20 sps:$4 sm:$0xff]  }
  0x2f   : > { %940 = vmatprep.subr.bf16.mxu1 %v1541_v33  ;;  %v1617_v32 = vld [vmem:[%s1667_s14 + $0x60] ss:$20 sps:$4 sm:$0xff]  }
  0x30   : > { %v1618_v33 = vld [vmem:[%s1717_s18 + $0x20] ss:$12 sps:$4 sm:$0xff]  }
  0x31   : > { %835 = vmatpush2.bf16.msra.mxu0 %v1540_v34  ;;  %v1619_v34 = vld [vmem:[%s1667_s14 + $0x178] ss:$20 sps:$4 sm:$0xff]  }
  0x32   : > { %836 = vmatprep.subr.bf16.mxu0 %v1544_v35  ;;  %941 = vmatpush2.bf16.msra.mxu1 %v1543_v36  ;;  %v1621_v35 = vld [vmem:[%s1667_s14 + $0x288] ss:$20 sps:$4 sm:$0xff]   ;;  %v1626_v36 = vld [vmem:[%s1667_s14 + $0x2e0] ss:$0 sps:$4 sm:$0xff]  }
  0x33   : > { %942 = vmatprep.subr.bf16.mxu1 %v1547_v37  ;;  %v1620_v37 = vld [vmem:[%s1667_s14 + $0x38] ss:$20 sps:$4 sm:$0xff]  }
  0x35   : > { %837 = vmatpush2.bf16.msra.mxu0 %v1546_v38  ;;  %v1624_v38 = vld [vmem:[%s1667_s14 + $0x150] ss:$20 sps:$4 sm:$0xff]  }
  0x36   : > { %838 = vmatprep.subr.bf16.mxu0 %v1550_v39  ;;  %943 = vmatpush2.bf16.msra.mxu1 %v1549_v40  ;;  %v1625_v39 = vld [vmem:[%s1667_s14 + $0x10] ss:$20 sps:$4 sm:$0xff]   ;;  %v816_v40 = vsel %vm802_vm0, %v1626_v36, 0 }
  0x37   : > { %944 = vmatprep.subr.bf16.mxu1 %v1553_v41  ;;  %v1627_v41 = vld [vmem:[%s1667_s14 + $0x2b8] ss:$20 sps:$4 sm:$0xff]  }
  0x39   : > { %839 = vmatpush2.bf16.msra.mxu0 %v1552_v42  ;;  %v1628_v42 = vld [vmem:[%s1667_s14 + $0x290] ss:$20 sps:$4 sm:$0xff]  }
  0x3a   : > { %840 = vmatprep.subr.bf16.mxu0 %v1556_v43  ;;  %945 = vmatpush2.bf16.msra.mxu1 %v1555_v44 }
  0x3b   : > { %946 = vmatprep.subr.bf16.mxu1 %v1559_v45 }
  0x3d   : > { %841 = vmatpush2.bf16.msra.mxu0 %v1558_v46 }
  0x3e   : > { %842 = vmatprep.subr.bf16.mxu0 %v1562_v48  ;;  %947 = vmatpush2.bf16.msra.mxu1 %v1561_v49 }
  0x3f   : > { %948 = vmatprep.subr.bf16.mxu1 %v1565_v50 }
  0x41   : > { %843 = vmatpush2.bf16.msra.mxu0 %v1564_v51 }
  0x42   : > { %844 = vmatprep.subr.bf16.mxu0 %v1568_v52  ;;  %949 = vmatpush2.bf16.msra.mxu1 %v1567_v53 }
  0x43   : > { %950 = vmatprep.subr.bf16.mxu1 %v1571_v55 }
  0x45   : > { %845 = vmatpush2.bf16.msra.mxu0 %v1570_v54 }
  0x46   : > { %846 = vmatprep.subr.bf16.mxu0 %v1574_v57  ;;  %951 = vmatpush2.bf16.msra.mxu1 %v1573_v56 }
  0x47   : > { %952 = vmatprep.subr.bf16.mxu1 %v1577_v59 }
  0x49   : > { %847 = vmatpush2.bf16.msra.mxu0 %v1576_v58 }
  0x4a   : > { %848 = vmatprep.subr.bf16.mxu0 %v1580_v61  ;;  %953 = vmatpush2.bf16.msra.mxu1 %v1579_v62 }
  0x4b   : > { %954 = vmatprep.subr.bf16.mxu1 %v1583_v63 }
  0x4d   : > { %849 = vmatpush2.bf16.msra.mxu0 %v1582_v1 }
  0x4e   : > { %1400 = vmatprep.subr.msk.bf16.mxu0 %vm802_vm0, %v1396_v3  ;;  %955 = vmatpush2.bf16.msra.mxu1 %v1585_v2 }
  0x4f   : > { %1434 = vmatprep.subr.bf16.mxu1 %v1591_v5 }
  0x50   : > { %851 = vmatmul.mubr.bf16.vlgmr.msra.gmra.mxu0 %v1746_v4 }
  0x51   : > { %882 = vmatpush1.bf16.msra.mxu0 %v804_v6  ;;  %860 = vmatprep.mubr.bf16.mxu0 %v1752_v8 }
  0x52   : > { %957 = vmatmul.mubr.bf16.vlgmr.msra.gmra.mxu1 %v1746_v4  ;;  %883 = vmatprep.subr.bf16.mxu0 %v1596_v9 }
  0x53   : > { %1435 = vmatpush3.bf16.msra.mxu1 %v1592_v7  ;;  %966 = vmatprep.mubr.bf16.mxu1 %v1752_v8 }
  0x54   : > { %1436 = vmatprep.subr.bf16.mxu1 %v1593_v10 }
  0x55   : > { %884 = vmatpush1.bf16.msra.mxu0 %v1594_v11 }
  0x56   : > { %885 = vmatprep.subr.bf16.mxu0 %v1605_v13 }
  0x57   : > { %1437 = vmatpush3.bf16.msra.mxu1 %v1597_v12 }
  0x58   : > { %861 = vmatmul.mubr.bf16.gmra.mxu0 %v1764_v14  ;;  %1438 = vmatprep.subr.bf16.mxu1 %v1601_v16 }
  0x59   : > { %886 = vmatpush1.bf16.msra.mxu0 %v1603_v17  ;;  %903 = vmatprep.mubr.bf16.mxu0 %v1637_v21 }
  0x5a   : > { %1403 = vmatprep.subr.msk.bf16.mxu0 %vm802_vm0, %v1398_v18  ;;  %967 = vmatmul.mubr.bf16.gmra.mxu1 %v1764_v14 }
  0x5b   : > { %1439 = vmatpush3.bf16.msra.mxu1 %v1602_v19  ;;  %1062 = vmatprep.mubr.bf16.mxu1 %v1723_v47 }
  0x5c   : > { %1440 = vmatprep.subr.bf16.mxu1 %v1606_v20 }
  0x5f   : > { %1441 = vmatpush3.bf16.msra.mxu1 %v1607_v23 }
  0x60   : > { %1401 = vmatmul.mubr.msk.bf16.vlgmr.msra.gmra.mxu0 %vm795_vm1, %v1608_v24  ;;  %1442 = vmatprep.subr.bf16.mxu1 %v1611_v25 }
  0x61   : > { %988 = vmatpush1.bf16.msra.mxu0 %v810_v26  ;;  %913 = vmatprep.mubr.bf16.mxu0 %v1637_v21 }
  0x62   : > { %989 = vmatprep.subr.bf16.mxu0 %v1616_v27 }
  0x63   : > { %1443 = vmatpush3.bf16.msra.mxu1 %v1612_v28 }
  0x64   : > { %1444 = vmatprep.subr.bf16.mxu1 %v1613_v29 }
  0x65   : > { %990 = vmatpush1.bf16.msra.mxu0 %v1614_v30 }
  0x66   : > { %991 = vmatprep.subr.bf16.mxu0 %v1623_v31 }
  0x67   : > { %1445 = vmatpush3.bf16.msra.mxu1 %v1617_v32 }
  0x68   : > { %1402 = vmatmul.mubr.msk.bf16.gmra.mxu0 %vm795_vm1, %v1618_v33  ;;  %1446 = vmatprep.subr.bf16.mxu1 %v1619_v34 }
  0x69   : > { %992 = vmatpush1.bf16.msra.mxu0 %v1621_v35  ;;  %1009 = vmatprep.mubr.bf16.mxu0 %v1637_v21 }
  0x6a   : > { %1477 = vmatprep.subr.msk.bf16.mxu0 %vm802_vm0, %v1626_v36 }
  0x6b   : > { %1447 = vmatpush3.bf16.msra.mxu1 %v1620_v37 }
  0x6c   : > { %1448 = vmatprep.subr.bf16.mxu1 %v1624_v38 }
  0x6f   : > { %1449 = vmatpush3.bf16.msra.mxu1 %v1625_v39 }
  0x70   : > { %1404 = vmatmul.mubr.msk.bf16.vlgmr.msra.gmra.mxu0 %vm795_vm1, %v1608_v24 }
  0x71   : > { %1468 = vmatpush3.bf16.msra.mxu0 %v816_v40  ;;  %1019 = vmatprep.mubr.bf16.mxu0 %v1637_v21 }
  0x72   : > { %1063 = vmatmul.mubr.bf16.vlgmr.msra.gmra.mxu1 %v1746_v4  ;;  %1469 = vmatprep.subr.bf16.mxu0 %v1627_v41 }
  0x73   : > { %1070 = vmatprep.mubr.bf16.mxu1 %v1752_v8 }
  0x75   : > { %1470 = vmatpush3.bf16.msra.mxu0 %v1627_v41 }
  0x76   : > { %1471 = vmatprep.subr.bf16.mxu0 %v1628_v42 }
  0x78   : > { %1405 = vmatmul.mubr.msk.bf16.gmra.mxu0 %vm795_vm1, %v1618_v33 }
  0x79   : > { %1472 = vmatpush3.bf16.msra.mxu0 %v1628_v42  ;;  %1473 = vmatprep.mubr.msk.bf16.mxu0 %vm795_vm1, %v1608_v24 }
  0x7a   : > { %1071 = vmatmul.mubr.bf16.gmra.mxu1 %v1764_v14 }
  0x80   : > { %1474 = vmatmul.mubr.msk.bf16.vlgmr.msra.gmra.mxu0 %vm795_vm1, %v1618_v33 }
 0x110   : > { %v852_v43 = vpop.f32.mrf.mxu0 }
 0x112   : > { %v854_v44 = vpop.f32.mrf.mxu0  ;;  %v958_v45 = vpop.f32.mrf.mxu1 }
 0x114   : > { %v856_v46 = vpop.f32.mrf.mxu0  ;;  %v960_v48 = vpop.f32.mrf.mxu1 }
 0x116   : > { %v858_v47 = vpop.f32.mrf.mxu0  ;;  %v962_v51 = vpop.f32.mrf.mxu1 }
 0x118   : > { %v862_v49 = vpop.f32.mrf.mxu0  ;;  %v964_v54 = vpop.f32.mrf.mxu1 }
 0x11a   : > { %v864_v50 = vpop.f32.mrf.mxu0  ;;  %v968_v58 = vpop.f32.mrf.mxu1 }
 0x11c   : > { %v866_v52 = vpop.f32.mrf.mxu0  ;;  %v970_v1 = vpop.f32.mrf.mxu1 }
 0x11e   : > { %v868_v53 = vpop.f32.mrf.mxu0  ;;  %v972_v9 = vpop.f32.mrf.mxu1 }
 0x120   : > { %v905_v55 = vpop.f32.mrf.mxu0  ;;  %v974_v17 = vpop.f32.mrf.mxu1 }
 0x121   : > { %v906_v56 = vadd.f32 %v905_v55, %v852_v43 }
 0x122   : > { %v907_v57 = vpop.f32.mrf.mxu0 }
 0x123   : > { %v908_v59 = vadd.f32 %v907_v57, %v854_v44  ;;  %v1128_v61 = vmax.f32 %v906_v56, 0.0 }
 0x124   : > { %v909_v60 = vpop.f32.mrf.mxu0 }
 0x125   : > { %v1129_v62 = vmax.f32 %v908_v59, 0.0  ;;  %v910_v63 = vadd.f32 %v909_v60, %v856_v46 }
 0x126   : > { %v911_v0 = vpop.f32.mrf.mxu0 }
 0x127   : > { %v1422_v2 = vpack.c.bf16 %v1129_v62, %v1128_v61  ;;  %v912_v3 = vadd.f32 %v911_v0, %v858_v47  ;;  %v1133_v5 = vmax.f32 %v910_v63, 0.0 }
 0x128   : > { %v915_v4 = vpop.f32.mrf.mxu0 }
 0x129   : > { %1212 = vst [vmem:[%s1810_s22] sm:$0xff] %v1422_v2  ;;  %v1134_v6 = vmax.f32 %v912_v3, 0.0  ;;  %v916_v7 = vadd.f32 %v915_v4, %v862_v49 }
 0x12a   : > { %v917_v8 = vpop.f32.mrf.mxu0 }
 0x12b   : > { %v1425_v10 = vpack.c.bf16 %v1134_v6, %v1133_v5  ;;  %v918_v11 = vadd.f32 %v917_v8, %v864_v50  ;;  %v1138_v13 = vmax.f32 %v916_v7, 0.0 }
 0x12c   : > { %v919_v12 = vpop.f32.mrf.mxu0 }
 0x12d   : > { %1215 = vst [vmem:[%s1810_s22 + $0x14] sm:$0xff] %v1425_v10  ;;  %v1139_v14 = vmax.f32 %v918_v11, 0.0  ;;  %v920_v15 = vadd.f32 %v919_v12, %v866_v52 }
 0x12e   : > { %v921_v16 = vpop.f32.mrf.mxu0 }
 0x12f   : > { %v1428_v18 = vpack.c.bf16 %v1139_v14, %v1138_v13  ;;  %v922_v19 = vadd.f32 %v921_v16, %v868_v53  ;;  %v1143_v21 = vmax.f32 %v920_v15, 0.0 }
 0x130   : > { %v1011_v20 = vpop.f32.mrf.mxu0 }
 0x131   : > { %1218 = vst [vmem:[%s1810_s22 + $0x28] sm:$0xff] %v1428_v18  ;;  %v1144_v22 = vmax.f32 %v922_v19, 0.0  ;;  %v1012_v23 = vadd.f32 %v1011_v20, %v958_v45 }
 0x132   : > { %v1450_v24 = vpop.f32.mrf.mxu1  ;;  %v1013_v25 = vpop.f32.mrf.mxu0 }
 0x133   : > { %v1431_v26 = vpack.c.bf16 %v1144_v22, %v1143_v21  ;;  %v1014_v27 = vadd.f32 %v1013_v25, %v960_v48  ;;  %v1130_v30 = vmax.f32 %v1012_v23, 0.0 }
 0x134   : > { %v1451_v28 = vpop.f32.mrf.mxu1  ;;  %v1015_v29 = vpop.f32.mrf.mxu0 }
 0x135   : > { %1221 = vst [vmem:[%s1810_s22 + $0x3c] sm:$0xff] %v1431_v26  ;;  %v1131_v31 = vmax.f32 %v1014_v27, 0.0  ;;  %v1016_v32 = vadd.f32 %v1015_v29, %v962_v51 }
 0x136   : > { %v1453_v33 = vpop.f32.mrf.mxu1  ;;  %v1017_v34 = vpop.f32.mrf.mxu0 }
 0x137   : > { %v1423_v35 = vpack.c.bf16 %v1131_v31, %v1130_v30  ;;  %v1018_v36 = vadd.f32 %v1017_v34, %v964_v54  ;;  %v1135_v39 = vmax.f32 %v1016_v32, 0.0 }
 0x138   : > { %v1454_v37 = vpop.f32.mrf.mxu1  ;;  %v1021_v38 = vpop.f32.mrf.mxu0 }
 0x139   : > { %1213 = vst [vmem:[%s1810_s22 + $0x8] sm:$0xff] %v1423_v35  ;;  %v1136_v40 = vmax.f32 %v1018_v36, 0.0  ;;  %v1022_v41 = vadd.f32 %v1021_v38, %v968_v58  ;;  %v1452_v58 = vadd.f32 %v1451_v28, %v1450_v24  ;;  %v1455_v4 = vadd.f32 %v1454_v37, %v1453_v33 }
 0x13a   : > { %v1456_v42 = vpop.f32.mrf.mxu1  ;;  %v1023_v43 = vpop.f32.mrf.mxu0 }
 0x13b   : > { %v1426_v44 = vpack.c.bf16 %v1136_v40, %v1135_v39  ;;  %v1024_v45 = vadd.f32 %v1023_v43, %v970_v1  ;;  %v1140_v48 = vmax.f32 %v1022_v41, 0.0 }
 0x13c   : > { %v1457_v46 = vpop.f32.mrf.mxu1  ;;  %v1025_v47 = vpop.f32.mrf.mxu0 }
 0x13d   : > { %1216 = vst [vmem:[%s1810_s22 + $0x1c] sm:$0xff] %v1426_v44  ;;  %v1141_v49 = vmax.f32 %v1024_v45, 0.0  ;;  %v1458_v50 = vadd.f32 %v1457_v46, %v1456_v42  ;;  %v1026_v51 = vadd.f32 %v1025_v47, %v972_v9 }
 0x13e   : > { %v1459_v52 = vpop.f32.mrf.mxu1  ;;  %v1027_v53 = vpop.f32.mrf.mxu0 }
 0x13f   : > { %v1429_v54 = vpack.c.bf16 %v1141_v49, %v1140_v48  ;;  %v1028_v55 = vadd.f32 %v1027_v53, %v974_v17  ;;  %v1145_v59 = vmax.f32 %v1026_v51, 0.0 }
 0x140   : > { %v1460_v56 = vpop.f32.mrf.mxu1  ;;  %v1475_v57 = vpop.f32.mrf.mxu0 }
 0x141   : > { %1219 = vst [vmem:[%s1810_s22 + $0x30] sm:$0xff] %v1429_v54  ;;  %v1146_v60 = vmax.f32 %v1028_v55, 0.0  ;;  %v1122_v61 = vadd.f32 %v1475_v57, %v1458_v50  ;;  %v1461_v0 = vadd.f32 %v1460_v56, %v1459_v52 }
 0x142   : > { %v1113_v62 = vpop.f32.mrf.mxu0 }
 0x143   : > { %v1432_v63 = vpack.c.bf16 %v1146_v60, %v1145_v59  ;;  %v1142_v1 = vmax.f32 %v1122_v61, 0.0  ;;  %v1114_v2 = vadd.f32 %v1452_v58, %v1113_v62 }
 0x144   : > { %v1476_v3 = vpop.f32.mrf.mxu0 }
 0x145   : > { %1222 = vst [vmem:[%s1810_s22 + $0x44] sm:$0xff] %v1432_v63  ;;  %v1430_v5 = vpack.c.bf16 %v1142_v1, %v1142_v1  ;;  %v1132_v6 = vmax.f32 %v1114_v2, 0.0  ;;  %v1125_v7 = vadd.f32 %v1476_v3, %v1461_v0 }
 0x146   : > { %v1116_v8 = vpop.f32.mrf.mxu0 }
 0x147   : > { %1220 = vst [vmem:[%s1810_s22 + $0x38] sm:$0xf] %v1430_v5  ;;  %v1424_v9 = vpack.c.bf16 %v1132_v6, %v1132_v6  ;;  %v1147_v10 = vmax.f32 %v1125_v7, 0.0  ;;  %v1117_v11 = vadd.f32 %v1455_v4, %v1116_v8 }
 0x149   : > { %1214 = vst [vmem:[%s1810_s22 + $0x10] sm:$0xf] %v1424_v9  ;;  %v1433_v12 = vpack.c.bf16 %v1147_v10, %v1147_v10  ;;  %v1137_v13 = vmax.f32 %v1117_v11, 0.0 }
 0x14b   : > { %1223 = vst [vmem:[%s1810_s22 + $0x4c] sm:$0xf] %v1433_v12  ;;  %v1427_v14 = vpack.c.bf16 %v1137_v13, %v1137_v13 }
 0x14d   : > { %1217 = vst [vmem:[%s1810_s22 + $0x24] sm:$0xf] %v1427_v14 }
 0x14e PF: > { %s12_s9 = sadd.s32 1, %s1635_s9  }
 0x14f   : > { %p9_p4 = scmp.ge.s32.totalorder %s12_s9, 4  }
 0x151   :  { %11 = sbr.rel (!%p9_p4) target bundleno = 1 (0x1), region = 61 }

// kernel: decoder_forward.8
= control target key start
LH: loop header
LB: loop body
LE: loop exit
PB: predicated region body
PF: predicated region fallthrough
CT: control target
= control target key end

     0   :  { %s878_s9 = smov 0   ;;  %s965_s0 = inlined_call_operand.vmem [shape: bf16[4,16,40], index: 0, kind: input, shape index: {}]   ;;  %s966_s1 = inlined_call_operand.vmem [shape: bf16[4,40,1280], index: 1, kind: input, shape index: {}]   ;;  %s967_s2 = inlined_call_operand.vmem [shape: bf16[4,16,1280], index: 2, kind: output, shape index: {}]  }
   0x1 LB: > { %s729_s10 = sadd.s32 4294967295, %s860_s9   ;;  %p733_p0 = scmp.ge.s32.totalorder %s860_s9, 1  ;;  %s860_s9 = sphi %s878_s9, %s12_s9  }
   0x2   : > { %p122_p1 = scmp.lt.s32.totalorder %s860_s9, 5 }
   0x4   : > { %p123_p2 = pnand %p733_p0, %p122_p1 }
   0x5   : > { %p149_p3 = scmp.lt.s32.totalorder (!%p123_p2), %s729_s10, 3 }
   0x6   : > { %126 = sbr.rel (%p123_p2) target bundleno = 258 (0x102), region = 28 }
   0xb   : > { %v862_v0 = vmov 0   ;;  %s969_s10 = smov (!%p149_p3, %s729_s10), 3  ;;  %vm326_vm0 = vcmask 1043456   ;;  %vm322_vm1 = vcmask 326656  }
   0xc   : > { %389 = vmatprep.mubr.bf16.mxu0 %v862_v0  ;;  %432 = vmatprep.mubr.bf16.mxu1 %v862_v0  ;;  %s802_s11 = smul.u32 200, %s969_s10  ;;  %s791_s12 = sshll.u32 %s969_s10, 3 }
   0xd   : > { %s895_s15 = scalar_lea.vmem %s965_s0, %s791_s12  ;;  %s803_s19 = smul.u32 80, %s969_s10 }
   0xe   : > { %s900_s18 = scalar_lea.vmem %s966_s1, %s802_s11  ;;  %v826_v23 = vld [vmem:[%s895_s15] sm:$0xff]  }
   0xf   : > { %v187_v1 = vld [vmem:[%s900_s18 + $0xa0] sm:$0xff]  ;;  %v815_v4 = vld [vmem:[%s900_s18 + $0x54] ss:$40 sps:$4 sm:$0xff]   ;;  %v188_v5 = vld [vmem:[%s900_s18 + $0xa8] sm:$0xff]  ;;  %s950_s22 = scalar_lea.vmem %s967_s2, %s803_s19 }
  0x10   : > { %v760_v2 = vcombine.high %v187_v1, %v187_v1  ;;  %v759_v3 = vcombine.low %v187_v1, %v187_v1  ;;  %v817_v6 = vld [vmem:[%s900_s18 + $0x50] ss:$40 sps:$4 sm:$0xff]   ;;  %v762_v7 = vcombine.high %v188_v5, %v188_v5  ;;  %v761_v8 = vcombine.low %v188_v5, %v188_v5  ;;  %v820_v10 = vld [vmem:[%s900_s18 + $0x4] ss:$40 sps:$4 sm:$0xff]   ;;  %v822_v17 = vld [vmem:[%s900_s18] ss:$40 sps:$4 sm:$0xff]  }
  0x11   : > { %v823_v12 = vld [vmem:[%s900_s18 + $0x5c] ss:$40 sps:$4 sm:$0xff]   ;;  %v825_v13 = vld [vmem:[%s900_s18 + $0x58] ss:$40 sps:$4 sm:$0xff]   ;;  %v189_v14 = vld [vmem:[%s900_s18 + $0xb0] sm:$0xff] }
  0x12   : > { %769 = vmatprep.subr.msk.bf16.mxu0 %vm326_vm0, %v760_v2  ;;  %v328_v9 = vsel %vm326_vm0, %v759_v3, 0  ;;  %771 = vmatprep.subr.msk.bf16.mxu1 %vm326_vm0, %v762_v7  ;;  %v334_v11 = vsel %vm326_vm0, %v761_v8, 0  ;;  %v829_v15 = vld [vmem:[%s900_s18 + $0xc] ss:$40 sps:$4 sm:$0xff]   ;;  %v190_v16 = vld [vmem:[%s900_s18 + $0xb8] sm:$0xff]  ;;  %v764_v18 = vcombine.high %v189_v14, %v189_v14  ;;  %v763_v19 = vcombine.low %v189_v14, %v189_v14  ;;  %v191_v31 = vld [vmem:[%s900_s18 + $0xc0] sm:$0xff] }
  0x13   : > { %368 = vmatpush1.bf16.msra.mxu0 %v328_v9  ;;  %411 = vmatpush1.bf16.msra.mxu1 %v334_v11  ;;  %v831_v20 = vld [vmem:[%s900_s18 + $0x8] ss:$40 sps:$4 sm:$0xff]   ;;  %v766_v21 = vcombine.high %v190_v16, %v190_v16  ;;  %v765_v22 = vcombine.low %v190_v16, %v190_v16  ;;  %v834_v25 = vld [vmem:[%s900_s18 + $0x64] ss:$40 sps:$4 sm:$0xff]   ;;  %v839_v29 = vld [vmem:[%s900_s18 + $0x14] ss:$40 sps:$4 sm:$0xff]   ;;  %v768_v34 = vcombine.high %v191_v31, %v191_v31 }
  0x14   : > { %369 = vmatprep.subr.bf16.mxu0 %v815_v4  ;;  %412 = vmatprep.subr.bf16.mxu1 %v823_v12  ;;  %v340_v24 = vsel %vm326_vm0, %v763_v19, 0  ;;  %v842_v27 = vld [vmem:[%s900_s18 + $0x6c] ss:$40 sps:$4 sm:$0xff]   ;;  %v832_v28 = vld [vmem:[%s900_s18 + $0x60] ss:$40 sps:$4 sm:$0xff]   ;;  %v767_v35 = vcombine.low %v191_v31, %v191_v31 }
  0x15   : > { %v346_v26 = vsel %vm326_vm0, %v765_v22, 0  ;;  %v840_v30 = vld [vmem:[%s900_s18 + $0x68] ss:$40 sps:$4 sm:$0xff]   ;;  %v847_v32 = vld [vmem:[%s900_s18 + $0x1c] ss:$40 sps:$4 sm:$0xff]  }
  0x16   : > { %v837_v33 = vld [vmem:[%s900_s18 + $0x10] ss:$40 sps:$4 sm:$0xff]   ;;  %v352_v37 = vsel %vm326_vm0, %v767_v35, 0  ;;  %v850_v38 = vld [vmem:[%s900_s18 + $0x74] ss:$40 sps:$4 sm:$0xff]  }
  0x17   : > { %370 = vmatpush1.bf16.msra.mxu0 %v817_v6  ;;  %413 = vmatpush1.bf16.msra.mxu1 %v825_v13  ;;  %v845_v36 = vld [vmem:[%s900_s18 + $0x18] ss:$40 sps:$4 sm:$0xff]   ;;  %v853_v40 = vld [vmem:[%s900_s18 + $0x24] ss:$40 sps:$4 sm:$0xff]  }
  0x18   : > { %371 = vmatprep.subr.bf16.mxu0 %v820_v10  ;;  %414 = vmatprep.subr.bf16.mxu1 %v829_v15  ;;  %v848_v39 = vld [vmem:[%s900_s18 + $0x70] ss:$40 sps:$4 sm:$0xff]   ;;  %v851_v41 = vld [vmem:[%s900_s18 + $0x20] ss:$40 sps:$4 sm:$0xff]  }
  0x1b   : > { %372 = vmatpush1.bf16.msra.mxu0 %v822_v17  ;;  %415 = vmatpush1.bf16.msra.mxu1 %v831_v20 }
  0x1c   : > { %773 = vmatprep.subr.msk.bf16.mxu0 %vm326_vm0, %v764_v18  ;;  %775 = vmatprep.subr.msk.bf16.mxu1 %vm326_vm0, %v766_v21 }
  0x1e   : > { %770 = vmatmul.mubr.msk.bf16.vlgmr.msra.gmra.mxu0 %vm322_vm1, %v826_v23  ;;  %772 = vmatmul.mubr.msk.bf16.vlgmr.msra.gmra.mxu1 %vm322_vm1, %v826_v23 }
  0x1f   : > { %454 = vmatpush1.bf16.msra.mxu0 %v340_v24  ;;  %497 = vmatpush1.bf16.msra.mxu1 %v346_v26 }
  0x20   : > { %455 = vmatprep.subr.bf16.mxu0 %v834_v25  ;;  %498 = vmatprep.subr.bf16.mxu1 %v842_v27 }
  0x21   : > { %475 = vmatprep.mubr.bf16.mxu0 %v862_v0  ;;  %518 = vmatprep.mubr.bf16.mxu1 %v862_v0 }
  0x23   : > { %456 = vmatpush1.bf16.msra.mxu0 %v832_v28  ;;  %499 = vmatpush1.bf16.msra.mxu1 %v840_v30 }
  0x24   : > { %457 = vmatprep.subr.bf16.mxu0 %v839_v29  ;;  %500 = vmatprep.subr.bf16.mxu1 %v847_v32 }
  0x27   : > { %458 = vmatpush1.bf16.msra.mxu0 %v837_v33  ;;  %501 = vmatpush1.bf16.msra.mxu1 %v845_v36 }
  0x28   : > { %777 = vmatprep.subr.msk.bf16.mxu0 %vm326_vm0, %v768_v34 }
  0x2a   : > { %774 = vmatmul.mubr.msk.bf16.vlgmr.msra.gmra.mxu0 %vm322_vm1, %v826_v23  ;;  %776 = vmatmul.mubr.msk.bf16.vlgmr.msra.gmra.mxu1 %vm322_vm1, %v826_v23 }
  0x2b   : > { %540 = vmatpush1.bf16.msra.mxu0 %v352_v37  ;;  %561 = vmatprep.mubr.bf16.mxu0 %v862_v0 }
  0x2c   : > { %541 = vmatprep.subr.bf16.mxu0 %v850_v38 }
  0x2f   : > { %542 = vmatpush1.bf16.msra.mxu0 %v848_v39 }
  0x30   : > { %543 = vmatprep.subr.bf16.mxu0 %v853_v40 }
  0x33   : > { %544 = vmatpush1.bf16.msra.mxu0 %v851_v41 }
  0x36   : > { %778 = vmatmul.mubr.msk.bf16.vlgmr.msra.gmra.mxu0 %vm322_vm1, %v826_v23 }
  0xde   : > { %v391_v42 = vpop.f32.mrf.mxu0  ;;  %v434_v44 = vpop.f32.mrf.mxu1 }
  0xdf   : > { %v572_v43 = vmax.f32 %v391_v42, 0.0  ;;  %v574_v46 = vmax.f32 %v434_v44, 0.0 }
  0xe0   : > { %v393_v45 = vpop.f32.mrf.mxu0  ;;  %v436_v48 = vpop.f32.mrf.mxu1 }
  0xe1   : > { %v573_v47 = vmax.f32 %v393_v45, 0.0  ;;  %v575_v50 = vmax.f32 %v436_v48, 0.0 }
  0xe2   : > { %v395_v49 = vpop.f32.mrf.mxu0  ;;  %v438_v52 = vpop.f32.mrf.mxu1 }
  0xe3   : > { %v792_v51 = vpack.c.bf16 %v573_v47, %v572_v43  ;;  %v793_v54 = vpack.c.bf16 %v575_v50, %v574_v46  ;;  %v584_v55 = vmax.f32 %v438_v52, 0.0  ;;  %v582_v56 = vmax.f32 %v395_v49, 0.0 }
  0xe4   : > { %v397_v53 = vpop.f32.mrf.mxu0  ;;  %v440_v58 = vpop.f32.mrf.mxu1 }
  0xe5   : > { %652 = vst [vmem:[%s950_s22] sm:$0xff] %v792_v51  ;;  %v583_v57 = vmax.f32 %v397_v53, 0.0  ;;  %653 = vst [vmem:[%s950_s22 + $0x8] sm:$0xff] %v793_v54  ;;  %v585_v59 = vmax.f32 %v440_v58, 0.0 }
  0xe7   : > { %v797_v60 = vpack.c.bf16 %v583_v57, %v582_v56  ;;  %v798_v61 = vpack.c.bf16 %v585_v59, %v584_v55 }
  0xe9   : > { %657 = vst [vmem:[%s950_s22 + $0x28] sm:$0xff] %v797_v60  ;;  %658 = vst [vmem:[%s950_s22 + $0x30] sm:$0xff] %v798_v61 }
  0xea   : > { %v477_v62 = vpop.f32.mrf.mxu0  ;;  %v520_v0 = vpop.f32.mrf.mxu1 }
  0xeb   : > { %v576_v63 = vmax.f32 %v477_v62, 0.0  ;;  %v578_v2 = vmax.f32 %v520_v0, 0.0 }
  0xec   : > { %v479_v1 = vpop.f32.mrf.mxu0  ;;  %v522_v4 = vpop.f32.mrf.mxu1 }
  0xed   : > { %v577_v3 = vmax.f32 %v479_v1, 0.0  ;;  %v579_v6 = vmax.f32 %v522_v4, 0.0 }
  0xee   : > { %v481_v5 = vpop.f32.mrf.mxu0  ;;  %v524_v8 = vpop.f32.mrf.mxu1 }
  0xef   : > { %v794_v7 = vpack.c.bf16 %v577_v3, %v576_v63  ;;  %v795_v10 = vpack.c.bf16 %v579_v6, %v578_v2  ;;  %v588_v11 = vmax.f32 %v524_v8, 0.0  ;;  %v586_v12 = vmax.f32 %v481_v5, 0.0 }
  0xf0   : > { %v483_v9 = vpop.f32.mrf.mxu0  ;;  %v526_v14 = vpop.f32.mrf.mxu1 }
  0xf1   : > { %654 = vst [vmem:[%s950_s22 + $0x10] sm:$0xff] %v794_v7  ;;  %v587_v13 = vmax.f32 %v483_v9, 0.0  ;;  %655 = vst [vmem:[%s950_s22 + $0x18] sm:$0xff] %v795_v10  ;;  %v589_v15 = vmax.f32 %v526_v14, 0.0 }
  0xf3   : > { %v799_v16 = vpack.c.bf16 %v587_v13, %v586_v12  ;;  %v800_v17 = vpack.c.bf16 %v589_v15, %v588_v11 }
  0xf5   : > { %659 = vst [vmem:[%s950_s22 + $0x38] sm:$0xff] %v799_v16  ;;  %660 = vst [vmem:[%s950_s22 + $0x40] sm:$0xff] %v800_v17 }
  0xf6   : > { %v563_v18 = vpop.f32.mrf.mxu0 }
  0xf7   : > { %v580_v20 = vmax.f32 %v563_v18, 0.0 }
  0xf8   : > { %v565_v19 = vpop.f32.mrf.mxu0 }
  0xf9   : > { %v581_v21 = vmax.f32 %v565_v19, 0.0 }
  0xfa   : > { %v567_v22 = vpop.f32.mrf.mxu0 }
  0xfb   : > { %v796_v23 = vpack.c.bf16 %v581_v21, %v580_v20  ;;  %v590_v25 = vmax.f32 %v567_v22, 0.0 }
  0xfc   : > { %v569_v24 = vpop.f32.mrf.mxu0 }
  0xfd   : > { %656 = vst [vmem:[%s950_s22 + $0x20] sm:$0xff] %v796_v23  ;;  %v591_v26 = vmax.f32 %v569_v24, 0.0 }
  0xff   : > { %v801_v27 = vpack.c.bf16 %v591_v26, %v590_v25 }
 0x101   : > { %661 = vst [vmem:[%s950_s22 + $0x48] sm:$0xff] %v801_v27 }
 0x102 PF: > { %s12_s9 = sadd.s32 1, %s860_s9  }
 0x103   : > { %p9_p4 = scmp.ge.s32.totalorder %s12_s9, 6  }
 0x105   :  { %11 = sbr.rel (!%p9_p4) target bundleno = 1 (0x1), region = 61 }

// kernel: decoder_forward.9
= control target key start
LH: loop header
LB: loop body
LE: loop exit
PB: predicated region body
PF: predicated region fallthrough
CT: control target
= control target key end

     0   :  { %s2841_s9 = smov 0   ;;  %s3172_s0 = inlined_call_operand.vmem [shape: bf16[4,8,72], index: 0, kind: input, shape index: {}]   ;;  %s3173_s1 = inlined_call_operand.vmem [shape: bf16[4,72,5120], index: 1, kind: input, shape index: {}]   ;;  %s3174_s2 = inlined_call_operand.vmem [shape: bf16[4,8,5120], index: 2, kind: output, shape index: {}]  }
   0x1 LB: > { %s2475_s10 = sadd.s32 4294967295, %s2823_s9   ;;  %p2479_p0 = scmp.ge.s32.totalorder %s2823_s9, 1  ;;  %s2823_s9 = sphi %s2841_s9, %s12_s9  }
   0x2   : > { %p121_p1 = scmp.lt.s32.totalorder %s2823_s9, 5 }
   0x4   : > { %p122_p2 = pnand %p2479_p0, %p121_p1 }
   0x5   : > { %p147_p3 = scmp.lt.s32.totalorder (!%p122_p2), %s2475_s10, 3 }
   0x6   : > { %125 = sbr.rel (%p122_p2) target bundleno = 418 (0x1a2), region = 28 }
   0xb   : > { %v2825_v0 = vmov 0   ;;  %s3176_s10 = smov (!%p147_p3, %s2475_s10), 3  ;;  %vm1247_vm0 = vcmask 1043456   ;;  %vm1243_vm1 = vcmask 588800  }
   0xc   : > { %1400 = vmatprep.mubr.bf16.mxu0 %v2825_v0  ;;  %1441 = vmatprep.mubr.bf16.mxu1 %v2825_v0  ;;  %s2765_s11 = smul.u32 1440, %s3176_s10  ;;  %s2480_s15 = sshll.u32 %s3176_s10, 2 }
   0xd   : > { %s2887_s18 = scalar_lea.vmem %s3172_s0, %s2480_s15  ;;  %s2766_s19 = smul.u32 160, %s3176_s10 }
   0xe   : > { %s2857_s14 = scalar_lea.vmem %s3173_s1, %s2765_s11  ;;  %v2894_v51 = vld [vmem:[%s2887_s18] sm:$0xf] }
   0xf   : > { %v323_v1 = vld [vmem:[%s2857_s14 + $0x500] sm:$0xff]  ;;  %v324_v2 = vld [vmem:[%s2857_s14 + $0x508] sm:$0xff]  ;;  %v325_v39 = vld [vmem:[%s2857_s14 + $0x510] sm:$0xff]  ;;  %s3147_s22 = scalar_lea.vmem %s3174_s2, %s2766_s19 }
  0x10   : > { %v283_v3 = vld [vmem:[%s2857_s14 + $0x3c0] sm:$0xff]  ;;  %v2644_v4 = vcombine.high %v323_v1, %v323_v1  ;;  %v2646_v5 = vcombine.high %v324_v2, %v324_v2  ;;  %v2643_v6 = vcombine.low %v323_v1, %v323_v1  ;;  %v2645_v7 = vcombine.low %v324_v2, %v324_v2  ;;  %v284_v9 = vld [vmem:[%s2857_s14 + $0x3c8] sm:$0xff]  ;;  %v326_v40 = vld [vmem:[%s2857_s14 + $0x518] sm:$0xff] }
  0x11   : > { %v303_v8 = vld [vmem:[%s2857_s14 + $0x460] sm:$0xff]  ;;  %v304_v10 = vld [vmem:[%s2857_s14 + $0x468] sm:$0xff]  ;;  %v2648_v43 = vcombine.high %v325_v39, %v325_v39  ;;  %v2650_v44 = vcombine.high %v326_v40, %v326_v40  ;;  %v2647_v45 = vcombine.low %v325_v39, %v325_v39  ;;  %v2649_v46 = vcombine.low %v326_v40, %v326_v40  ;;  %v285_v47 = vld [vmem:[%s2857_s14 + $0x3d0] sm:$0xff] }
  0x12   : > { %v2604_v11 = vcombine.high %v283_v3, %v303_v8  ;;  %v2606_v12 = vcombine.high %v284_v9, %v304_v10  ;;  %v243_v13 = vld [vmem:[%s2857_s14 + $0x280] sm:$0xff]  ;;  %v244_v15 = vld [vmem:[%s2857_s14 + $0x288] sm:$0xff]  ;;  %2683 = vmatprep.subr.msk.bf16.mxu0 %vm1247_vm0, %v2644_v4  ;;  %2685 = vmatprep.subr.msk.bf16.mxu1 %vm1247_vm0, %v2646_v5  ;;  %v1249_v16 = vsel %vm1247_vm0, %v2643_v6, 0  ;;  %v1255_v17 = vsel %vm1247_vm0, %v2645_v7, 0  ;;  %v305_v48 = vld [vmem:[%s2857_s14 + $0x470] sm:$0xff] }
  0x13   : > { %v263_v14 = vld [vmem:[%s2857_s14 + $0x320] sm:$0xff]  ;;  %v264_v18 = vld [vmem:[%s2857_s14 + $0x328] sm:$0xff]  ;;  %1375 = vmatpush1.bf16.msra.mxu0 %v1249_v16  ;;  %1416 = vmatpush1.bf16.msra.mxu1 %v1255_v17  ;;  %v2603_v19 = vcombine.low %v283_v3, %v303_v8  ;;  %v2605_v20 = vcombine.low %v284_v9, %v304_v10  ;;  %v286_v49 = vld [vmem:[%s2857_s14 + $0x3d8] sm:$0xff]  ;;  %v1261_v52 = vsel %vm1247_vm0, %v2647_v45, 0  ;;  %v1267_v53 = vsel %vm1247_vm0, %v2649_v46, 0 }
  0x14   : > { %1376 = vmatprep.subr.bf16.mxu0 %v2604_v11  ;;  %1417 = vmatprep.subr.bf16.mxu1 %v2606_v12  ;;  %v2564_v21 = vcombine.high %v243_v13, %v263_v14  ;;  %v2566_v22 = vcombine.high %v244_v15, %v264_v18  ;;  %v203_v23 = vld [vmem:[%s2857_s14 + $0x140] sm:$0xff]  ;;  %v204_v25 = vld [vmem:[%s2857_s14 + $0x148] sm:$0xff]  ;;  %v2563_v27 = vcombine.low %v243_v13, %v263_v14  ;;  %v306_v50 = vld [vmem:[%s2857_s14 + $0x478] sm:$0xff] }
  0x15   : > { %v223_v24 = vld [vmem:[%s2857_s14 + $0x1e0] sm:$0xff]  ;;  %v224_v26 = vld [vmem:[%s2857_s14 + $0x1e8] sm:$0xff]  ;;  %v2565_v28 = vcombine.low %v244_v15, %v264_v18  ;;  %v2608_v54 = vcombine.high %v285_v47, %v305_v48  ;;  %v2610_v55 = vcombine.high %v286_v49, %v306_v50  ;;  %v245_v56 = vld [vmem:[%s2857_s14 + $0x290] sm:$0xff]  ;;  %v2607_v60 = vcombine.low %v285_v47, %v305_v48 }
  0x16   : > { %v2524_v29 = vcombine.high %v203_v23, %v223_v24  ;;  %v2526_v30 = vcombine.high %v204_v25, %v224_v26  ;;  %v163_v31 = vld [vmem:[%s2857_s14] sm:$0xff]  ;;  %v164_v33 = vld [vmem:[%s2857_s14 + $0x8] sm:$0xff]  ;;  %v2523_v35 = vcombine.low %v203_v23, %v223_v24  ;;  %v2525_v36 = vcombine.low %v204_v25, %v224_v26  ;;  %v265_v57 = vld [vmem:[%s2857_s14 + $0x330] sm:$0xff] }
  0x17   : > { %1377 = vmatpush1.bf16.msra.mxu0 %v2603_v19  ;;  %1418 = vmatpush1.bf16.msra.mxu1 %v2605_v20  ;;  %v183_v32 = vld [vmem:[%s2857_s14 + $0xa0] sm:$0xff]  ;;  %v184_v34 = vld [vmem:[%s2857_s14 + $0xa8] sm:$0xff]  ;;  %v246_v58 = vld [vmem:[%s2857_s14 + $0x298] sm:$0xff]  ;;  %v2609_v61 = vcombine.low %v286_v49, %v306_v50  ;;  %v2568_v62 = vcombine.high %v245_v56, %v265_v57  ;;  %v2567_v5 = vcombine.low %v245_v56, %v265_v57 }
  0x18   : > { %1378 = vmatprep.subr.bf16.mxu0 %v2564_v21  ;;  %1419 = vmatprep.subr.bf16.mxu1 %v2566_v22  ;;  %v2484_v37 = vcombine.high %v163_v31, %v183_v32  ;;  %v2486_v38 = vcombine.high %v164_v33, %v184_v34  ;;  %v2483_v41 = vcombine.low %v163_v31, %v183_v32  ;;  %v266_v59 = vld [vmem:[%s2857_s14 + $0x338] sm:$0xff]  ;;  %v205_v1 = vld [vmem:[%s2857_s14 + $0x150] sm:$0xff]  ;;  %v327_v17 = vld [vmem:[%s2857_s14 + $0x520] sm:$0xff] }
  0x19   : > { %v2485_v42 = vcombine.low %v164_v33, %v184_v34  ;;  %v2570_v63 = vcombine.high %v246_v58, %v266_v59  ;;  %v225_v2 = vld [vmem:[%s2857_s14 + $0x1f0] sm:$0xff]  ;;  %v206_v3 = vld [vmem:[%s2857_s14 + $0x158] sm:$0xff]  ;;  %v2569_v6 = vcombine.low %v246_v58, %v266_v59  ;;  %v328_v18 = vld [vmem:[%s2857_s14 + $0x528] sm:$0xff]  ;;  %v2652_v21 = vcombine.high %v327_v17, %v327_v17 }
  0x1a   : > { %v226_v4 = vld [vmem:[%s2857_s14 + $0x1f8] sm:$0xff]  ;;  %v2528_v7 = vcombine.high %v205_v1, %v225_v2  ;;  %v165_v9 = vld [vmem:[%s2857_s14 + $0x10] sm:$0xff]  ;;  %v2527_v13 = vcombine.low %v205_v1, %v225_v2  ;;  %v2654_v22 = vcombine.high %v328_v18, %v328_v18  ;;  %v2651_v23 = vcombine.low %v327_v17, %v327_v17  ;;  %v287_v25 = vld [vmem:[%s2857_s14 + $0x3e0] sm:$0xff] }
  0x1b   : > { %1379 = vmatpush1.bf16.msra.mxu0 %v2563_v27  ;;  %1420 = vmatpush1.bf16.msra.mxu1 %v2565_v28  ;;  %v2530_v8 = vcombine.high %v206_v3, %v226_v4  ;;  %v185_v10 = vld [vmem:[%s2857_s14 + $0xb0] sm:$0xff]  ;;  %v166_v11 = vld [vmem:[%s2857_s14 + $0x18] sm:$0xff]  ;;  %v2529_v14 = vcombine.low %v206_v3, %v226_v4  ;;  %v2653_v24 = vcombine.low %v328_v18, %v328_v18  ;;  %v307_v26 = vld [vmem:[%s2857_s14 + $0x480] sm:$0xff] }
  0x1c   : > { %1380 = vmatprep.subr.bf16.mxu0 %v2524_v29  ;;  %1421 = vmatprep.subr.bf16.mxu1 %v2526_v30  ;;  %v186_v12 = vld [vmem:[%s2857_s14 + $0xb8] sm:$0xff]  ;;  %v2488_v15 = vcombine.high %v165_v9, %v185_v10  ;;  %v2487_v19 = vcombine.low %v165_v9, %v185_v10  ;;  %v288_v27 = vld [vmem:[%s2857_s14 + $0x3e8] sm:$0xff]  ;;  %v1273_v29 = vsel %vm1247_vm0, %v2651_v23, 0  ;;  %v2612_v31 = vcombine.high %v287_v25, %v307_v26  ;;  %v247_v33 = vld [vmem:[%s2857_s14 + $0x2a0] sm:$0xff] }
  0x1d   : > { %v2490_v16 = vcombine.high %v166_v11, %v186_v12  ;;  %v2489_v20 = vcombine.low %v166_v11, %v186_v12  ;;  %v308_v28 = vld [vmem:[%s2857_s14 + $0x488] sm:$0xff]  ;;  %v1279_v30 = vsel %vm1247_vm0, %v2653_v24, 0  ;;  %v267_v34 = vld [vmem:[%s2857_s14 + $0x340] sm:$0xff]  ;;  %v329_v58 = vld [vmem:[%s2857_s14 + $0x530] sm:$0xff] }
  0x1e   : > { %v2614_v32 = vcombine.high %v288_v27, %v308_v28  ;;  %v2572_v39 = vcombine.high %v247_v33, %v267_v34  ;;  %v2571_v45 = vcombine.low %v247_v33, %v267_v34  ;;  %v167_v49 = vld [vmem:[%s2857_s14 + $0x20] sm:$0xff]  ;;  %v330_v59 = vld [vmem:[%s2857_s14 + $0x538] sm:$0xff]  ;;  %v2655_v1 = vcombine.low %v329_v58, %v329_v58  ;;  %v289_v3 = vld [vmem:[%s2857_s14 + $0x3f0] sm:$0xff] }
  0x1f   : > { %1381 = vmatpush1.bf16.msra.mxu0 %v2523_v35  ;;  %1422 = vmatpush1.bf16.msra.mxu1 %v2525_v36  ;;  %v248_v35 = vld [vmem:[%s2857_s14 + $0x2a8] sm:$0xff]  ;;  %v187_v50 = vld [vmem:[%s2857_s14 + $0xc0] sm:$0xff]  ;;  %v2657_v2 = vcombine.low %v330_v59, %v330_v59  ;;  %v309_v4 = vld [vmem:[%s2857_s14 + $0x490] sm:$0xff] }
  0x20   : > { %1382 = vmatprep.subr.bf16.mxu0 %v2484_v37  ;;  %1423 = vmatprep.subr.bf16.mxu1 %v2486_v38  ;;  %v268_v36 = vld [vmem:[%s2857_s14 + $0x348] sm:$0xff]  ;;  %v2611_v37 = vcombine.low %v287_v25, %v307_v26  ;;  %v2613_v38 = vcombine.low %v288_v27, %v308_v28  ;;  %v2492_v56 = vcombine.high %v167_v49, %v187_v50  ;;  %v249_v11 = vld [vmem:[%s2857_s14 + $0x2b0] sm:$0xff] }
  0x21   : > { %v2574_v40 = vcombine.high %v248_v35, %v268_v36  ;;  %v2573_v46 = vcombine.low %v248_v35, %v268_v36  ;;  %v2616_v9 = vcombine.high %v289_v3, %v309_v4  ;;  %v269_v12 = vld [vmem:[%s2857_s14 + $0x350] sm:$0xff]  ;;  %v331_v35 = vld [vmem:[%s2857_s14 + $0x540] sm:$0xff]  ;;  %v332_v36 = vld [vmem:[%s2857_s14 + $0x548] sm:$0xff] }
  0x22   : > { %v2576_v17 = vcombine.high %v249_v11, %v269_v12  ;;  %v2575_v23 = vcombine.low %v249_v11, %v269_v12  ;;  %v169_v27 = vld [vmem:[%s2857_s14 + $0x30] sm:$0xff] }
  0x23   : > { %1383 = vmatpush1.bf16.msra.mxu0 %v2483_v41  ;;  %1424 = vmatpush1.bf16.msra.mxu1 %v2485_v42  ;;  %v207_v41 = vld [vmem:[%s2857_s14 + $0x160] sm:$0xff]  ;;  %v189_v28 = vld [vmem:[%s2857_s14 + $0xd0] sm:$0xff] }
  0x24   : > { %2687 = vmatprep.subr.msk.bf16.mxu0 %vm1247_vm0, %v2648_v43  ;;  %2689 = vmatprep.subr.msk.bf16.mxu1 %vm1247_vm0, %v2650_v44  ;;  %v227_v42 = vld [vmem:[%s2857_s14 + $0x200] sm:$0xff]  ;;  %v208_v43 = vld [vmem:[%s2857_s14 + $0x168] sm:$0xff]  ;;  %v2496_v33 = vcombine.high %v169_v27, %v189_v28 }
  0x25   : > { %v228_v44 = vld [vmem:[%s2857_s14 + $0x208] sm:$0xff]  ;;  %v2532_v47 = vcombine.high %v207_v41, %v227_v42 }
  0x26   : > { %2684 = vmatmul.mubr.msk.bf16.vlgmr.msra.gmra.mxu0 %vm1243_vm1, %v2894_v51  ;;  %2686 = vmatmul.mubr.msk.bf16.vlgmr.msra.gmra.mxu1 %vm1243_vm1, %v2894_v51  ;;  %v2534_v48 = vcombine.high %v208_v43, %v228_v44 }
  0x27   : > { %1457 = vmatpush1.bf16.msra.mxu0 %v1261_v52  ;;  %1498 = vmatpush1.bf16.msra.mxu1 %v1267_v53  ;;  %v168_v52 = vld [vmem:[%s2857_s14 + $0x28] sm:$0xff] }
  0x28   : > { %1458 = vmatprep.subr.bf16.mxu0 %v2608_v54  ;;  %1499 = vmatprep.subr.bf16.mxu1 %v2610_v55  ;;  %v188_v53 = vld [vmem:[%s2857_s14 + $0xc8] sm:$0xff]  ;;  %v2531_v54 = vcombine.low %v207_v41, %v227_v42  ;;  %v2533_v55 = vcombine.low %v208_v43, %v228_v44  ;;  %v2659_v41 = vcombine.low %v331_v35, %v331_v35  ;;  %v291_v43 = vld [vmem:[%s2857_s14 + $0x400] sm:$0xff] }
  0x29   : > { %1482 = vmatprep.mubr.bf16.mxu0 %v2825_v0  ;;  %1523 = vmatprep.mubr.bf16.mxu1 %v2825_v0  ;;  %v2494_v57 = vcombine.high %v168_v52, %v188_v53  ;;  %v2661_v42 = vcombine.low %v332_v36, %v332_v36  ;;  %v311_v44 = vld [vmem:[%s2857_s14 + $0x4a0] sm:$0xff] }
  0x2b   : > { %1459 = vmatpush1.bf16.msra.mxu0 %v2607_v60  ;;  %1500 = vmatpush1.bf16.msra.mxu1 %v2609_v61  ;;  %v2491_v60 = vcombine.low %v167_v49, %v187_v50  ;;  %v2493_v61 = vcombine.low %v168_v52, %v188_v53  ;;  %v2620_v49 = vcombine.high %v291_v43, %v311_v44  ;;  %v251_v52 = vld [vmem:[%s2857_s14 + $0x2c0] sm:$0xff] }
  0x2c   : > { %1460 = vmatprep.subr.bf16.mxu0 %v2568_v62  ;;  %1501 = vmatprep.subr.bf16.mxu1 %v2570_v63  ;;  %v2656_v62 = vcombine.high %v329_v58, %v329_v58  ;;  %v2658_v63 = vcombine.high %v330_v59, %v330_v59  ;;  %v271_v53 = vld [vmem:[%s2857_s14 + $0x360] sm:$0xff] }
  0x2d   : > { %v2580_v58 = vcombine.high %v251_v52, %v271_v53 }
  0x2f   : > { %1461 = vmatpush1.bf16.msra.mxu0 %v2567_v5  ;;  %1502 = vmatpush1.bf16.msra.mxu1 %v2569_v6  ;;  %v290_v5 = vld [vmem:[%s2857_s14 + $0x3f8] sm:$0xff] }
  0x30   : > { %1462 = vmatprep.subr.bf16.mxu0 %v2528_v7  ;;  %1503 = vmatprep.subr.bf16.mxu1 %v2530_v8  ;;  %v310_v6 = vld [vmem:[%s2857_s14 + $0x498] sm:$0xff]  ;;  %v1285_v7 = vsel %vm1247_vm0, %v2655_v1, 0  ;;  %v1291_v8 = vsel %vm1247_vm0, %v2657_v2, 0  ;;  %v2579_v1 = vcombine.low %v251_v52, %v271_v53 }
  0x31   : > { %v2618_v10 = vcombine.high %v290_v5, %v310_v6 }
  0x33   : > { %1463 = vmatpush1.bf16.msra.mxu0 %v2527_v13  ;;  %1504 = vmatpush1.bf16.msra.mxu1 %v2529_v14  ;;  %v250_v13 = vld [vmem:[%s2857_s14 + $0x2b8] sm:$0xff] }
  0x34   : > { %1464 = vmatprep.subr.bf16.mxu0 %v2488_v15  ;;  %1505 = vmatprep.subr.bf16.mxu1 %v2490_v16  ;;  %v270_v14 = vld [vmem:[%s2857_s14 + $0x358] sm:$0xff]  ;;  %v2615_v15 = vcombine.low %v289_v3, %v309_v4  ;;  %v2617_v16 = vcombine.low %v290_v5, %v310_v6  ;;  %v171_v5 = vld [vmem:[%s2857_s14 + $0x40] sm:$0xff] }
  0x35   : > { %v2578_v18 = vcombine.high %v250_v13, %v270_v14  ;;  %v2577_v24 = vcombine.low %v250_v13, %v270_v14  ;;  %v191_v6 = vld [vmem:[%s2857_s14 + $0xe0] sm:$0xff]  ;;  %v333_v13 = vld [vmem:[%s2857_s14 + $0x550] sm:$0xff]  ;;  %v334_v14 = vld [vmem:[%s2857_s14 + $0x558] sm:$0xff] }
  0x36   : > { %v2500_v11 = vcombine.high %v171_v5, %v191_v6 }
  0x37   : > { %1465 = vmatpush1.bf16.msra.mxu0 %v2487_v19  ;;  %1506 = vmatpush1.bf16.msra.mxu1 %v2489_v20  ;;  %v209_v19 = vld [vmem:[%s2857_s14 + $0x170] sm:$0xff] }
  0x38   : > { %2691 = vmatprep.subr.msk.bf16.mxu0 %vm1247_vm0, %v2652_v21  ;;  %2693 = vmatprep.subr.msk.bf16.mxu1 %vm1247_vm0, %v2654_v22  ;;  %v229_v20 = vld [vmem:[%s2857_s14 + $0x210] sm:$0xff]  ;;  %v210_v21 = vld [vmem:[%s2857_s14 + $0x178] sm:$0xff] }
  0x39   : > { %v230_v22 = vld [vmem:[%s2857_s14 + $0x218] sm:$0xff]  ;;  %v2536_v25 = vcombine.high %v209_v19, %v229_v20 }
  0x3a   : > { %2688 = vmatmul.mubr.msk.bf16.vlgmr.msra.gmra.mxu0 %vm1243_vm1, %v2894_v51  ;;  %2690 = vmatmul.mubr.msk.bf16.vlgmr.msra.gmra.mxu1 %vm1243_vm1, %v2894_v51  ;;  %v2538_v26 = vcombine.high %v210_v21, %v230_v22 }
  0x3b   : > { %1539 = vmatpush1.bf16.msra.mxu0 %v1273_v29  ;;  %1580 = vmatpush1.bf16.msra.mxu1 %v1279_v30  ;;  %v170_v29 = vld [vmem:[%s2857_s14 + $0x38] sm:$0xff] }
  0x3c   : > { %1540 = vmatprep.subr.bf16.mxu0 %v2612_v31  ;;  %1581 = vmatprep.subr.bf16.mxu1 %v2614_v32  ;;  %v190_v30 = vld [vmem:[%s2857_s14 + $0xd8] sm:$0xff]  ;;  %v2535_v31 = vcombine.low %v209_v19, %v229_v20  ;;  %v2537_v32 = vcombine.low %v210_v21, %v230_v22  ;;  %v2663_v19 = vcombine.low %v333_v13, %v333_v13  ;;  %v293_v21 = vld [vmem:[%s2857_s14 + $0x410] sm:$0xff] }
  0x3d   : > { %1564 = vmatprep.mubr.bf16.mxu0 %v2825_v0  ;;  %1605 = vmatprep.mubr.bf16.mxu1 %v2825_v0  ;;  %v2498_v34 = vcombine.high %v170_v29, %v190_v30  ;;  %v2665_v20 = vcombine.low %v334_v14, %v334_v14  ;;  %v313_v22 = vld [vmem:[%s2857_s14 + $0x4b0] sm:$0xff] }
  0x3f   : > { %1541 = vmatpush1.bf16.msra.mxu0 %v2611_v37  ;;  %1582 = vmatpush1.bf16.msra.mxu1 %v2613_v38  ;;  %v2495_v37 = vcombine.low %v169_v27, %v189_v28  ;;  %v2497_v38 = vcombine.low %v170_v29, %v190_v30  ;;  %v2624_v27 = vcombine.high %v293_v21, %v313_v22  ;;  %v253_v29 = vld [vmem:[%s2857_s14 + $0x2d0] sm:$0xff] }
  0x40   : > { %1542 = vmatprep.subr.bf16.mxu0 %v2572_v39  ;;  %1583 = vmatprep.subr.bf16.mxu1 %v2574_v40  ;;  %v2660_v39 = vcombine.high %v331_v35, %v331_v35  ;;  %v2662_v40 = vcombine.high %v332_v36, %v332_v36  ;;  %v273_v30 = vld [vmem:[%s2857_s14 + $0x370] sm:$0xff] }
  0x41   : > { %v2584_v35 = vcombine.high %v253_v29, %v273_v30 }
  0x43   : > { %1543 = vmatpush1.bf16.msra.mxu0 %v2571_v45  ;;  %1584 = vmatpush1.bf16.msra.mxu1 %v2573_v46  ;;  %v292_v45 = vld [vmem:[%s2857_s14 + $0x408] sm:$0xff] }
  0x44   : > { %1544 = vmatprep.subr.bf16.mxu0 %v2532_v47  ;;  %1585 = vmatprep.subr.bf16.mxu1 %v2534_v48  ;;  %v312_v46 = vld [vmem:[%s2857_s14 + $0x4a8] sm:$0xff]  ;;  %v1297_v47 = vsel %vm1247_vm0, %v2659_v41, 0  ;;  %v1303_v48 = vsel %vm1247_vm0, %v2661_v42, 0  ;;  %v2583_v41 = vcombine.low %v253_v29, %v273_v30 }
  0x45   : > { %v2622_v50 = vcombine.high %v292_v45, %v312_v46 }
  0x47   : > { %1545 = vmatpush1.bf16.msra.mxu0 %v2531_v54  ;;  %1586 = vmatpush1.bf16.msra.mxu1 %v2533_v55  ;;  %v252_v54 = vld [vmem:[%s2857_s14 + $0x2c8] sm:$0xff] }
  0x48   : > { %1546 = vmatprep.subr.bf16.mxu0 %v2492_v56  ;;  %1587 = vmatprep.subr.bf16.mxu1 %v2494_v57  ;;  %v272_v55 = vld [vmem:[%s2857_s14 + $0x368] sm:$0xff]  ;;  %v2619_v56 = vcombine.low %v291_v43, %v311_v44  ;;  %v2621_v57 = vcombine.low %v292_v45, %v312_v46  ;;  %v173_v45 = vld [vmem:[%s2857_s14 + $0x50] sm:$0xff] }
  0x49   : > { %v2582_v59 = vcombine.high %v252_v54, %v272_v55  ;;  %v2581_v2 = vcombine.low %v252_v54, %v272_v55  ;;  %v193_v46 = vld [vmem:[%s2857_s14 + $0xf0] sm:$0xff]  ;;  %v335_v54 = vld [vmem:[%s2857_s14 + $0x560] sm:$0xff]  ;;  %v336_v55 = vld [vmem:[%s2857_s14 + $0x568] sm:$0xff] }
  0x4a   : > { %v2504_v52 = vcombine.high %v173_v45, %v193_v46 }
  0x4b   : > { %1547 = vmatpush1.bf16.msra.mxu0 %v2491_v60  ;;  %1588 = vmatpush1.bf16.msra.mxu1 %v2493_v61  ;;  %v211_v60 = vld [vmem:[%s2857_s14 + $0x180] sm:$0xff] }
  0x4c   : > { %2695 = vmatprep.subr.msk.bf16.mxu0 %vm1247_vm0, %v2656_v62  ;;  %2697 = vmatprep.subr.msk.bf16.mxu1 %vm1247_vm0, %v2658_v63  ;;  %v231_v61 = vld [vmem:[%s2857_s14 + $0x220] sm:$0xff]  ;;  %v212_v62 = vld [vmem:[%s2857_s14 + $0x188] sm:$0xff] }
  0x4d   : > { %v232_v63 = vld [vmem:[%s2857_s14 + $0x228] sm:$0xff]  ;;  %v2540_v3 = vcombine.high %v211_v60, %v231_v61 }
  0x4e   : > { %2692 = vmatmul.mubr.msk.bf16.vlgmr.msra.gmra.mxu0 %vm1243_vm1, %v2894_v51  ;;  %2694 = vmatmul.mubr.msk.bf16.vlgmr.msra.gmra.mxu1 %vm1243_vm1, %v2894_v51  ;;  %v2542_v4 = vcombine.high %v212_v62, %v232_v63 }
  0x4f   : > { %1621 = vmatpush1.bf16.msra.mxu0 %v1285_v7  ;;  %1662 = vmatpush1.bf16.msra.mxu1 %v1291_v8  ;;  %v172_v7 = vld [vmem:[%s2857_s14 + $0x48] sm:$0xff] }
  0x50   : > { %1622 = vmatprep.subr.bf16.mxu0 %v2616_v9  ;;  %1663 = vmatprep.subr.bf16.mxu1 %v2618_v10  ;;  %v192_v8 = vld [vmem:[%s2857_s14 + $0xe8] sm:$0xff]  ;;  %v2539_v9 = vcombine.low %v211_v60, %v231_v61  ;;  %v2541_v10 = vcombine.low %v212_v62, %v232_v63  ;;  %v2667_v60 = vcombine.low %v335_v54, %v335_v54  ;;  %v295_v62 = vld [vmem:[%s2857_s14 + $0x420] sm:$0xff] }
  0x51   : > { %1646 = vmatprep.mubr.bf16.mxu0 %v2825_v0  ;;  %1687 = vmatprep.mubr.bf16.mxu1 %v2825_v0  ;;  %v2502_v12 = vcombine.high %v172_v7, %v192_v8  ;;  %v2669_v61 = vcombine.low %v336_v55, %v336_v55  ;;  %v315_v63 = vld [vmem:[%s2857_s14 + $0x4c0] sm:$0xff] }
  0x53   : > { %1623 = vmatpush1.bf16.msra.mxu0 %v2615_v15  ;;  %1664 = vmatpush1.bf16.msra.mxu1 %v2617_v16  ;;  %v2499_v15 = vcombine.low %v171_v5, %v191_v6  ;;  %v2501_v16 = vcombine.low %v172_v7, %v192_v8  ;;  %v2628_v5 = vcombine.high %v295_v62, %v315_v63  ;;  %v255_v7 = vld [vmem:[%s2857_s14 + $0x2e0] sm:$0xff] }
  0x54   : > { %1624 = vmatprep.subr.bf16.mxu0 %v2576_v17  ;;  %1665 = vmatprep.subr.bf16.mxu1 %v2578_v18  ;;  %v2664_v17 = vcombine.high %v333_v13, %v333_v13  ;;  %v2666_v18 = vcombine.high %v334_v14, %v334_v14  ;;  %v275_v8 = vld [vmem:[%s2857_s14 + $0x380] sm:$0xff] }
  0x55   : > { %v2588_v13 = vcombine.high %v255_v7, %v275_v8 }
  0x57   : > { %1625 = vmatpush1.bf16.msra.mxu0 %v2575_v23  ;;  %1666 = vmatpush1.bf16.msra.mxu1 %v2577_v24  ;;  %v294_v23 = vld [vmem:[%s2857_s14 + $0x418] sm:$0xff] }
  0x58   : > { %1626 = vmatprep.subr.bf16.mxu0 %v2536_v25  ;;  %1667 = vmatprep.subr.bf16.mxu1 %v2538_v26  ;;  %v314_v24 = vld [vmem:[%s2857_s14 + $0x4b8] sm:$0xff]  ;;  %v1309_v25 = vsel %vm1247_vm0, %v2663_v19, 0  ;;  %v1315_v26 = vsel %vm1247_vm0, %v2665_v20, 0  ;;  %v2587_v19 = vcombine.low %v255_v7, %v275_v8 }
  0x59   : > { %v2626_v28 = vcombine.high %v294_v23, %v314_v24 }
  0x5b   : > { %1627 = vmatpush1.bf16.msra.mxu0 %v2535_v31  ;;  %1668 = vmatpush1.bf16.msra.mxu1 %v2537_v32  ;;  %v254_v31 = vld [vmem:[%s2857_s14 + $0x2d8] sm:$0xff] }
  0x5c   : > { %1628 = vmatprep.subr.bf16.mxu0 %v2496_v33  ;;  %1669 = vmatprep.subr.bf16.mxu1 %v2498_v34  ;;  %v274_v32 = vld [vmem:[%s2857_s14 + $0x378] sm:$0xff]  ;;  %v2623_v33 = vcombine.low %v293_v21, %v313_v22  ;;  %v2625_v34 = vcombine.low %v294_v23, %v314_v24  ;;  %v175_v23 = vld [vmem:[%s2857_s14 + $0x60] sm:$0xff] }
  0x5d   : > { %v2586_v36 = vcombine.high %v254_v31, %v274_v32  ;;  %v2585_v42 = vcombine.low %v254_v31, %v274_v32  ;;  %v195_v24 = vld [vmem:[%s2857_s14 + $0x100] sm:$0xff]  ;;  %v337_v31 = vld [vmem:[%s2857_s14 + $0x570] sm:$0xff]  ;;  %v338_v32 = vld [vmem:[%s2857_s14 + $0x578] sm:$0xff] }
  0x5e   : > { %v2508_v29 = vcombine.high %v175_v23, %v195_v24 }
  0x5f   : > { %1629 = vmatpush1.bf16.msra.mxu0 %v2495_v37  ;;  %1670 = vmatpush1.bf16.msra.mxu1 %v2497_v38  ;;  %v213_v37 = vld [vmem:[%s2857_s14 + $0x190] sm:$0xff] }
  0x60   : > { %2699 = vmatprep.subr.msk.bf16.mxu0 %vm1247_vm0, %v2660_v39  ;;  %2701 = vmatprep.subr.msk.bf16.mxu1 %vm1247_vm0, %v2662_v40  ;;  %v233_v38 = vld [vmem:[%s2857_s14 + $0x230] sm:$0xff]  ;;  %v214_v39 = vld [vmem:[%s2857_s14 + $0x198] sm:$0xff] }
  0x61   : > { %v234_v40 = vld [vmem:[%s2857_s14 + $0x238] sm:$0xff]  ;;  %v2544_v43 = vcombine.high %v213_v37, %v233_v38 }
  0x62   : > { %2696 = vmatmul.mubr.msk.bf16.vlgmr.msra.gmra.mxu0 %vm1243_vm1, %v2894_v51  ;;  %2698 = vmatmul.mubr.msk.bf16.vlgmr.msra.gmra.mxu1 %vm1243_vm1, %v2894_v51  ;;  %v2546_v44 = vcombine.high %v214_v39, %v234_v40 }
  0x63   : > { %1703 = vmatpush1.bf16.msra.mxu0 %v1297_v47  ;;  %1744 = vmatpush1.bf16.msra.mxu1 %v1303_v48  ;;  %v174_v47 = vld [vmem:[%s2857_s14 + $0x58] sm:$0xff] }
  0x64   : > { %1704 = vmatprep.subr.bf16.mxu0 %v2620_v49  ;;  %1745 = vmatprep.subr.bf16.mxu1 %v2622_v50  ;;  %v194_v48 = vld [vmem:[%s2857_s14 + $0xf8] sm:$0xff]  ;;  %v2543_v49 = vcombine.low %v213_v37, %v233_v38  ;;  %v2545_v50 = vcombine.low %v214_v39, %v234_v40  ;;  %v2671_v37 = vcombine.low %v337_v31, %v337_v31  ;;  %v297_v39 = vld [vmem:[%s2857_s14 + $0x430] sm:$0xff] }
  0x65   : > { %1728 = vmatprep.mubr.bf16.mxu0 %v2825_v0  ;;  %1769 = vmatprep.mubr.bf16.mxu1 %v2825_v0  ;;  %v2506_v53 = vcombine.high %v174_v47, %v194_v48  ;;  %v2673_v38 = vcombine.low %v338_v32, %v338_v32  ;;  %v317_v40 = vld [vmem:[%s2857_s14 + $0x4d0] sm:$0xff] }
  0x67   : > { %1705 = vmatpush1.bf16.msra.mxu0 %v2619_v56  ;;  %1746 = vmatpush1.bf16.msra.mxu1 %v2621_v57  ;;  %v2503_v56 = vcombine.low %v173_v45, %v193_v46  ;;  %v2505_v57 = vcombine.low %v174_v47, %v194_v48  ;;  %v2632_v45 = vcombine.high %v297_v39, %v317_v40  ;;  %v257_v47 = vld [vmem:[%s2857_s14 + $0x2f0] sm:$0xff] }
  0x68   : > { %1706 = vmatprep.subr.bf16.mxu0 %v2580_v58  ;;  %1747 = vmatprep.subr.bf16.mxu1 %v2582_v59  ;;  %v2668_v58 = vcombine.high %v335_v54, %v335_v54  ;;  %v2670_v59 = vcombine.high %v336_v55, %v336_v55  ;;  %v277_v48 = vld [vmem:[%s2857_s14 + $0x390] sm:$0xff] }
  0x69   : > { %v2592_v54 = vcombine.high %v257_v47, %v277_v48 }
  0x6b   : > { %1707 = vmatpush1.bf16.msra.mxu0 %v2579_v1  ;;  %1748 = vmatpush1.bf16.msra.mxu1 %v2581_v2  ;;  %v296_v1 = vld [vmem:[%s2857_s14 + $0x428] sm:$0xff] }
  0x6c   : > { %1708 = vmatprep.subr.bf16.mxu0 %v2540_v3  ;;  %1749 = vmatprep.subr.bf16.mxu1 %v2542_v4  ;;  %v316_v2 = vld [vmem:[%s2857_s14 + $0x4c8] sm:$0xff]  ;;  %v1321_v3 = vsel %vm1247_vm0, %v2667_v60, 0  ;;  %v1327_v4 = vsel %vm1247_vm0, %v2669_v61, 0  ;;  %v2591_v60 = vcombine.low %v257_v47, %v277_v48  ;;  %v341_v48 = vld [vmem:[%s2857_s14 + $0x590] sm:$0xff] }
  0x6d   : > { %v2630_v6 = vcombine.high %v296_v1, %v316_v2 }
  0x6f   : > { %1709 = vmatpush1.bf16.msra.mxu0 %v2539_v9  ;;  %1750 = vmatpush1.bf16.msra.mxu1 %v2541_v10  ;;  %v256_v9 = vld [vmem:[%s2857_s14 + $0x2e8] sm:$0xff] }
  0x70   : > { %1710 = vmatprep.subr.bf16.mxu0 %v2500_v11  ;;  %1751 = vmatprep.subr.bf16.mxu1 %v2502_v12  ;;  %v276_v10 = vld [vmem:[%s2857_s14 + $0x388] sm:$0xff]  ;;  %v2627_v11 = vcombine.low %v295_v62, %v315_v63  ;;  %v2629_v12 = vcombine.low %v296_v1, %v316_v2  ;;  %v177_v1 = vld [vmem:[%s2857_s14 + $0x70] sm:$0xff] }
  0x71   : > { %v2590_v14 = vcombine.high %v256_v9, %v276_v10  ;;  %v2589_v20 = vcombine.low %v256_v9, %v276_v10  ;;  %v197_v2 = vld [vmem:[%s2857_s14 + $0x110] sm:$0xff]  ;;  %v339_v9 = vld [vmem:[%s2857_s14 + $0x580] sm:$0xff]  ;;  %v340_v10 = vld [vmem:[%s2857_s14 + $0x588] sm:$0xff] }
  0x72   : > { %v2512_v7 = vcombine.high %v177_v1, %v197_v2 }
  0x73   : > { %1711 = vmatpush1.bf16.msra.mxu0 %v2499_v15  ;;  %1752 = vmatpush1.bf16.msra.mxu1 %v2501_v16  ;;  %v215_v15 = vld [vmem:[%s2857_s14 + $0x1a0] sm:$0xff] }
  0x74   : > { %2703 = vmatprep.subr.msk.bf16.mxu0 %vm1247_vm0, %v2664_v17  ;;  %2705 = vmatprep.subr.msk.bf16.mxu1 %vm1247_vm0, %v2666_v18  ;;  %v235_v16 = vld [vmem:[%s2857_s14 + $0x240] sm:$0xff]  ;;  %v216_v17 = vld [vmem:[%s2857_s14 + $0x1a8] sm:$0xff] }
  0x75   : > { %v236_v18 = vld [vmem:[%s2857_s14 + $0x248] sm:$0xff]  ;;  %v2548_v21 = vcombine.high %v215_v15, %v235_v16 }
  0x76   : > { %2700 = vmatmul.mubr.msk.bf16.vlgmr.msra.gmra.mxu0 %vm1243_vm1, %v2894_v51  ;;  %2702 = vmatmul.mubr.msk.bf16.vlgmr.msra.gmra.mxu1 %vm1243_vm1, %v2894_v51  ;;  %v2550_v22 = vcombine.high %v216_v17, %v236_v18 }
  0x77   : > { %1785 = vmatpush1.bf16.msra.mxu0 %v1309_v25  ;;  %1826 = vmatpush1.bf16.msra.mxu1 %v1315_v26  ;;  %v176_v25 = vld [vmem:[%s2857_s14 + $0x68] sm:$0xff] }
  0x78   : > { %1786 = vmatprep.subr.bf16.mxu0 %v2624_v27  ;;  %1827 = vmatprep.subr.bf16.mxu1 %v2626_v28  ;;  %v196_v26 = vld [vmem:[%s2857_s14 + $0x108] sm:$0xff]  ;;  %v2547_v27 = vcombine.low %v215_v15, %v235_v16  ;;  %v2549_v28 = vcombine.low %v216_v17, %v236_v18  ;;  %v2675_v15 = vcombine.low %v339_v9, %v339_v9  ;;  %v299_v17 = vld [vmem:[%s2857_s14 + $0x440] sm:$0xff] }
  0x79   : > { %1810 = vmatprep.mubr.bf16.mxu0 %v2825_v0  ;;  %1851 = vmatprep.mubr.bf16.mxu1 %v2825_v0  ;;  %v2510_v30 = vcombine.high %v176_v25, %v196_v26  ;;  %v2677_v16 = vcombine.low %v340_v10, %v340_v10  ;;  %v319_v18 = vld [vmem:[%s2857_s14 + $0x4e0] sm:$0xff] }
  0x7b   : > { %1787 = vmatpush1.bf16.msra.mxu0 %v2623_v33  ;;  %1828 = vmatpush1.bf16.msra.mxu1 %v2625_v34  ;;  %v2507_v33 = vcombine.low %v175_v23, %v195_v24  ;;  %v2509_v34 = vcombine.low %v176_v25, %v196_v26  ;;  %v2636_v23 = vcombine.high %v299_v17, %v319_v18  ;;  %v259_v25 = vld [vmem:[%s2857_s14 + $0x300] sm:$0xff] }
  0x7c   : > { %1788 = vmatprep.subr.bf16.mxu0 %v2584_v35  ;;  %1829 = vmatprep.subr.bf16.mxu1 %v2586_v36  ;;  %v2672_v35 = vcombine.high %v337_v31, %v337_v31  ;;  %v2674_v36 = vcombine.high %v338_v32, %v338_v32  ;;  %v279_v26 = vld [vmem:[%s2857_s14 + $0x3a0] sm:$0xff] }
  0x7d   : > { %v2596_v31 = vcombine.high %v259_v25, %v279_v26 }
  0x7f   : > { %1789 = vmatpush1.bf16.msra.mxu0 %v2583_v41  ;;  %1830 = vmatpush1.bf16.msra.mxu1 %v2585_v42  ;;  %v298_v41 = vld [vmem:[%s2857_s14 + $0x438] sm:$0xff] }
  0x80   : > { %1790 = vmatprep.subr.bf16.mxu0 %v2544_v43  ;;  %1831 = vmatprep.subr.bf16.mxu1 %v2546_v44  ;;  %v318_v42 = vld [vmem:[%s2857_s14 + $0x4d8] sm:$0xff]  ;;  %v1333_v43 = vsel %vm1247_vm0, %v2671_v37, 0  ;;  %v1339_v44 = vsel %vm1247_vm0, %v2673_v38, 0 }
  0x81   : > { %v2634_v46 = vcombine.high %v298_v41, %v318_v42 }
  0x83   : > { %1791 = vmatpush1.bf16.msra.mxu0 %v2543_v49  ;;  %1832 = vmatpush1.bf16.msra.mxu1 %v2545_v50  ;;  %v258_v49 = vld [vmem:[%s2857_s14 + $0x2f8] sm:$0xff] }
  0x84   : > { %1792 = vmatprep.subr.bf16.mxu0 %v2504_v52  ;;  %1833 = vmatprep.subr.bf16.mxu1 %v2506_v53  ;;  %v278_v50 = vld [vmem:[%s2857_s14 + $0x398] sm:$0xff]  ;;  %v2631_v52 = vcombine.low %v297_v39, %v317_v40  ;;  %v2633_v53 = vcombine.low %v298_v41, %v318_v42  ;;  %v179_v40 = vld [vmem:[%s2857_s14 + $0x80] sm:$0xff]  ;;  %v180_v42 = vld [vmem:[%s2857_s14 + $0x88] sm:$0xff] }
  0x85   : > { %v2594_v55 = vcombine.high %v258_v49, %v278_v50  ;;  %v2593_v61 = vcombine.low %v258_v49, %v278_v50  ;;  %v199_v41 = vld [vmem:[%s2857_s14 + $0x120] sm:$0xff]  ;;  %v342_v49 = vld [vmem:[%s2857_s14 + $0x598] sm:$0xff] }
  0x86   : > { %v2515_v50 = vcombine.low %v179_v40, %v199_v41 }
  0x87   : > { %1793 = vmatpush1.bf16.msra.mxu0 %v2503_v56  ;;  %1834 = vmatpush1.bf16.msra.mxu1 %v2505_v57  ;;  %v217_v56 = vld [vmem:[%s2857_s14 + $0x1b0] sm:$0xff] }
  0x88   : > { %2707 = vmatprep.subr.msk.bf16.mxu0 %vm1247_vm0, %v2668_v58  ;;  %2709 = vmatprep.subr.msk.bf16.mxu1 %vm1247_vm0, %v2670_v59  ;;  %v237_v57 = vld [vmem:[%s2857_s14 + $0x250] sm:$0xff]  ;;  %v218_v58 = vld [vmem:[%s2857_s14 + $0x1b8] sm:$0xff] }
  0x89   : > { %v238_v59 = vld [vmem:[%s2857_s14 + $0x258] sm:$0xff]  ;;  %v2552_v62 = vcombine.high %v217_v56, %v237_v57 }
  0x8a   : > { %2704 = vmatmul.mubr.msk.bf16.vlgmr.msra.gmra.mxu0 %vm1243_vm1, %v2894_v51  ;;  %2706 = vmatmul.mubr.msk.bf16.vlgmr.msra.gmra.mxu1 %vm1243_vm1, %v2894_v51  ;;  %v2554_v63 = vcombine.high %v218_v58, %v238_v59 }
  0x8b   : > { %1867 = vmatpush1.bf16.msra.mxu0 %v1321_v3  ;;  %1908 = vmatpush1.bf16.msra.mxu1 %v1327_v4  ;;  %v178_v3 = vld [vmem:[%s2857_s14 + $0x78] sm:$0xff] }
  0x8c   : > { %1868 = vmatprep.subr.bf16.mxu0 %v2628_v5  ;;  %1909 = vmatprep.subr.bf16.mxu1 %v2630_v6  ;;  %v198_v4 = vld [vmem:[%s2857_s14 + $0x118] sm:$0xff]  ;;  %v2551_v5 = vcombine.low %v217_v56, %v237_v57  ;;  %v2553_v6 = vcombine.low %v218_v58, %v238_v59  ;;  %v2681_v56 = vcombine.low %v342_v49, %v342_v49  ;;  %v301_v57 = vld [vmem:[%s2857_s14 + $0x450] sm:$0xff] }
  0x8d   : > { %1892 = vmatprep.mubr.bf16.mxu0 %v2825_v0  ;;  %1933 = vmatprep.mubr.bf16.mxu1 %v2825_v0  ;;  %v2514_v8 = vcombine.high %v178_v3, %v198_v4  ;;  %v321_v58 = vld [vmem:[%s2857_s14 + $0x4f0] sm:$0xff]  ;;  %v302_v59 = vld [vmem:[%s2857_s14 + $0x458] sm:$0xff] }
  0x8f   : > { %1869 = vmatpush1.bf16.msra.mxu0 %v2627_v11  ;;  %1910 = vmatpush1.bf16.msra.mxu1 %v2629_v12  ;;  %v2511_v11 = vcombine.low %v177_v1, %v197_v2  ;;  %v2513_v12 = vcombine.low %v178_v3, %v198_v4  ;;  %v261_v2 = vld [vmem:[%s2857_s14 + $0x310] sm:$0xff]  ;;  %v262_v4 = vld [vmem:[%s2857_s14 + $0x318] sm:$0xff] }
  0x90   : > { %1870 = vmatprep.subr.bf16.mxu0 %v2588_v13  ;;  %1911 = vmatprep.subr.bf16.mxu1 %v2590_v14  ;;  %v2676_v13 = vcombine.high %v339_v9, %v339_v9  ;;  %v2678_v14 = vcombine.high %v340_v10, %v340_v10  ;;  %v281_v3 = vld [vmem:[%s2857_s14 + $0x3b0] sm:$0xff] }
  0x91   : > { %v2600_v9 = vcombine.high %v261_v2, %v281_v3 }
  0x93   : > { %1871 = vmatpush1.bf16.msra.mxu0 %v2587_v19  ;;  %1912 = vmatpush1.bf16.msra.mxu1 %v2589_v20  ;;  %v300_v19 = vld [vmem:[%s2857_s14 + $0x448] sm:$0xff] }
  0x94   : > { %1872 = vmatprep.subr.bf16.mxu0 %v2548_v21  ;;  %1913 = vmatprep.subr.bf16.mxu1 %v2550_v22  ;;  %v320_v20 = vld [vmem:[%s2857_s14 + $0x4e8] sm:$0xff]  ;;  %v1345_v21 = vsel %vm1247_vm0, %v2675_v15, 0  ;;  %v1351_v22 = vsel %vm1247_vm0, %v2677_v16, 0  ;;  %v2599_v15 = vcombine.low %v261_v2, %v281_v3 }
  0x95   : > { %v2638_v24 = vcombine.high %v300_v19, %v320_v20 }
  0x97   : > { %1873 = vmatpush1.bf16.msra.mxu0 %v2547_v27  ;;  %1914 = vmatpush1.bf16.msra.mxu1 %v2549_v28  ;;  %v260_v27 = vld [vmem:[%s2857_s14 + $0x308] sm:$0xff] }
  0x98   : > { %1874 = vmatprep.subr.bf16.mxu0 %v2508_v29  ;;  %1915 = vmatprep.subr.bf16.mxu1 %v2510_v30  ;;  %v280_v28 = vld [vmem:[%s2857_s14 + $0x3a8] sm:$0xff]  ;;  %v2635_v29 = vcombine.low %v299_v17, %v319_v18  ;;  %v2637_v30 = vcombine.low %v300_v19, %v320_v20  ;;  %v181_v19 = vld [vmem:[%s2857_s14 + $0x90] sm:$0xff] }
  0x99   : > { %v2598_v32 = vcombine.high %v260_v27, %v280_v28  ;;  %v2597_v37 = vcombine.low %v260_v27, %v280_v28  ;;  %v201_v20 = vld [vmem:[%s2857_s14 + $0x130] sm:$0xff] }
  0x9b   : > { %1875 = vmatpush1.bf16.msra.mxu0 %v2507_v33  ;;  %1916 = vmatpush1.bf16.msra.mxu1 %v2509_v34  ;;  %v219_v33 = vld [vmem:[%s2857_s14 + $0x1c0] sm:$0xff] }
  0x9c   : > { %2711 = vmatprep.subr.msk.bf16.mxu0 %vm1247_vm0, %v2672_v35  ;;  %2713 = vmatprep.subr.msk.bf16.mxu1 %vm1247_vm0, %v2674_v36  ;;  %v239_v34 = vld [vmem:[%s2857_s14 + $0x260] sm:$0xff]  ;;  %v220_v35 = vld [vmem:[%s2857_s14 + $0x1c8] sm:$0xff] }
  0x9d   : > { %v240_v36 = vld [vmem:[%s2857_s14 + $0x268] sm:$0xff]  ;;  %v2556_v38 = vcombine.high %v219_v33, %v239_v34 }
  0x9e   : > { %2708 = vmatmul.mubr.msk.bf16.vlgmr.msra.gmra.mxu0 %vm1243_vm1, %v2894_v51  ;;  %2710 = vmatmul.mubr.msk.bf16.vlgmr.msra.gmra.mxu1 %vm1243_vm1, %v2894_v51  ;;  %v2558_v39 = vcombine.high %v220_v35, %v240_v36 }
  0x9f   : > { %1949 = vmatpush1.bf16.msra.mxu0 %v1333_v43  ;;  %1990 = vmatpush1.bf16.msra.mxu1 %v1339_v44  ;;  %v200_v43 = vld [vmem:[%s2857_s14 + $0x128] sm:$0xff]  ;;  %v2555_v44 = vcombine.low %v219_v33, %v239_v34 }
  0xa0   : > { %1950 = vmatprep.subr.bf16.mxu0 %v2632_v45  ;;  %1991 = vmatprep.subr.bf16.mxu1 %v2634_v46  ;;  %v2557_v45 = vcombine.low %v220_v35, %v240_v36  ;;  %v2516_v46 = vcombine.high %v179_v40, %v199_v41  ;;  %v2518_v47 = vcombine.high %v180_v42, %v200_v43 }
  0xa1   : > { %1974 = vmatprep.mubr.bf16.mxu0 %v2825_v0  ;;  %2015 = vmatprep.mubr.bf16.mxu1 %v2825_v0 }
  0xa3   : > { %1951 = vmatpush1.bf16.msra.mxu0 %v2631_v52  ;;  %1992 = vmatpush1.bf16.msra.mxu1 %v2633_v53  ;;  %v2517_v52 = vcombine.low %v180_v42, %v200_v43  ;;  %v2680_v53 = vcombine.high %v341_v48, %v341_v48 }
  0xa4   : > { %1952 = vmatprep.subr.bf16.mxu0 %v2592_v54  ;;  %1993 = vmatprep.subr.bf16.mxu1 %v2594_v55  ;;  %v2682_v54 = vcombine.high %v342_v49, %v342_v49  ;;  %v2679_v55 = vcombine.low %v341_v48, %v341_v48 }
  0xa7   : > { %1953 = vmatpush1.bf16.msra.mxu0 %v2591_v60  ;;  %1994 = vmatpush1.bf16.msra.mxu1 %v2593_v61  ;;  %v322_v60 = vld [vmem:[%s2857_s14 + $0x4f8] sm:$0xff]  ;;  %v1357_v61 = vsel %vm1247_vm0, %v2679_v55, 0 }
  0xa8   : > { %1954 = vmatprep.subr.bf16.mxu0 %v2552_v62  ;;  %1995 = vmatprep.subr.bf16.mxu1 %v2554_v63  ;;  %v1363_v62 = vsel %vm1247_vm0, %v2681_v56, 0  ;;  %v2640_v63 = vcombine.high %v301_v57, %v321_v58  ;;  %v2642_v1 = vcombine.high %v302_v59, %v322_v60 }
  0xab   : > { %1955 = vmatpush1.bf16.msra.mxu0 %v2551_v5  ;;  %1996 = vmatpush1.bf16.msra.mxu1 %v2553_v6  ;;  %v282_v5 = vld [vmem:[%s2857_s14 + $0x3b8] sm:$0xff]  ;;  %v2816_v6 = vld [vmem:[%s2887_s18] sm:$0xf] }
  0xac   : > { %1956 = vmatprep.subr.bf16.mxu0 %v2512_v7  ;;  %1997 = vmatprep.subr.bf16.mxu1 %v2514_v8  ;;  %v2639_v7 = vcombine.low %v301_v57, %v321_v58  ;;  %v2641_v8 = vcombine.low %v302_v59, %v322_v60  ;;  %v2602_v10 = vcombine.high %v262_v4, %v282_v5 }
  0xad   : > { %v2601_v16 = vcombine.low %v262_v4, %v282_v5 }
  0xaf   : > { %1957 = vmatpush1.bf16.msra.mxu0 %v2511_v11  ;;  %1998 = vmatpush1.bf16.msra.mxu1 %v2513_v12  ;;  %v221_v11 = vld [vmem:[%s2857_s14 + $0x1d0] sm:$0xff] }
  0xb0   : > { %2715 = vmatprep.subr.msk.bf16.mxu0 %vm1247_vm0, %v2676_v13  ;;  %2717 = vmatprep.subr.msk.bf16.mxu1 %vm1247_vm0, %v2678_v14  ;;  %v241_v12 = vld [vmem:[%s2857_s14 + $0x270] sm:$0xff]  ;;  %v222_v13 = vld [vmem:[%s2857_s14 + $0x1d8] sm:$0xff] }
  0xb1   : > { %v242_v14 = vld [vmem:[%s2857_s14 + $0x278] sm:$0xff]  ;;  %v2560_v17 = vcombine.high %v221_v11, %v241_v12 }
  0xb2   : > { %2712 = vmatmul.mubr.msk.bf16.vlgmr.msra.gmra.mxu0 %vm1243_vm1, %v2894_v51  ;;  %2714 = vmatmul.mubr.msk.bf16.vlgmr.msra.gmra.mxu1 %vm1243_vm1, %v2894_v51  ;;  %v2595_v51 = vcombine.low %v259_v25, %v279_v26  ;;  %v2562_v18 = vcombine.high %v222_v13, %v242_v14  ;;  %v2519_v26 = vcombine.low %v181_v19, %v201_v20 }
  0xb3   : > { %2031 = vmatpush1.bf16.msra.mxu0 %v1345_v21  ;;  %2072 = vmatpush1.bf16.msra.mxu1 %v1351_v22  ;;  %v182_v21 = vld [vmem:[%s2857_s14 + $0x98] sm:$0xff] }
  0xb4   : > { %2032 = vmatprep.subr.bf16.mxu0 %v2636_v23  ;;  %2073 = vmatprep.subr.bf16.mxu1 %v2638_v24  ;;  %v202_v22 = vld [vmem:[%s2857_s14 + $0x138] sm:$0xff]  ;;  %v2559_v23 = vcombine.low %v221_v11, %v241_v12  ;;  %v2561_v24 = vcombine.low %v222_v13, %v242_v14 }
  0xb5   : > { %2056 = vmatprep.mubr.bf16.mxu0 %v2825_v0  ;;  %2097 = vmatprep.mubr.bf16.mxu1 %v2825_v0  ;;  %v2522_v25 = vcombine.high %v182_v21, %v202_v22  ;;  %v2521_v27 = vcombine.low %v182_v21, %v202_v22 }
  0xb7   : > { %2033 = vmatpush1.bf16.msra.mxu0 %v2635_v29  ;;  %2074 = vmatpush1.bf16.msra.mxu1 %v2637_v30 }
  0xb8   : > { %2034 = vmatprep.subr.bf16.mxu0 %v2596_v31  ;;  %2075 = vmatprep.subr.bf16.mxu1 %v2598_v32 }
  0xbb   : > { %2035 = vmatpush1.bf16.msra.mxu0 %v2595_v51  ;;  %2076 = vmatpush1.bf16.msra.mxu1 %v2597_v37 }
  0xbc   : > { %2036 = vmatprep.subr.bf16.mxu0 %v2556_v38  ;;  %2077 = vmatprep.subr.bf16.mxu1 %v2558_v39 }
  0xbf   : > { %2037 = vmatpush1.bf16.msra.mxu0 %v2555_v44  ;;  %2078 = vmatpush1.bf16.msra.mxu1 %v2557_v45 }
  0xc0   : > { %2038 = vmatprep.subr.bf16.mxu0 %v2516_v46  ;;  %2079 = vmatprep.subr.bf16.mxu1 %v2518_v47 }
  0xc3   : > { %2039 = vmatpush1.bf16.msra.mxu0 %v2515_v50  ;;  %2080 = vmatpush1.bf16.msra.mxu1 %v2517_v52 }
  0xc4   : > { %2719 = vmatprep.subr.msk.bf16.mxu0 %vm1247_vm0, %v2680_v53  ;;  %2721 = vmatprep.subr.msk.bf16.mxu1 %vm1247_vm0, %v2682_v54 }
  0xc6   : > { %2716 = vmatmul.mubr.msk.bf16.vlgmr.msra.gmra.mxu0 %vm1243_vm1, %v2816_v6  ;;  %2718 = vmatmul.mubr.msk.bf16.vlgmr.msra.gmra.mxu1 %vm1243_vm1, %v2816_v6 }
  0xc7   : > { %2113 = vmatpush1.bf16.msra.mxu0 %v1357_v61  ;;  %2154 = vmatpush1.bf16.msra.mxu1 %v1363_v62 }
  0xc8   : > { %2114 = vmatprep.subr.bf16.mxu0 %v2640_v63  ;;  %2155 = vmatprep.subr.bf16.mxu1 %v2642_v1 }
  0xc9   : > { %2138 = vmatprep.mubr.bf16.mxu0 %v2825_v0  ;;  %2179 = vmatprep.mubr.bf16.mxu1 %v2825_v0  ;;  %v2520_v0 = vcombine.high %v181_v19, %v201_v20 }
  0xcb   : > { %2115 = vmatpush1.bf16.msra.mxu0 %v2639_v7  ;;  %2156 = vmatpush1.bf16.msra.mxu1 %v2641_v8 }
  0xcc   : > { %2116 = vmatprep.subr.bf16.mxu0 %v2600_v9  ;;  %2157 = vmatprep.subr.bf16.mxu1 %v2602_v10 }
  0xcf   : > { %2117 = vmatpush1.bf16.msra.mxu0 %v2599_v15  ;;  %2158 = vmatpush1.bf16.msra.mxu1 %v2601_v16 }
  0xd0   : > { %2118 = vmatprep.subr.bf16.mxu0 %v2560_v17  ;;  %2159 = vmatprep.subr.bf16.mxu1 %v2562_v18 }
  0xd3   : > { %2119 = vmatpush1.bf16.msra.mxu0 %v2559_v23  ;;  %2160 = vmatpush1.bf16.msra.mxu1 %v2561_v24 }
  0xd4   : > { %2120 = vmatprep.subr.bf16.mxu0 %v2520_v0  ;;  %2161 = vmatprep.subr.bf16.mxu1 %v2522_v25 }
  0xd7   : > { %2121 = vmatpush1.bf16.msra.mxu0 %v2519_v26  ;;  %2162 = vmatpush1.bf16.msra.mxu1 %v2521_v27 }
  0xda   : > { %2720 = vmatmul.mubr.msk.bf16.vlgmr.msra.gmra.mxu0 %vm1243_vm1, %v2816_v6  ;;  %2722 = vmatmul.mubr.msk.bf16.vlgmr.msra.gmra.mxu1 %vm1243_vm1, %v2816_v6 }
  0xe6   : > { %v1402_v28 = vpop.f32.mrf.mxu0  ;;  %v1443_v29 = vpop.f32.mrf.mxu1 }
  0xe7   : > { %v2188_v30 = vmax.f32 %v1402_v28, 0.0  ;;  %v2190_v31 = vmax.f32 %v1443_v29, 0.0 }
  0xe8   : > { %v1404_v32 = vpop.f32.mrf.mxu0  ;;  %v1445_v33 = vpop.f32.mrf.mxu1 }
  0xe9   : > { %v2189_v34 = vmax.f32 %v1404_v32, 0.0  ;;  %v2191_v35 = vmax.f32 %v1445_v33, 0.0 }
  0xea   : > { %v1406_v36 = vpop.f32.mrf.mxu0  ;;  %v1447_v51 = vpop.f32.mrf.mxu1 }
  0xeb   : > { %v2745_v37 = vpack.c.bf16 %v2189_v34, %v2188_v30  ;;  %v2746_v38 = vpack.c.bf16 %v2191_v35, %v2190_v31 }
  0xec   : > { %v1407_v39 = vpop.f32.mrf.mxu0  ;;  %v1448_v40 = vpop.f32.mrf.mxu1 }
  0xed   : > { %2388 = vst [vmem:[%s3147_s22] sm:$0xff] %v2745_v37  ;;  %2389 = vst [vmem:[%s3147_s22 + $0x8] sm:$0xff] %v2746_v38 }
  0xfa   : > { %v1484_v41 = vpop.f32.mrf.mxu0  ;;  %v1525_v42 = vpop.f32.mrf.mxu1 }
  0xfb   : > { %v2192_v43 = vmax.f32 %v1484_v41, 0.0  ;;  %v2194_v44 = vmax.f32 %v1525_v42, 0.0 }
  0xfc   : > { %v1486_v45 = vpop.f32.mrf.mxu0  ;;  %v1527_v46 = vpop.f32.mrf.mxu1 }
  0xfd   : > { %v2193_v47 = vmax.f32 %v1486_v45, 0.0  ;;  %v2195_v48 = vmax.f32 %v1527_v46, 0.0 }
  0xfe   : > { %v1488_v49 = vpop.f32.mrf.mxu0  ;;  %v1529_v50 = vpop.f32.mrf.mxu1 }
  0xff   : > { %v2747_v52 = vpack.c.bf16 %v2193_v47, %v2192_v43  ;;  %v2748_v53 = vpack.c.bf16 %v2195_v48, %v2194_v44 }
 0x100   : > { %v1489_v54 = vpop.f32.mrf.mxu0  ;;  %v1530_v55 = vpop.f32.mrf.mxu1 }
 0x101   : > { %2390 = vst [vmem:[%s3147_s22 + $0x10] sm:$0xff] %v2747_v52  ;;  %2391 = vst [vmem:[%s3147_s22 + $0x18] sm:$0xff] %v2748_v53 }
 0x10e   : > { %v1566_v56 = vpop.f32.mrf.mxu0  ;;  %v1607_v57 = vpop.f32.mrf.mxu1 }
 0x10f   : > { %v2196_v58 = vmax.f32 %v1566_v56, 0.0  ;;  %v2198_v59 = vmax.f32 %v1607_v57, 0.0 }
 0x110   : > { %v1568_v60 = vpop.f32.mrf.mxu0  ;;  %v1609_v61 = vpop.f32.mrf.mxu1 }
 0x111   : > { %v2197_v62 = vmax.f32 %v1568_v60, 0.0  ;;  %v2199_v63 = vmax.f32 %v1609_v61, 0.0 }
 0x112   : > { %v1570_v1 = vpop.f32.mrf.mxu0  ;;  %v1611_v2 = vpop.f32.mrf.mxu1 }
 0x113   : > { %v2749_v3 = vpack.c.bf16 %v2197_v62, %v2196_v58  ;;  %v2750_v4 = vpack.c.bf16 %v2199_v63, %v2198_v59 }
 0x114   : > { %v1571_v5 = vpop.f32.mrf.mxu0  ;;  %v1612_v6 = vpop.f32.mrf.mxu1 }
 0x115   : > { %2392 = vst [vmem:[%s3147_s22 + $0x20] sm:$0xff] %v2749_v3  ;;  %2393 = vst [vmem:[%s3147_s22 + $0x28] sm:$0xff] %v2750_v4 }
 0x122   : > { %v1648_v7 = vpop.f32.mrf.mxu0  ;;  %v1689_v8 = vpop.f32.mrf.mxu1 }
 0x123   : > { %v2200_v9 = vmax.f32 %v1648_v7, 0.0  ;;  %v2202_v10 = vmax.f32 %v1689_v8, 0.0 }
 0x124   : > { %v1650_v11 = vpop.f32.mrf.mxu0  ;;  %v1691_v12 = vpop.f32.mrf.mxu1 }
 0x125   : > { %v2201_v13 = vmax.f32 %v1650_v11, 0.0  ;;  %v2203_v14 = vmax.f32 %v1691_v12, 0.0 }
 0x126   : > { %v1652_v15 = vpop.f32.mrf.mxu0  ;;  %v1693_v16 = vpop.f32.mrf.mxu1 }
 0x127   : > { %v2751_v17 = vpack.c.bf16 %v2201_v13, %v2200_v9  ;;  %v2752_v18 = vpack.c.bf16 %v2203_v14, %v2202_v10 }
 0x128   : > { %v1653_v19 = vpop.f32.mrf.mxu0  ;;  %v1694_v20 = vpop.f32.mrf.mxu1 }
 0x129   : > { %2394 = vst [vmem:[%s3147_s22 + $0x30] sm:$0xff] %v2751_v17  ;;  %2395 = vst [vmem:[%s3147_s22 + $0x38] sm:$0xff] %v2752_v18 }
 0x136   : > { %v1730_v21 = vpop.f32.mrf.mxu0  ;;  %v1771_v22 = vpop.f32.mrf.mxu1 }
 0x137   : > { %v2204_v23 = vmax.f32 %v1730_v21, 0.0  ;;  %v2206_v24 = vmax.f32 %v1771_v22, 0.0 }
 0x138   : > { %v1732_v0 = vpop.f32.mrf.mxu0  ;;  %v1773_v25 = vpop.f32.mrf.mxu1 }
 0x139   : > { %v2205_v26 = vmax.f32 %v1732_v0, 0.0  ;;  %v2207_v27 = vmax.f32 %v1773_v25, 0.0 }
 0x13a   : > { %v1734_v28 = vpop.f32.mrf.mxu0  ;;  %v1775_v29 = vpop.f32.mrf.mxu1 }
 0x13b   : > { %v2753_v30 = vpack.c.bf16 %v2205_v26, %v2204_v23  ;;  %v2754_v31 = vpack.c.bf16 %v2207_v27, %v2206_v24 }
 0x13c   : > { %v1735_v32 = vpop.f32.mrf.mxu0  ;;  %v1776_v33 = vpop.f32.mrf.mxu1 }
 0x13d   : > { %2396 = vst [vmem:[%s3147_s22 + $0x40] sm:$0xff] %v2753_v30  ;;  %2397 = vst [vmem:[%s3147_s22 + $0x48] sm:$0xff] %v2754_v31 }
 0x14a   : > { %v1812_v34 = vpop.f32.mrf.mxu0  ;;  %v1853_v35 = vpop.f32.mrf.mxu1 }
 0x14b   : > { %v2208_v36 = vmax.f32 %v1812_v34, 0.0  ;;  %v2210_v51 = vmax.f32 %v1853_v35, 0.0 }
 0x14c   : > { %v1814_v37 = vpop.f32.mrf.mxu0  ;;  %v1855_v38 = vpop.f32.mrf.mxu1 }
 0x14d   : > { %v2209_v39 = vmax.f32 %v1814_v37, 0.0  ;;  %v2211_v40 = vmax.f32 %v1855_v38, 0.0 }
 0x14e   : > { %v1816_v41 = vpop.f32.mrf.mxu0  ;;  %v1857_v42 = vpop.f32.mrf.mxu1 }
 0x14f   : > { %v2755_v43 = vpack.c.bf16 %v2209_v39, %v2208_v36  ;;  %v2756_v44 = vpack.c.bf16 %v2211_v40, %v2210_v51 }
 0x150   : > { %v1817_v45 = vpop.f32.mrf.mxu0  ;;  %v1858_v46 = vpop.f32.mrf.mxu1 }
 0x151   : > { %2398 = vst [vmem:[%s3147_s22 + $0x50] sm:$0xff] %v2755_v43  ;;  %2399 = vst [vmem:[%s3147_s22 + $0x58] sm:$0xff] %v2756_v44 }
 0x15e   : > { %v1894_v47 = vpop.f32.mrf.mxu0  ;;  %v1935_v48 = vpop.f32.mrf.mxu1 }
 0x15f   : > { %v2212_v49 = vmax.f32 %v1894_v47, 0.0  ;;  %v2214_v50 = vmax.f32 %v1935_v48, 0.0 }
 0x160   : > { %v1896_v52 = vpop.f32.mrf.mxu0  ;;  %v1937_v53 = vpop.f32.mrf.mxu1 }
 0x161   : > { %v2213_v54 = vmax.f32 %v1896_v52, 0.0  ;;  %v2215_v55 = vmax.f32 %v1937_v53, 0.0 }
 0x162   : > { %v1898_v56 = vpop.f32.mrf.mxu0  ;;  %v1939_v57 = vpop.f32.mrf.mxu1 }
 0x163   : > { %v2757_v58 = vpack.c.bf16 %v2213_v54, %v2212_v49  ;;  %v2758_v59 = vpack.c.bf16 %v2215_v55, %v2214_v50 }
 0x164   : > { %v1899_v60 = vpop.f32.mrf.mxu0  ;;  %v1940_v61 = vpop.f32.mrf.mxu1 }
 0x165   : > { %2400 = vst [vmem:[%s3147_s22 + $0x60] sm:$0xff] %v2757_v58  ;;  %2401 = vst [vmem:[%s3147_s22 + $0x68] sm:$0xff] %v2758_v59 }
 0x172   : > { %v1976_v62 = vpop.f32.mrf.mxu0  ;;  %v2017_v63 = vpop.f32.mrf.mxu1 }
 0x173   : > { %v2216_v1 = vmax.f32 %v1976_v62, 0.0  ;;  %v2218_v2 = vmax.f32 %v2017_v63, 0.0 }
 0x174   : > { %v1978_v3 = vpop.f32.mrf.mxu0  ;;  %v2019_v4 = vpop.f32.mrf.mxu1 }
 0x175   : > { %v2217_v5 = vmax.f32 %v1978_v3, 0.0  ;;  %v2219_v6 = vmax.f32 %v2019_v4, 0.0 }
 0x176   : > { %v1980_v7 = vpop.f32.mrf.mxu0  ;;  %v2021_v8 = vpop.f32.mrf.mxu1 }
 0x177   : > { %v2759_v9 = vpack.c.bf16 %v2217_v5, %v2216_v1  ;;  %v2760_v10 = vpack.c.bf16 %v2219_v6, %v2218_v2 }
 0x178   : > { %v1981_v11 = vpop.f32.mrf.mxu0  ;;  %v2022_v12 = vpop.f32.mrf.mxu1 }
 0x179   : > { %2402 = vst [vmem:[%s3147_s22 + $0x70] sm:$0xff] %v2759_v9  ;;  %2403 = vst [vmem:[%s3147_s22 + $0x78] sm:$0xff] %v2760_v10 }
 0x186   : > { %v2058_v13 = vpop.f32.mrf.mxu0  ;;  %v2099_v14 = vpop.f32.mrf.mxu1 }
 0x187   : > { %v2220_v15 = vmax.f32 %v2058_v13, 0.0  ;;  %v2222_v16 = vmax.f32 %v2099_v14, 0.0 }
 0x188   : > { %v2060_v17 = vpop.f32.mrf.mxu0  ;;  %v2101_v18 = vpop.f32.mrf.mxu1 }
 0x189   : > { %v2221_v19 = vmax.f32 %v2060_v17, 0.0  ;;  %v2223_v20 = vmax.f32 %v2101_v18, 0.0 }
 0x18a   : > { %v2062_v21 = vpop.f32.mrf.mxu0  ;;  %v2103_v22 = vpop.f32.mrf.mxu1 }
 0x18b   : > { %v2761_v23 = vpack.c.bf16 %v2221_v19, %v2220_v15  ;;  %v2762_v24 = vpack.c.bf16 %v2223_v20, %v2222_v16 }
 0x18c   : > { %v2063_v0 = vpop.f32.mrf.mxu0  ;;  %v2104_v25 = vpop.f32.mrf.mxu1 }
 0x18d   : > { %2404 = vst [vmem:[%s3147_s22 + $0x80] sm:$0xff] %v2761_v23  ;;  %2405 = vst [vmem:[%s3147_s22 + $0x88] sm:$0xff] %v2762_v24 }
 0x19a   : > { %v2140_v26 = vpop.f32.mrf.mxu0  ;;  %v2181_v27 = vpop.f32.mrf.mxu1 }
 0x19b   : > { %v2224_v30 = vmax.f32 %v2140_v26, 0.0  ;;  %v2226_v31 = vmax.f32 %v2181_v27, 0.0 }
 0x19c   : > { %v2142_v28 = vpop.f32.mrf.mxu0  ;;  %v2183_v29 = vpop.f32.mrf.mxu1 }
 0x19d   : > { %v2225_v32 = vmax.f32 %v2142_v28, 0.0  ;;  %v2227_v33 = vmax.f32 %v2183_v29, 0.0 }
 0x19e   : > { %v2144_v34 = vpop.f32.mrf.mxu0  ;;  %v2185_v35 = vpop.f32.mrf.mxu1 }
 0x19f   : > { %v2763_v36 = vpack.c.bf16 %v2225_v32, %v2224_v30  ;;  %v2764_v51 = vpack.c.bf16 %v2227_v33, %v2226_v31 }
 0x1a0   : > { %v2145_v37 = vpop.f32.mrf.mxu0  ;;  %v2186_v38 = vpop.f32.mrf.mxu1 }
 0x1a1   : > { %2406 = vst [vmem:[%s3147_s22 + $0x90] sm:$0xff] %v2763_v36  ;;  %2407 = vst [vmem:[%s3147_s22 + $0x98] sm:$0xff] %v2764_v51 }
 0x1a2 PF: > { %s12_s9 = sadd.s32 1, %s2823_s9  }
 0x1a3   : > { %p9_p4 = scmp.ge.s32.totalorder %s12_s9, 6  }
 0x1a5   :  { %11 = sbr.rel (!%p9_p4) target bundleno = 1 (0x1), region = 61 }

</bundles_post_ra>
